<compile_context>
chip_gen: v7x
topology: tpu7x:2x2x1
jax: 0.10.0
libtpu: 0.0.40
codegen_flags: <defaults>
</compile_context>

<pallas_src>
import numpy as np
import jax
import jax.numpy as jnp
from jax.experimental import pallas as pl
from jax.experimental.pallas import tpu as pltpu


# ----------------------------- static configuration ------------------------- #

LAYER_DIMS = [(3, 16), (16, 32), (32, 64), (64, 32), (32, 16)]   # (in, out) per AE
CP = 128          # padded channel / lane count (lane-dense, no masked stores)
HW = 32           # input spatial size: 32 -> 16 -> 8 -> 4 -> 2 -> 1
R0 = 256          # rows per batch of the tap-packed layer-0 input (16*16)
ENC_MASK_ROWS = [256, 64, 16, 4]   # per-batch rows of layer-1..4 inputs


def _ord_idx(h, w, bits):
    """Bit-interleaved (LSB-first => most significant) canonical row index."""
    k = 0
    for i in range(bits):
        k = k * 2 + ((h >> i) & 1)
        k = k * 2 + ((w >> i) & 1)
    return k


# Layer-0 patch gather: canonical row k (ho,wo in the 16x16 grid) and tap q
# (q = 2*kh + kw) -> image pixel indices.
_H0 = np.zeros((R0, 4), np.int32)
_W0 = np.zeros((R0, 4), np.int32)
for _ho in range(16):
    for _wo in range(16):
        _k = _ord_idx(_ho, _wo, 4)
        for _q in range(4):
            _H0[_k, _q] = 2 * _ho + (_q // 2)
            _W0[_k, _q] = 2 * _wo + (_q % 2)

# Reconstruction unpack: image pixel (h,w) -> (canonical row in 16x16 grid, tap).
_KIDX = np.zeros((HW, HW), np.int32)
_QIDX = np.zeros((HW, HW), np.int32)
for _h in range(HW):
    for _w in range(HW):
        _KIDX[_h, _w] = _ord_idx(_h // 2, _w // 2, 4)
        _QIDX[_h, _w] = 2 * (_h % 2) + (_w % 2)


# ------------------------------- Pallas kernel ------------------------------ #

def _caes_kernel(x_ref, m1_ref, m2_ref, m3_ref, m4_ref,
                 w0_ref, b0_ref, ew_ref, eb_ref,
                 dw_ref, db_ref, wl_ref, bl_ref,
                 a5_ref, rec_ref):
    """Fused eval-mode CAES forward for one batch element (grid step).

    x_ref  : (1, 256, 128) bf16  layer-0 input, tap-packed (lane = 3*q + c)
    m*_ref : (1, rows, 128) bf16 denoising masks for layer-1..4 inputs
    w0_ref : (128, 128) bf16     layer-0 tap-packed encoder weight
    ew_ref : (4, 4, 128, 128) bf16  encoder taps, layers 1..4 (tap q = 2*kh+kw)
    dw_ref : (4, 4, 128, 128) bf16  decoder taps, stages ae5..ae2
    wl_ref : (128, 128) bf16     ae1 deconv, 4 taps lane-packed (lane = 3*q + c)
    b*/e*/d* biases : (*, 1, 128) / (1, 128) f32
    a5_ref : (1, 1, 128) f32     deepest code
    rec_ref: (1, 256, 128) bf16  reconstruction, tap-lane-packed
    """
    # --------------------------- encoder ---------------------------------- #
    # Layer 0: all 4 taps packed along K -> a single MXU matmul.
    a_f32 = jnp.maximum(
        jnp.dot(x_ref[0], w0_ref[...], preferred_element_type=jnp.float32)
        + b0_ref[...], 0.0)
    a = a_f32.astype(jnp.bfloat16)                         # (256, 128)

    mask_refs = (m1_ref, m2_ref, m3_ref, m4_ref)
    rows = R0
    for l in range(4):                                     # encoder layers 1..4
        a = a * mask_refs[l][0]                            # denoising corruption
        qr = rows // 4
        acc = jnp.dot(a[0:qr, :], ew_ref[l, 0],
                      preferred_element_type=jnp.float32)
        for q in range(1, 4):                              # contiguous row-quarters
            acc = acc + jnp.dot(a[q * qr:(q + 1) * qr, :], ew_ref[l, q],
                                preferred_element_type=jnp.float32)
        a_f32 = jnp.maximum(acc + eb_ref[l], 0.0)
        a = a_f32.astype(jnp.bfloat16)                     # cast once per layer
        rows = qr

    a5_ref[0] = a_f32                                      # (1, 128) f32

    # --------------------------- decoder ---------------------------------- #
    r = a                                                  # (1, 128) bf16
    rows = 1
    for stage in range(4):                                 # ae5, ae4, ae3, ae2
        bias = db_ref[stage]
        parts = []
        for q in range(4):                                 # tap q -> row quarter q
            o = jnp.dot(r, dw_ref[stage, q], preferred_element_type=jnp.float32)
            parts.append(jnp.maximum(o + bias, 0.0).astype(jnp.bfloat16))
        r = jnp.concatenate(parts, axis=0)                 # <= (256,128): tiny
        rows *= 4

    # Final stage (ae1 deconv): 4 taps lane-packed into one matmul, stored
    # directly to the output block (no concat, no extra copy, 4x smaller rec).
    o = jnp.dot(r, wl_ref[...], preferred_element_type=jnp.float32)
    rec_ref[0] = jnp.maximum(o + bl_ref[...], 0.0).astype(rec_ref.dtype)


def _caes_pallas_call(x_in, m1, m2, m3, m4, packed):
    n = x_in.shape[0]

    def batch_block(shape):
        nd = len(shape)
        return pl.BlockSpec((1,) + tuple(shape[1:]),
                            lambda b, _nd=nd: (b,) + (0,) * (_nd - 1))

    def shared_block(arr):
        nd = arr.ndim
        return pl.BlockSpec(tuple(arr.shape), lambda b, _nd=nd: (0,) * _nd)

    in_specs = [batch_block(x_in.shape),
                batch_block(m1.shape), batch_block(m2.shape),
                batch_block(m3.shape), batch_block(m4.shape),
                shared_block(packed["w0"]), shared_block(packed["b0"]),
                shared_block(packed["enc_w"]), shared_block(packed["enc_b"]),
                shared_block(packed["dec_w"]), shared_block(packed["dec_b"]),
                shared_block(packed["wL"]), shared_block(packed["bL"])]
    out_specs = (pl.BlockSpec((1, 1, CP), lambda b: (b, 0, 0)),
                 pl.BlockSpec((1, R0, CP), lambda b: (b, 0, 0)))

    return pl.pallas_call(
        _caes_kernel,
        out_shape=(jax.ShapeDtypeStruct((n, 1, CP), jnp.float32),
                   jax.ShapeDtypeStruct((n, R0, CP), jnp.bfloat16)),
        grid=(n,),
        in_specs=in_specs,
        out_specs=out_specs,
        compiler_params=pltpu.CompilerParams(
            dimension_semantics=("parallel",),
            vmem_limit_bytes=20 * 1024 * 1024),
        cost_estimate=pl.CostEstimate(flops=int(8e7), transcendentals=0,
                                      bytes_accessed=int(3e6)),
    )(x_in, m1, m2, m3, m4,
      packed["w0"], packed["b0"], packed["enc_w"], packed["enc_b"],
      packed["dec_w"], packed["dec_b"], packed["wL"], packed["bL"])


# ----------------------- parameters & one-time packing ---------------------- #

def init_params(key):
    params = []
    for (cin, cout) in LAYER_DIMS:
        key, k1, k2, k3, k4 = jax.random.split(key, 5)
        fan_in_f = cin * 4
        wf = jax.random.uniform(k1, (cout, cin, 2, 2), jnp.float32,
                                -1.0, 1.0) / jnp.sqrt(fan_in_f)
        bf = jax.random.uniform(k2, (cout,), jnp.float32,
                                -1.0, 1.0) / jnp.sqrt(fan_in_f)
        fan_in_b = cout * 4
        wb = jax.random.uniform(k3, (cout, cin, 2, 2), jnp.float32,
                                -1.0, 1.0) / jnp.sqrt(fan_in_b)
        bb = jax.random.uniform(k4, (cin,), jnp.float32,
                                -1.0, 1.0) / jnp.sqrt(fan_in_b)
        params.append({"wf": wf, "bf": bf, "wb": wb, "bb": bb})
    return params


def pack_params(params):
    """One-time weight packing into matmul-ready, lane-padded bf16 layout."""
    # Layer 0 (ae1 forward): taps packed along K, lane j = 3*q + c.
    w0 = np.zeros((CP, CP), np.float32)
    b0 = np.zeros((1, CP), np.float32)
    wf0 = np.asarray(params[0]["wf"])                      # (16, 3, 2, 2)
    for q in range(4):
        kh, kw = q // 2, q % 2
        w0[q * 3:(q + 1) * 3, :16] = wf0[:, :, kh, kw].T
    b0[0, :16] = np.asarray(params[0]["bf"])

    # Encoder layers 1..4: per-tap (row-quarter) weights.
    enc_w = np.zeros((4, 4, CP, CP), np.float32)
    enc_b = np.zeros((4, 1, CP), np.float32)
    for l in range(1, 5):
        wf = np.asarray(params[l]["wf"])                   # (cout, cin, 2, 2)
        cout, cin = wf.shape[0], wf.shape[1]
        for q in range(4):
            kh, kw = q // 2, q % 2
            enc_w[l - 1, q, :cin, :cout] = wf[:, :, kh, kw].T
        enc_b[l - 1, 0, :cout] = np.asarray(params[l]["bf"])

    # Decoder stages 0..3 (ae5, ae4, ae3, ae2 backward): per-tap weights.
    dec_w = np.zeros((4, 4, CP, CP), np.float32)
    dec_b = np.zeros((4, 1, CP), np.float32)
    for j in range(4):
        p = params[4 - j]
        wb = np.asarray(p["wb"])                           # (din, dout, 2, 2)
        din, dout = wb.shape[0], wb.shape[1]
        for q in range(4):
            kh, kw = q // 2, q % 2
            dec_w[j, q, :din, :dout] = wb[:, :, kh, kw]
        dec_b[j, 0, :dout] = np.asarray(p["bb"])

    # Final stage (ae1 backward): taps packed along output lanes, lane 3*q + c.
    wL = np.zeros((CP, CP), np.float32)
    bL = np.zeros((1, CP), np.float32)
    wb1 = np.asarray(params[0]["wb"])                      # (16, 3, 2, 2)
    bb1 = np.asarray(params[0]["bb"])                      # (3,)
    for q in range(4):
        kh, kw = q // 2, q % 2
        wL[:16, q * 3:(q + 1) * 3] = wb1[:, :, kh, kw]
        bL[0, q * 3:(q + 1) * 3] = bb1

    return {"w0": jnp.asarray(w0, jnp.bfloat16), "b0": jnp.asarray(b0),
            "enc_w": jnp.asarray(enc_w, jnp.bfloat16), "enc_b": jnp.asarray(enc_b),
            "dec_w": jnp.asarray(dec_w, jnp.bfloat16), "dec_b": jnp.asarray(dec_b),
            "wL": jnp.asarray(wL, jnp.bfloat16), "bL": jnp.asarray(bL)}


# ------------------------------- denoising masks ----------------------------- #

def make_masks(key, n, noisy=True):
    """Multiplicative corruption masks, one per AE input (torch: N(0,0.1) > -0.1).

    m0 applies to the raw image (handled in the wrapper); m1..m4 apply to the
    intermediate activations in their canonical (rows, 128) layout.
    """
    shapes = {"m0": (n, 3, HW, HW)}
    for i, r in enumerate(ENC_MASK_ROWS):
        shapes["m%d" % (i + 1)] = (n, r, CP)
    masks = {}
    keys = jax.random.split(key, 5)
    for kk, name in zip(keys, ["m0", "m1", "m2", "m3", "m4"]):
        dt = jnp.float32 if name == "m0" else jnp.bfloat16
        if noisy:
            m = (jax.random.normal(kk, shapes[name]) * 0.1 > -0.1)
        else:
            m = jnp.ones(shapes[name], bool)
        masks[name] = m.astype(dt)
    return masks


# ------------------------------- forward wrapper ----------------------------- #

def caes_forward_eval(packed, x, masks):
    """Eval-mode CAES.forward: returns (a5, x_reconstruct)."""
    n = x.shape[0]
    # Layer-0 corruption applied on the raw (valid-only) input, pre-packing.
    x_noisy = x * masks["m0"]
    x_nhwc = jnp.transpose(x_noisy, (0, 2, 3, 1))                   # (n,32,32,3)
    x_tap = x_nhwc[:, _H0, _W0, :]                                  # (n,256,4,3)
    x_in = jnp.zeros((n, R0, CP), jnp.bfloat16).at[:, :, :12].set(
        x_tap.reshape(n, R0, 12).astype(jnp.bfloat16))

    a5_p, rec_p = _caes_pallas_call(x_in, masks["m1"], masks["m2"],
                                    masks["m3"], masks["m4"], packed)

    a5 = a5_p[:, 0, :16].reshape(n, 16, 1, 1)
    rec12 = rec_p[:, :, :12].astype(jnp.float32).reshape(n, R0, 4, 3)
    x_rec = rec12[:, _KIDX, _QIDX, :]                               # (n,32,32,3)
    x_rec = jnp.transpose(x_rec, (0, 3, 1, 2))
    return a5, x_rec


# ---------------------- plain-JAX reference (no noise mask) ------------------ #

def _conv_ref(x, wf, bf):
    n, c, h, w = x.shape
    ho, wo = h // 2, w // 2
    xp = x.reshape(n, c, ho, 2, wo, 2).transpose(0, 2, 4, 3, 5, 1)
    xp = xp.reshape(n * ho * wo, 4 * c)
    wm = jnp.transpose(wf, (2, 3, 1, 0)).reshape(4 * c, -1)
    y = jnp.maximum(xp @ wm + bf, 0.0)
    return y.reshape(n, ho, wo, -1).transpose(0, 3, 1, 2)


def _deconv_ref(x, wb, bb):
    n, ci, h, w = x.shape
    co = wb.shape[1]
    xm = x.transpose(0, 2, 3, 1).reshape(n * h * w, ci)
    y = jnp.maximum(xm @ wb.reshape(ci, co * 4) + jnp.repeat(bb, 4), 0.0)
    y = y.reshape(n, h, w, co, 2, 2).transpose(0, 3, 1, 4, 2, 5)
    return y.reshape(n, co, 2 * h, 2 * w)


def caes_reference_nomask(params, x):
    a = x
    for p in params:
        a = _conv_ref(a, p["wf"], p["bf"])
    r = a
    for p in reversed(params):
        r = _deconv_ref(r, p["wb"], p["bb"])
    return a, r


# ------------------------------------ main ----------------------------------- #

if __name__ == "__main__":
    key = jax.random.PRNGKey(0)
    key, kp, kx, km = jax.random.split(key, 4)

    params = init_params(kp)
    packed = pack_params(params)
    x = jax.random.normal(kx, (2, 3, 32, 32), jnp.float32)

    fwd = jax.jit(caes_forward_eval)

    # 1) Correctness check: masks = 1 (deterministic path), tolerance 2% (was 10%).
    ones_masks = make_masks(km, 2, noisy=False)
    a5_k, rec_k = fwd(packed, x, ones_masks)
    jax.block_until_ready((a5_k, rec_k))
    a5_r, rec_r = caes_reference_nomask(params, x)
    tol_a5 = 2e-2 * float(jnp.max(jnp.abs(a5_r))) + 1e-5
    tol_rc = 2e-2 * float(jnp.max(jnp.abs(rec_r))) + 1e-5
    err_a5 = float(jnp.max(jnp.abs(a5_k - a5_r)))
    err_rc = float(jnp.max(jnp.abs(rec_k - rec_r)))
    assert err_a5 <= tol_a5, ("a5 mismatch", err_a5, tol_a5)
    assert err_rc <= tol_rc, ("rec mismatch", err_rc, tol_rc)

    # 2) Real eval-mode forward: denoising corruption at every AE input
    #    (matching the torch module, which applies the mask even in eval).
    noisy_masks = make_masks(jax.random.PRNGKey(42), 2, noisy=True)
    a5, x_rec = fwd(packed, x, noisy_masks)
    jax.block_until_ready((a5, x_rec))

    assert a5.shape == (2, 16, 1, 1), a5.shape
    assert x_rec.shape == (2, 3, 32, 32), x_rec.shape
    assert bool(jnp.all(jnp.isfinite(a5))) and bool(jnp.all(jnp.isfinite(x_rec)))

    print("KERNEL_OK")
</pallas_src>

<mosaic_0001>
module attributes {stable_mosaic.version = 11 : i64} {
  func.func @_caes_kernel(%arg0: i32, %arg1: memref<1x256x128xbf16, #tpu.memory_space<vmem>>, %arg2: memref<1x256x128xbf16, #tpu.memory_space<vmem>>, %arg3: memref<1x64x128xbf16, #tpu.memory_space<vmem>>, %arg4: memref<1x16x128xbf16, #tpu.memory_space<vmem>>, %arg5: memref<1x4x128xbf16, #tpu.memory_space<vmem>>, %arg6: memref<128x128xbf16, #tpu.memory_space<vmem>>, %arg7: memref<1x128xf32, #tpu.memory_space<vmem>>, %arg8: memref<4x4x128x128xbf16, #tpu.memory_space<vmem>>, %arg9: memref<4x1x128xf32, #tpu.memory_space<vmem>>, %arg10: memref<4x4x128x128xbf16, #tpu.memory_space<vmem>>, %arg11: memref<4x1x128xf32, #tpu.memory_space<vmem>>, %arg12: memref<128x128xbf16, #tpu.memory_space<vmem>>, %arg13: memref<1x128xf32, #tpu.memory_space<vmem>>, %arg14: memref<1x1x128xf32, #tpu.memory_space<vmem>>, %arg15: memref<1x256x128xbf16, #tpu.memory_space<vmem>>) attributes {dimension_semantics = [#tpu.dimension_semantics<parallel>], iteration_bounds = array<i64: 2>, scalar_prefetch = 0 : i64, scratch_operands = 0 : i64, tpu.core_type = #tpu.core_type<tc>, window_params = [{transform_indices = @transform_0, window_bounds = array<i64: 1, 256, 128>}, {transform_indices = @transform_1, window_bounds = array<i64: 1, 256, 128>}, {transform_indices = @transform_2, window_bounds = array<i64: 1, 64, 128>}, {transform_indices = @transform_3, window_bounds = array<i64: 1, 16, 128>}, {transform_indices = @transform_4, window_bounds = array<i64: 1, 4, 128>}, {pipeline_mode = #tpu.pipeline_mode<synchronous>, transform_indices = @transform_5, window_bounds = array<i64: 128, 128>}, {pipeline_mode = #tpu.pipeline_mode<synchronous>, transform_indices = @transform_6, window_bounds = array<i64: 1, 128>}, {pipeline_mode = #tpu.pipeline_mode<synchronous>, transform_indices = @transform_7, window_bounds = array<i64: 4, 4, 128, 128>}, {pipeline_mode = #tpu.pipeline_mode<synchronous>, transform_indices = @transform_8, window_bounds = array<i64: 4, 1, 128>}, {pipeline_mode = #tpu.pipeline_mode<synchronous>, transform_indices = @transform_9, window_bounds = array<i64: 4, 4, 128, 128>}, {pipeline_mode = #tpu.pipeline_mode<synchronous>, transform_indices = @transform_10, window_bounds = array<i64: 4, 1, 128>}, {pipeline_mode = #tpu.pipeline_mode<synchronous>, transform_indices = @transform_11, window_bounds = array<i64: 128, 128>}, {pipeline_mode = #tpu.pipeline_mode<synchronous>, transform_indices = @transform_12, window_bounds = array<i64: 1, 128>}, {transform_indices = @transform_13, window_bounds = array<i64: 1, 1, 128>}, {transform_indices = @transform_14, window_bounds = array<i64: 1, 256, 128>}]} {
    %c0 = arith.constant 0 : index
    %c0_0 = arith.constant 0 : index
    %c0_1 = arith.constant 0 : index
    %0 = vector.load %arg1[%c0, %c0_0, %c0_1] : memref<1x256x128xbf16, #tpu.memory_space<vmem>>, vector<1x256x128xbf16>
    %1 = vector.shape_cast %0 : vector<1x256x128xbf16> to vector<256x128xbf16>
    %c0_2 = arith.constant 0 : index
    %c0_3 = arith.constant 0 : index
    %2 = vector.load %arg6[%c0_2, %c0_3] : memref<128x128xbf16, #tpu.memory_space<vmem>>, vector<128x128xbf16>
    %cst = arith.constant dense<0.000000e+00> : vector<256x128xf32>
    %3 = tpu.matmul %1, %2, %cst {dimension_numbers = #tpu.dot_dimension_numbers<[1], [0], [0], [1], [0, 0, 1, 1], [], []>} : vector<256x128xbf16>, vector<128x128xbf16>, vector<256x128xf32> -> vector<256x128xf32>
    %c0_4 = arith.constant 0 : index
    %c0_5 = arith.constant 0 : index
    %4 = vector.load %arg7[%c0_4, %c0_5] : memref<1x128xf32, #tpu.memory_space<vmem>>, vector<1x128xf32>
    %5 = vector.broadcast %4 : vector<1x128xf32> to vector<256x128xf32>
    %6 = arith.addf %3, %5 : vector<256x128xf32>
    %cst_6 = arith.constant 0.000000e+00 : f32
    %7 = vector.broadcast %cst_6 : f32 to vector<256x128xf32>
    %8 = arith.maximumf %6, %7 : vector<256x128xf32>
    %9 = arith.truncf %8 : vector<256x128xf32> to vector<256x128xbf16>
    %c0_7 = arith.constant 0 : index
    %c0_8 = arith.constant 0 : index
    %c0_9 = arith.constant 0 : index
    %10 = vector.load %arg2[%c0_7, %c0_8, %c0_9] : memref<1x256x128xbf16, #tpu.memory_space<vmem>>, vector<1x256x128xbf16>
    %11 = vector.shape_cast %10 : vector<1x256x128xbf16> to vector<256x128xbf16>
    %12 = arith.mulf %9, %11 : vector<256x128xbf16>
    %13 = vector.extract_strided_slice %12 {offsets = [0, 0], sizes = [64, 128], strides = [1, 1]} : vector<256x128xbf16> to vector<64x128xbf16>
    %c0_10 = arith.constant 0 : index
    %c0_11 = arith.constant 0 : index
    %c0_12 = arith.constant 0 : index
    %c0_13 = arith.constant 0 : index
    %14 = vector.load %arg8[%c0_10, %c0_11, %c0_12, %c0_13] : memref<4x4x128x128xbf16, #tpu.memory_space<vmem>>, vector<1x1x128x128xbf16>
    %15 = vector.shape_cast %14 : vector<1x1x128x128xbf16> to vector<128x128xbf16>
    %cst_14 = arith.constant dense<0.000000e+00> : vector<64x128xf32>
    %16 = tpu.matmul %13, %15, %cst_14 {dimension_numbers = #tpu.dot_dimension_numbers<[1], [0], [0], [1], [0, 0, 1, 1], [], []>} : vector<64x128xbf16>, vector<128x128xbf16>, vector<64x128xf32> -> vector<64x128xf32>
    %17 = vector.extract_strided_slice %12 {offsets = [64, 0], sizes = [64, 128], strides = [1, 1]} : vector<256x128xbf16> to vector<64x128xbf16>
    %c0_15 = arith.constant 0 : index
    %c1 = arith.constant 1 : index
    %c0_16 = arith.constant 0 : index
    %c0_17 = arith.constant 0 : index
    %18 = vector.load %arg8[%c0_15, %c1, %c0_16, %c0_17] : memref<4x4x128x128xbf16, #tpu.memory_space<vmem>>, vector<1x1x128x128xbf16>
    %19 = vector.shape_cast %18 : vector<1x1x128x128xbf16> to vector<128x128xbf16>
    %cst_18 = arith.constant dense<0.000000e+00> : vector<64x128xf32>
    %20 = tpu.matmul %17, %19, %cst_18 {dimension_numbers = #tpu.dot_dimension_numbers<[1], [0], [0], [1], [0, 0, 1, 1], [], []>} : vector<64x128xbf16>, vector<128x128xbf16>, vector<64x128xf32> -> vector<64x128xf32>
    %21 = arith.addf %16, %20 : vector<64x128xf32>
    %22 = vector.extract_strided_slice %12 {offsets = [128, 0], sizes = [64, 128], strides = [1, 1]} : vector<256x128xbf16> to vector<64x128xbf16>
    %c0_19 = arith.constant 0 : index
    %c2 = arith.constant 2 : index
    %c0_20 = arith.constant 0 : index
    %c0_21 = arith.constant 0 : index
    %23 = vector.load %arg8[%c0_19, %c2, %c0_20, %c0_21] : memref<4x4x128x128xbf16, #tpu.memory_space<vmem>>, vector<1x1x128x128xbf16>
    %24 = vector.shape_cast %23 : vector<1x1x128x128xbf16> to vector<128x128xbf16>
    %cst_22 = arith.constant dense<0.000000e+00> : vector<64x128xf32>
    %25 = tpu.matmul %22, %24, %cst_22 {dimension_numbers = #tpu.dot_dimension_numbers<[1], [0], [0], [1], [0, 0, 1, 1], [], []>} : vector<64x128xbf16>, vector<128x128xbf16>, vector<64x128xf32> -> vector<64x128xf32>
    %26 = arith.addf %21, %25 : vector<64x128xf32>
    %27 = vector.extract_strided_slice %12 {offsets = [192, 0], sizes = [64, 128], strides = [1, 1]} : vector<256x128xbf16> to vector<64x128xbf16>
    %c0_23 = arith.constant 0 : index
    %c3 = arith.constant 3 : index
    %c0_24 = arith.constant 0 : index
    %c0_25 = arith.constant 0 : index
    %28 = vector.load %arg8[%c0_23, %c3, %c0_24, %c0_25] : memref<4x4x128x128xbf16, #tpu.memory_space<vmem>>, vector<1x1x128x128xbf16>
    %29 = vector.shape_cast %28 : vector<1x1x128x128xbf16> to vector<128x128xbf16>
    %cst_26 = arith.constant dense<0.000000e+00> : vector<64x128xf32>
    %30 = tpu.matmul %27, %29, %cst_26 {dimension_numbers = #tpu.dot_dimension_numbers<[1], [0], [0], [1], [0, 0, 1, 1], [], []>} : vector<64x128xbf16>, vector<128x128xbf16>, vector<64x128xf32> -> vector<64x128xf32>
    %31 = arith.addf %26, %30 : vector<64x128xf32>
    %c0_27 = arith.constant 0 : index
    %c0_28 = arith.constant 0 : index
    %c0_29 = arith.constant 0 : index
    %32 = vector.load %arg9[%c0_27, %c0_28, %c0_29] : memref<4x1x128xf32, #tpu.memory_space<vmem>>, vector<1x1x128xf32>
    %33 = vector.shape_cast %32 : vector<1x1x128xf32> to vector<1x128xf32>
    %34 = vector.broadcast %33 : vector<1x128xf32> to vector<64x128xf32>
    %35 = arith.addf %31, %34 : vector<64x128xf32>
    %cst_30 = arith.constant 0.000000e+00 : f32
    %36 = vector.broadcast %cst_30 : f32 to vector<64x128xf32>
    %37 = arith.maximumf %35, %36 : vector<64x128xf32>
    %38 = arith.truncf %37 : vector<64x128xf32> to vector<64x128xbf16>
    %c0_31 = arith.constant 0 : index
    %c0_32 = arith.constant 0 : index
    %c0_33 = arith.constant 0 : index
    %39 = vector.load %arg3[%c0_31, %c0_32, %c0_33] : memref<1x64x128xbf16, #tpu.memory_space<vmem>>, vector<1x64x128xbf16>
    %40 = vector.shape_cast %39 : vector<1x64x128xbf16> to vector<64x128xbf16>
    %41 = arith.mulf %38, %40 : vector<64x128xbf16>
    %42 = vector.extract_strided_slice %41 {offsets = [0, 0], sizes = [16, 128], strides = [1, 1]} : vector<64x128xbf16> to vector<16x128xbf16>
    %c1_34 = arith.constant 1 : index
    %c0_35 = arith.constant 0 : index
    %c0_36 = arith.constant 0 : index
    %c0_37 = arith.constant 0 : index
    %43 = vector.load %arg8[%c1_34, %c0_35, %c0_36, %c0_37] : memref<4x4x128x128xbf16, #tpu.memory_space<vmem>>, vector<1x1x128x128xbf16>
    %44 = vector.shape_cast %43 : vector<1x1x128x128xbf16> to vector<128x128xbf16>
    %cst_38 = arith.constant dense<0.000000e+00> : vector<16x128xf32>
    %45 = tpu.matmul %42, %44, %cst_38 {dimension_numbers = #tpu.dot_dimension_numbers<[1], [0], [0], [1], [0, 0, 1, 1], [], []>} : vector<16x128xbf16>, vector<128x128xbf16>, vector<16x128xf32> -> vector<16x128xf32>
    %46 = vector.extract_strided_slice %41 {offsets = [16, 0], sizes = [16, 128], strides = [1, 1]} : vector<64x128xbf16> to vector<16x128xbf16>
    %c1_39 = arith.constant 1 : index
    %c1_40 = arith.constant 1 : index
    %c0_41 = arith.constant 0 : index
    %c0_42 = arith.constant 0 : index
    %47 = vector.load %arg8[%c1_39, %c1_40, %c0_41, %c0_42] : memref<4x4x128x128xbf16, #tpu.memory_space<vmem>>, vector<1x1x128x128xbf16>
    %48 = vector.shape_cast %47 : vector<1x1x128x128xbf16> to vector<128x128xbf16>
    %cst_43 = arith.constant dense<0.000000e+00> : vector<16x128xf32>
    %49 = tpu.matmul %46, %48, %cst_43 {dimension_numbers = #tpu.dot_dimension_numbers<[1], [0], [0], [1], [0, 0, 1, 1], [], []>} : vector<16x128xbf16>, vector<128x128xbf16>, vector<16x128xf32> -> vector<16x128xf32>
    %50 = arith.addf %45, %49 : vector<16x128xf32>
    %51 = vector.extract_strided_slice %41 {offsets = [32, 0], sizes = [16, 128], strides = [1, 1]} : vector<64x128xbf16> to vector<16x128xbf16>
    %c1_44 = arith.constant 1 : index
    %c2_45 = arith.constant 2 : index
    %c0_46 = arith.constant 0 : index
    %c0_47 = arith.constant 0 : index
    %52 = vector.load %arg8[%c1_44, %c2_45, %c0_46, %c0_47] : memref<4x4x128x128xbf16, #tpu.memory_space<vmem>>, vector<1x1x128x128xbf16>
    %53 = vector.shape_cast %52 : vector<1x1x128x128xbf16> to vector<128x128xbf16>
    %cst_48 = arith.constant dense<0.000000e+00> : vector<16x128xf32>
    %54 = tpu.matmul %51, %53, %cst_48 {dimension_numbers = #tpu.dot_dimension_numbers<[1], [0], [0], [1], [0, 0, 1, 1], [], []>} : vector<16x128xbf16>, vector<128x128xbf16>, vector<16x128xf32> -> vector<16x128xf32>
    %55 = arith.addf %50, %54 : vector<16x128xf32>
    %56 = vector.extract_strided_slice %41 {offsets = [48, 0], sizes = [16, 128], strides = [1, 1]} : vector<64x128xbf16> to vector<16x128xbf16>
    %c1_49 = arith.constant 1 : index
    %c3_50 = arith.constant 3 : index
    %c0_51 = arith.constant 0 : index
    %c0_52 = arith.constant 0 : index
    %57 = vector.load %arg8[%c1_49, %c3_50, %c0_51, %c0_52] : memref<4x4x128x128xbf16, #tpu.memory_space<vmem>>, vector<1x1x128x128xbf16>
    %58 = vector.shape_cast %57 : vector<1x1x128x128xbf16> to vector<128x128xbf16>
    %cst_53 = arith.constant dense<0.000000e+00> : vector<16x128xf32>
    %59 = tpu.matmul %56, %58, %cst_53 {dimension_numbers = #tpu.dot_dimension_numbers<[1], [0], [0], [1], [0, 0, 1, 1], [], []>} : vector<16x128xbf16>, vector<128x128xbf16>, vector<16x128xf32> -> vector<16x128xf32>
    %60 = arith.addf %55, %59 : vector<16x128xf32>
    %c1_54 = arith.constant 1 : index
    %c0_55 = arith.constant 0 : index
    %c0_56 = arith.constant 0 : index
    %61 = vector.load %arg9[%c1_54, %c0_55, %c0_56] : memref<4x1x128xf32, #tpu.memory_space<vmem>>, vector<1x1x128xf32>
    %62 = vector.shape_cast %61 : vector<1x1x128xf32> to vector<1x128xf32>
    %63 = vector.broadcast %62 : vector<1x128xf32> to vector<16x128xf32>
    %64 = arith.addf %60, %63 : vector<16x128xf32>
    %cst_57 = arith.constant 0.000000e+00 : f32
    %65 = vector.broadcast %cst_57 : f32 to vector<16x128xf32>
    %66 = arith.maximumf %64, %65 : vector<16x128xf32>
    %67 = arith.truncf %66 : vector<16x128xf32> to vector<16x128xbf16>
    %c0_58 = arith.constant 0 : index
    %c0_59 = arith.constant 0 : index
    %c0_60 = arith.constant 0 : index
    %68 = vector.load %arg4[%c0_58, %c0_59, %c0_60] : memref<1x16x128xbf16, #tpu.memory_space<vmem>>, vector<1x16x128xbf16>
    %69 = vector.shape_cast %68 : vector<1x16x128xbf16> to vector<16x128xbf16>
    %70 = arith.mulf %67, %69 : vector<16x128xbf16>
    %71 = vector.extract_strided_slice %70 {offsets = [0, 0], sizes = [4, 128], strides = [1, 1]} : vector<16x128xbf16> to vector<4x128xbf16>
    %c2_61 = arith.constant 2 : index
    %c0_62 = arith.constant 0 : index
    %c0_63 = arith.constant 0 : index
    %c0_64 = arith.constant 0 : index
    %72 = vector.load %arg8[%c2_61, %c0_62, %c0_63, %c0_64] : memref<4x4x128x128xbf16, #tpu.memory_space<vmem>>, vector<1x1x128x128xbf16>
    %73 = vector.shape_cast %72 : vector<1x1x128x128xbf16> to vector<128x128xbf16>
    %cst_65 = arith.constant dense<0.000000e+00> : vector<4x128xf32>
    %74 = tpu.matmul %71, %73, %cst_65 {dimension_numbers = #tpu.dot_dimension_numbers<[1], [0], [0], [1], [0, 0, 1, 1], [], []>} : vector<4x128xbf16>, vector<128x128xbf16>, vector<4x128xf32> -> vector<4x128xf32>
    %75 = vector.extract_strided_slice %70 {offsets = [4, 0], sizes = [4, 128], strides = [1, 1]} : vector<16x128xbf16> to vector<4x128xbf16>
    %c2_66 = arith.constant 2 : index
    %c1_67 = arith.constant 1 : index
    %c0_68 = arith.constant 0 : index
    %c0_69 = arith.constant 0 : index
    %76 = vector.load %arg8[%c2_66, %c1_67, %c0_68, %c0_69] : memref<4x4x128x128xbf16, #tpu.memory_space<vmem>>, vector<1x1x128x128xbf16>
    %77 = vector.shape_cast %76 : vector<1x1x128x128xbf16> to vector<128x128xbf16>
    %cst_70 = arith.constant dense<0.000000e+00> : vector<4x128xf32>
    %78 = tpu.matmul %75, %77, %cst_70 {dimension_numbers = #tpu.dot_dimension_numbers<[1], [0], [0], [1], [0, 0, 1, 1], [], []>} : vector<4x128xbf16>, vector<128x128xbf16>, vector<4x128xf32> -> vector<4x128xf32>
    %79 = arith.addf %74, %78 : vector<4x128xf32>
    %80 = vector.extract_strided_slice %70 {offsets = [8, 0], sizes = [4, 128], strides = [1, 1]} : vector<16x128xbf16> to vector<4x128xbf16>
    %c2_71 = arith.constant 2 : index
    %c2_72 = arith.constant 2 : index
    %c0_73 = arith.constant 0 : index
    %c0_74 = arith.constant 0 : index
    %81 = vector.load %arg8[%c2_71, %c2_72, %c0_73, %c0_74] : memref<4x4x128x128xbf16, #tpu.memory_space<vmem>>, vector<1x1x128x128xbf16>
    %82 = vector.shape_cast %81 : vector<1x1x128x128xbf16> to vector<128x128xbf16>
    %cst_75 = arith.constant dense<0.000000e+00> : vector<4x128xf32>
    %83 = tpu.matmul %80, %82, %cst_75 {dimension_numbers = #tpu.dot_dimension_numbers<[1], [0], [0], [1], [0, 0, 1, 1], [], []>} : vector<4x128xbf16>, vector<128x128xbf16>, vector<4x128xf32> -> vector<4x128xf32>
    %84 = arith.addf %79, %83 : vector<4x128xf32>
    %85 = vector.extract_strided_slice %70 {offsets = [12, 0], sizes = [4, 128], strides = [1, 1]} : vector<16x128xbf16> to vector<4x128xbf16>
    %c2_76 = arith.constant 2 : index
    %c3_77 = arith.constant 3 : index
    %c0_78 = arith.constant 0 : index
    %c0_79 = arith.constant 0 : index
    %86 = vector.load %arg8[%c2_76, %c3_77, %c0_78, %c0_79] : memref<4x4x128x128xbf16, #tpu.memory_space<vmem>>, vector<1x1x128x128xbf16>
    %87 = vector.shape_cast %86 : vector<1x1x128x128xbf16> to vector<128x128xbf16>
    %cst_80 = arith.constant dense<0.000000e+00> : vector<4x128xf32>
    %88 = tpu.matmul %85, %87, %cst_80 {dimension_numbers = #tpu.dot_dimension_numbers<[1], [0], [0], [1], [0, 0, 1, 1], [], []>} : vector<4x128xbf16>, vector<128x128xbf16>, vector<4x128xf32> -> vector<4x128xf32>
    %89 = arith.addf %84, %88 : vector<4x128xf32>
    %c2_81 = arith.constant 2 : index
    %c0_82 = arith.constant 0 : index
    %c0_83 = arith.constant 0 : index
    %90 = vector.load %arg9[%c2_81, %c0_82, %c0_83] : memref<4x1x128xf32, #tpu.memory_space<vmem>>, vector<1x1x128xf32>
    %91 = vector.shape_cast %90 : vector<1x1x128xf32> to vector<1x128xf32>
    %92 = vector.broadcast %91 : vector<1x128xf32> to vector<4x128xf32>
    %93 = arith.addf %89, %92 : vector<4x128xf32>
    %cst_84 = arith.constant 0.000000e+00 : f32
    %94 = vector.broadcast %cst_84 : f32 to vector<4x128xf32>
    %95 = arith.maximumf %93, %94 : vector<4x128xf32>
    %96 = arith.truncf %95 : vector<4x128xf32> to vector<4x128xbf16>
    %c0_85 = arith.constant 0 : index
    %c0_86 = arith.constant 0 : index
    %c0_87 = arith.constant 0 : index
    %97 = vector.load %arg5[%c0_85, %c0_86, %c0_87] : memref<1x4x128xbf16, #tpu.memory_space<vmem>>, vector<1x4x128xbf16>
    %98 = vector.shape_cast %97 : vector<1x4x128xbf16> to vector<4x128xbf16>
    %99 = arith.mulf %96, %98 : vector<4x128xbf16>
    %100 = vector.extract_strided_slice %99 {offsets = [0, 0], sizes = [1, 128], strides = [1, 1]} : vector<4x128xbf16> to vector<1x128xbf16>
    %c3_88 = arith.constant 3 : index
    %c0_89 = arith.constant 0 : index
    %c0_90 = arith.constant 0 : index
    %c0_91 = arith.constant 0 : index
    %101 = vector.load %arg8[%c3_88, %c0_89, %c0_90, %c0_91] : memref<4x4x128x128xbf16, #tpu.memory_space<vmem>>, vector<1x1x128x128xbf16>
    %102 = vector.shape_cast %101 : vector<1x1x128x128xbf16> to vector<128x128xbf16>
    %cst_92 = arith.constant dense<0.000000e+00> : vector<1x128xf32>
    %103 = tpu.matmul %100, %102, %cst_92 {dimension_numbers = #tpu.dot_dimension_numbers<[1], [0], [0], [1], [0, 0, 1, 1], [], []>} : vector<1x128xbf16>, vector<128x128xbf16>, vector<1x128xf32> -> vector<1x128xf32>
    %104 = vector.extract_strided_slice %99 {offsets = [1, 0], sizes = [1, 128], strides = [1, 1]} : vector<4x128xbf16> to vector<1x128xbf16>
    %c3_93 = arith.constant 3 : index
    %c1_94 = arith.constant 1 : index
    %c0_95 = arith.constant 0 : index
    %c0_96 = arith.constant 0 : index
    %105 = vector.load %arg8[%c3_93, %c1_94, %c0_95, %c0_96] : memref<4x4x128x128xbf16, #tpu.memory_space<vmem>>, vector<1x1x128x128xbf16>
    %106 = vector.shape_cast %105 : vector<1x1x128x128xbf16> to vector<128x128xbf16>
    %cst_97 = arith.constant dense<0.000000e+00> : vector<1x128xf32>
    %107 = tpu.matmul %104, %106, %cst_97 {dimension_numbers = #tpu.dot_dimension_numbers<[1], [0], [0], [1], [0, 0, 1, 1], [], []>} : vector<1x128xbf16>, vector<128x128xbf16>, vector<1x128xf32> -> vector<1x128xf32>
    %108 = arith.addf %103, %107 : vector<1x128xf32>
    %109 = vector.extract_strided_slice %99 {offsets = [2, 0], sizes = [1, 128], strides = [1, 1]} : vector<4x128xbf16> to vector<1x128xbf16>
    %c3_98 = arith.constant 3 : index
    %c2_99 = arith.constant 2 : index
    %c0_100 = arith.constant 0 : index
    %c0_101 = arith.constant 0 : index
    %110 = vector.load %arg8[%c3_98, %c2_99, %c0_100, %c0_101] : memref<4x4x128x128xbf16, #tpu.memory_space<vmem>>, vector<1x1x128x128xbf16>
    %111 = vector.shape_cast %110 : vector<1x1x128x128xbf16> to vector<128x128xbf16>
    %cst_102 = arith.constant dense<0.000000e+00> : vector<1x128xf32>
    %112 = tpu.matmul %109, %111, %cst_102 {dimension_numbers = #tpu.dot_dimension_numbers<[1], [0], [0], [1], [0, 0, 1, 1], [], []>} : vector<1x128xbf16>, vector<128x128xbf16>, vector<1x128xf32> -> vector<1x128xf32>
    %113 = arith.addf %108, %112 : vector<1x128xf32>
    %114 = vector.extract_strided_slice %99 {offsets = [3, 0], sizes = [1, 128], strides = [1, 1]} : vector<4x128xbf16> to vector<1x128xbf16>
    %c3_103 = arith.constant 3 : index
    %c3_104 = arith.constant 3 : index
    %c0_105 = arith.constant 0 : index
    %c0_106 = arith.constant 0 : index
    %115 = vector.load %arg8[%c3_103, %c3_104, %c0_105, %c0_106] : memref<4x4x128x128xbf16, #tpu.memory_space<vmem>>, vector<1x1x128x128xbf16>
    %116 = vector.shape_cast %115 : vector<1x1x128x128xbf16> to vector<128x128xbf16>
    %cst_107 = arith.constant dense<0.000000e+00> : vector<1x128xf32>
    %117 = tpu.matmul %114, %116, %cst_107 {dimension_numbers = #tpu.dot_dimension_numbers<[1], [0], [0], [1], [0, 0, 1, 1], [], []>} : vector<1x128xbf16>, vector<128x128xbf16>, vector<1x128xf32> -> vector<1x128xf32>
    %118 = arith.addf %113, %117 : vector<1x128xf32>
    %c3_108 = arith.constant 3 : index
    %c0_109 = arith.constant 0 : index
    %c0_110 = arith.constant 0 : index
    %119 = vector.load %arg9[%c3_108, %c0_109, %c0_110] : memref<4x1x128xf32, #tpu.memory_space<vmem>>, vector<1x1x128xf32>
    %120 = vector.shape_cast %119 : vector<1x1x128xf32> to vector<1x128xf32>
    %121 = arith.addf %118, %120 : vector<1x128xf32>
    %cst_111 = arith.constant 0.000000e+00 : f32
    %122 = vector.broadcast %cst_111 : f32 to vector<1x128xf32>
    %123 = arith.maximumf %121, %122 : vector<1x128xf32>
    %124 = arith.truncf %123 : vector<1x128xf32> to vector<1x128xbf16>
    %c0_112 = arith.constant 0 : index
    %c0_113 = arith.constant 0 : index
    %c0_114 = arith.constant 0 : index
    %125 = vector.load %arg14[%c0_112, %c0_113, %c0_114] : memref<1x1x128xf32, #tpu.memory_space<vmem>>, vector<1x1x128xf32>
    %126 = vector.shape_cast %125 : vector<1x1x128xf32> to vector<1x128xf32>
    %127 = vector.shape_cast %123 : vector<1x128xf32> to vector<1x1x128xf32>
    tpu.vector_store %arg14[%c0_112, %c0_113, %c0_114], %127 {strides = array<i32>} : memref<1x1x128xf32, #tpu.memory_space<vmem>>, vector<1x1x128xf32>,
    %c0_115 = arith.constant 0 : index
    %c0_116 = arith.constant 0 : index
    %c0_117 = arith.constant 0 : index
    %128 = vector.load %arg11[%c0_115, %c0_116, %c0_117] : memref<4x1x128xf32, #tpu.memory_space<vmem>>, vector<1x1x128xf32>
    %129 = vector.shape_cast %128 : vector<1x1x128xf32> to vector<1x128xf32>
    %c0_118 = arith.constant 0 : index
    %c0_119 = arith.constant 0 : index
    %c0_120 = arith.constant 0 : index
    %c0_121 = arith.constant 0 : index
    %130 = vector.load %arg10[%c0_118, %c0_119, %c0_120, %c0_121] : memref<4x4x128x128xbf16, #tpu.memory_space<vmem>>, vector<1x1x128x128xbf16>
    %131 = vector.shape_cast %130 : vector<1x1x128x128xbf16> to vector<128x128xbf16>
    %cst_122 = arith.constant dense<0.000000e+00> : vector<1x128xf32>
    %132 = tpu.matmul %124, %131, %cst_122 {dimension_numbers = #tpu.dot_dimension_numbers<[1], [0], [0], [1], [0, 0, 1, 1], [], []>} : vector<1x128xbf16>, vector<128x128xbf16>, vector<1x128xf32> -> vector<1x128xf32>
    %133 = arith.addf %132, %129 : vector<1x128xf32>
    %cst_123 = arith.constant 0.000000e+00 : f32
    %134 = vector.broadcast %cst_123 : f32 to vector<1x128xf32>
    %135 = arith.maximumf %133, %134 : vector<1x128xf32>
    %136 = arith.truncf %135 : vector<1x128xf32> to vector<1x128xbf16>
    %c0_124 = arith.constant 0 : index
    %c1_125 = arith.constant 1 : index
    %c0_126 = arith.constant 0 : index
    %c0_127 = arith.constant 0 : index
    %137 = vector.load %arg10[%c0_124, %c1_125, %c0_126, %c0_127] : memref<4x4x128x128xbf16, #tpu.memory_space<vmem>>, vector<1x1x128x128xbf16>
    %138 = vector.shape_cast %137 : vector<1x1x128x128xbf16> to vector<128x128xbf16>
    %cst_128 = arith.constant dense<0.000000e+00> : vector<1x128xf32>
    %139 = tpu.matmul %124, %138, %cst_128 {dimension_numbers = #tpu.dot_dimension_numbers<[1], [0], [0], [1], [0, 0, 1, 1], [], []>} : vector<1x128xbf16>, vector<128x128xbf16>, vector<1x128xf32> -> vector<1x128xf32>
    %140 = arith.addf %139, %129 : vector<1x128xf32>
    %cst_129 = arith.constant 0.000000e+00 : f32
    %141 = vector.broadcast %cst_129 : f32 to vector<1x128xf32>
    %142 = arith.maximumf %140, %141 : vector<1x128xf32>
    %143 = arith.truncf %142 : vector<1x128xf32> to vector<1x128xbf16>
    %c0_130 = arith.constant 0 : index
    %c2_131 = arith.constant 2 : index
    %c0_132 = arith.constant 0 : index
    %c0_133 = arith.constant 0 : index
    %144 = vector.load %arg10[%c0_130, %c2_131, %c0_132, %c0_133] : memref<4x4x128x128xbf16, #tpu.memory_space<vmem>>, vector<1x1x128x128xbf16>
    %145 = vector.shape_cast %144 : vector<1x1x128x128xbf16> to vector<128x128xbf16>
    %cst_134 = arith.constant dense<0.000000e+00> : vector<1x128xf32>
    %146 = tpu.matmul %124, %145, %cst_134 {dimension_numbers = #tpu.dot_dimension_numbers<[1], [0], [0], [1], [0, 0, 1, 1], [], []>} : vector<1x128xbf16>, vector<128x128xbf16>, vector<1x128xf32> -> vector<1x128xf32>
    %147 = arith.addf %146, %129 : vector<1x128xf32>
    %cst_135 = arith.constant 0.000000e+00 : f32
    %148 = vector.broadcast %cst_135 : f32 to vector<1x128xf32>
    %149 = arith.maximumf %147, %148 : vector<1x128xf32>
    %150 = arith.truncf %149 : vector<1x128xf32> to vector<1x128xbf16>
    %c0_136 = arith.constant 0 : index
    %c3_137 = arith.constant 3 : index
    %c0_138 = arith.constant 0 : index
    %c0_139 = arith.constant 0 : index
    %151 = vector.load %arg10[%c0_136, %c3_137, %c0_138, %c0_139] : memref<4x4x128x128xbf16, #tpu.memory_space<vmem>>, vector<1x1x128x128xbf16>
    %152 = vector.shape_cast %151 : vector<1x1x128x128xbf16> to vector<128x128xbf16>
    %cst_140 = arith.constant dense<0.000000e+00> : vector<1x128xf32>
    %153 = tpu.matmul %124, %152, %cst_140 {dimension_numbers = #tpu.dot_dimension_numbers<[1], [0], [0], [1], [0, 0, 1, 1], [], []>} : vector<1x128xbf16>, vector<128x128xbf16>, vector<1x128xf32> -> vector<1x128xf32>
    %154 = arith.addf %153, %129 : vector<1x128xf32>
    %cst_141 = arith.constant 0.000000e+00 : f32
    %155 = vector.broadcast %cst_141 : f32 to vector<1x128xf32>
    %156 = arith.maximumf %154, %155 : vector<1x128xf32>
    %157 = arith.truncf %156 : vector<1x128xf32> to vector<1x128xbf16>
    %158 = tpu.concatenate %136, %143, %150, %157 in 0 : vector<1x128xbf16>, vector<1x128xbf16>, vector<1x128xbf16>, vector<1x128xbf16> -> vector<4x128xbf16>
    %c1_142 = arith.constant 1 : index
    %c0_143 = arith.constant 0 : index
    %c0_144 = arith.constant 0 : index
    %159 = vector.load %arg11[%c1_142, %c0_143, %c0_144] : memref<4x1x128xf32, #tpu.memory_space<vmem>>, vector<1x1x128xf32>
    %160 = vector.shape_cast %159 : vector<1x1x128xf32> to vector<1x128xf32>
    %c1_145 = arith.constant 1 : index
    %c0_146 = arith.constant 0 : index
    %c0_147 = arith.constant 0 : index
    %c0_148 = arith.constant 0 : index
    %161 = vector.load %arg10[%c1_145, %c0_146, %c0_147, %c0_148] : memref<4x4x128x128xbf16, #tpu.memory_space<vmem>>, vector<1x1x128x128xbf16>
    %162 = vector.shape_cast %161 : vector<1x1x128x128xbf16> to vector<128x128xbf16>
    %cst_149 = arith.constant dense<0.000000e+00> : vector<4x128xf32>
    %163 = tpu.matmul %158, %162, %cst_149 {dimension_numbers = #tpu.dot_dimension_numbers<[1], [0], [0], [1], [0, 0, 1, 1], [], []>} : vector<4x128xbf16>, vector<128x128xbf16>, vector<4x128xf32> -> vector<4x128xf32>
    %164 = vector.broadcast %160 : vector<1x128xf32> to vector<4x128xf32>
    %165 = arith.addf %163, %164 : vector<4x128xf32>
    %cst_150 = arith.constant 0.000000e+00 : f32
    %166 = vector.broadcast %cst_150 : f32 to vector<4x128xf32>
    %167 = arith.maximumf %165, %166 : vector<4x128xf32>
    %168 = arith.truncf %167 : vector<4x128xf32> to vector<4x128xbf16>
    %c1_151 = arith.constant 1 : index
    %c1_152 = arith.constant 1 : index
    %c0_153 = arith.constant 0 : index
    %c0_154 = arith.constant 0 : index
    %169 = vector.load %arg10[%c1_151, %c1_152, %c0_153, %c0_154] : memref<4x4x128x128xbf16, #tpu.memory_space<vmem>>, vector<1x1x128x128xbf16>
    %170 = vector.shape_cast %169 : vector<1x1x128x128xbf16> to vector<128x128xbf16>
    %cst_155 = arith.constant dense<0.000000e+00> : vector<4x128xf32>
    %171 = tpu.matmul %158, %170, %cst_155 {dimension_numbers = #tpu.dot_dimension_numbers<[1], [0], [0], [1], [0, 0, 1, 1], [], []>} : vector<4x128xbf16>, vector<128x128xbf16>, vector<4x128xf32> -> vector<4x128xf32>
    %172 = vector.broadcast %160 : vector<1x128xf32> to vector<4x128xf32>
    %173 = arith.addf %171, %172 : vector<4x128xf32>
    %cst_156 = arith.constant 0.000000e+00 : f32
    %174 = vector.broadcast %cst_156 : f32 to vector<4x128xf32>
    %175 = arith.maximumf %173, %174 : vector<4x128xf32>
    %176 = arith.truncf %175 : vector<4x128xf32> to vector<4x128xbf16>
    %c1_157 = arith.constant 1 : index
    %c2_158 = arith.constant 2 : index
    %c0_159 = arith.constant 0 : index
    %c0_160 = arith.constant 0 : index
    %177 = vector.load %arg10[%c1_157, %c2_158, %c0_159, %c0_160] : memref<4x4x128x128xbf16, #tpu.memory_space<vmem>>, vector<1x1x128x128xbf16>
    %178 = vector.shape_cast %177 : vector<1x1x128x128xbf16> to vector<128x128xbf16>
    %cst_161 = arith.constant dense<0.000000e+00> : vector<4x128xf32>
    %179 = tpu.matmul %158, %178, %cst_161 {dimension_numbers = #tpu.dot_dimension_numbers<[1], [0], [0], [1], [0, 0, 1, 1], [], []>} : vector<4x128xbf16>, vector<128x128xbf16>, vector<4x128xf32> -> vector<4x128xf32>
    %180 = vector.broadcast %160 : vector<1x128xf32> to vector<4x128xf32>
    %181 = arith.addf %179, %180 : vector<4x128xf32>
    %cst_162 = arith.constant 0.000000e+00 : f32
    %182 = vector.broadcast %cst_162 : f32 to vector<4x128xf32>
    %183 = arith.maximumf %181, %182 : vector<4x128xf32>
    %184 = arith.truncf %183 : vector<4x128xf32> to vector<4x128xbf16>
    %c1_163 = arith.constant 1 : index
    %c3_164 = arith.constant 3 : index
    %c0_165 = arith.constant 0 : index
    %c0_166 = arith.constant 0 : index
    %185 = vector.load %arg10[%c1_163, %c3_164, %c0_165, %c0_166] : memref<4x4x128x128xbf16, #tpu.memory_space<vmem>>, vector<1x1x128x128xbf16>
    %186 = vector.shape_cast %185 : vector<1x1x128x128xbf16> to vector<128x128xbf16>
    %cst_167 = arith.constant dense<0.000000e+00> : vector<4x128xf32>
    %187 = tpu.matmul %158, %186, %cst_167 {dimension_numbers = #tpu.dot_dimension_numbers<[1], [0], [0], [1], [0, 0, 1, 1], [], []>} : vector<4x128xbf16>, vector<128x128xbf16>, vector<4x128xf32> -> vector<4x128xf32>
    %188 = vector.broadcast %160 : vector<1x128xf32> to vector<4x128xf32>
    %189 = arith.addf %187, %188 : vector<4x128xf32>
    %cst_168 = arith.constant 0.000000e+00 : f32
    %190 = vector.broadcast %cst_168 : f32 to vector<4x128xf32>
    %191 = arith.maximumf %189, %190 : vector<4x128xf32>
    %192 = arith.truncf %191 : vector<4x128xf32> to vector<4x128xbf16>
    %193 = tpu.concatenate %168, %176, %184, %192 in 0 : vector<4x128xbf16>, vector<4x128xbf16>, vector<4x128xbf16>, vector<4x128xbf16> -> vector<16x128xbf16>
    %c2_169 = arith.constant 2 : index
    %c0_170 = arith.constant 0 : index
    %c0_171 = arith.constant 0 : index
    %194 = vector.load %arg11[%c2_169, %c0_170, %c0_171] : memref<4x1x128xf32, #tpu.memory_space<vmem>>, vector<1x1x128xf32>
    %195 = vector.shape_cast %194 : vector<1x1x128xf32> to vector<1x128xf32>
    %c2_172 = arith.constant 2 : index
    %c0_173 = arith.constant 0 : index
    %c0_174 = arith.constant 0 : index
    %c0_175 = arith.constant 0 : index
    %196 = vector.load %arg10[%c2_172, %c0_173, %c0_174, %c0_175] : memref<4x4x128x128xbf16, #tpu.memory_space<vmem>>, vector<1x1x128x128xbf16>
    %197 = vector.shape_cast %196 : vector<1x1x128x128xbf16> to vector<128x128xbf16>
    %cst_176 = arith.constant dense<0.000000e+00> : vector<16x128xf32>
    %198 = tpu.matmul %193, %197, %cst_176 {dimension_numbers = #tpu.dot_dimension_numbers<[1], [0], [0], [1], [0, 0, 1, 1], [], []>} : vector<16x128xbf16>, vector<128x128xbf16>, vector<16x128xf32> -> vector<16x128xf32>
    %199 = vector.broadcast %195 : vector<1x128xf32> to vector<16x128xf32>
    %200 = arith.addf %198, %199 : vector<16x128xf32>
    %cst_177 = arith.constant 0.000000e+00 : f32
    %201 = vector.broadcast %cst_177 : f32 to vector<16x128xf32>
    %202 = arith.maximumf %200, %201 : vector<16x128xf32>
    %203 = arith.truncf %202 : vector<16x128xf32> to vector<16x128xbf16>
    %c2_178 = arith.constant 2 : index
    %c1_179 = arith.constant 1 : index
    %c0_180 = arith.constant 0 : index
    %c0_181 = arith.constant 0 : index
    %204 = vector.load %arg10[%c2_178, %c1_179, %c0_180, %c0_181] : memref<4x4x128x128xbf16, #tpu.memory_space<vmem>>, vector<1x1x128x128xbf16>
    %205 = vector.shape_cast %204 : vector<1x1x128x128xbf16> to vector<128x128xbf16>
    %cst_182 = arith.constant dense<0.000000e+00> : vector<16x128xf32>
    %206 = tpu.matmul %193, %205, %cst_182 {dimension_numbers = #tpu.dot_dimension_numbers<[1], [0], [0], [1], [0, 0, 1, 1], [], []>} : vector<16x128xbf16>, vector<128x128xbf16>, vector<16x128xf32> -> vector<16x128xf32>
    %207 = vector.broadcast %195 : vector<1x128xf32> to vector<16x128xf32>
    %208 = arith.addf %206, %207 : vector<16x128xf32>
    %cst_183 = arith.constant 0.000000e+00 : f32
    %209 = vector.broadcast %cst_183 : f32 to vector<16x128xf32>
    %210 = arith.maximumf %208, %209 : vector<16x128xf32>
    %211 = arith.truncf %210 : vector<16x128xf32> to vector<16x128xbf16>
    %c2_184 = arith.constant 2 : index
    %c2_185 = arith.constant 2 : index
    %c0_186 = arith.constant 0 : index
    %c0_187 = arith.constant 0 : index
    %212 = vector.load %arg10[%c2_184, %c2_185, %c0_186, %c0_187] : memref<4x4x128x128xbf16, #tpu.memory_space<vmem>>, vector<1x1x128x128xbf16>
    %213 = vector.shape_cast %212 : vector<1x1x128x128xbf16> to vector<128x128xbf16>
    %cst_188 = arith.constant dense<0.000000e+00> : vector<16x128xf32>
    %214 = tpu.matmul %193, %213, %cst_188 {dimension_numbers = #tpu.dot_dimension_numbers<[1], [0], [0], [1], [0, 0, 1, 1], [], []>} : vector<16x128xbf16>, vector<128x128xbf16>, vector<16x128xf32> -> vector<16x128xf32>
    %215 = vector.broadcast %195 : vector<1x128xf32> to vector<16x128xf32>
    %216 = arith.addf %214, %215 : vector<16x128xf32>
    %cst_189 = arith.constant 0.000000e+00 : f32
    %217 = vector.broadcast %cst_189 : f32 to vector<16x128xf32>
    %218 = arith.maximumf %216, %217 : vector<16x128xf32>
    %219 = arith.truncf %218 : vector<16x128xf32> to vector<16x128xbf16>
    %c2_190 = arith.constant 2 : index
    %c3_191 = arith.constant 3 : index
    %c0_192 = arith.constant 0 : index
    %c0_193 = arith.constant 0 : index
    %220 = vector.load %arg10[%c2_190, %c3_191, %c0_192, %c0_193] : memref<4x4x128x128xbf16, #tpu.memory_space<vmem>>, vector<1x1x128x128xbf16>
    %221 = vector.shape_cast %220 : vector<1x1x128x128xbf16> to vector<128x128xbf16>
    %cst_194 = arith.constant dense<0.000000e+00> : vector<16x128xf32>
    %222 = tpu.matmul %193, %221, %cst_194 {dimension_numbers = #tpu.dot_dimension_numbers<[1], [0], [0], [1], [0, 0, 1, 1], [], []>} : vector<16x128xbf16>, vector<128x128xbf16>, vector<16x128xf32> -> vector<16x128xf32>
    %223 = vector.broadcast %195 : vector<1x128xf32> to vector<16x128xf32>
    %224 = arith.addf %222, %223 : vector<16x128xf32>
    %cst_195 = arith.constant 0.000000e+00 : f32
    %225 = vector.broadcast %cst_195 : f32 to vector<16x128xf32>
    %226 = arith.maximumf %224, %225 : vector<16x128xf32>
    %227 = arith.truncf %226 : vector<16x128xf32> to vector<16x128xbf16>
    %228 = tpu.concatenate %203, %211, %219, %227 in 0 : vector<16x128xbf16>, vector<16x128xbf16>, vector<16x128xbf16>, vector<16x128xbf16> -> vector<64x128xbf16>
    %c3_196 = arith.constant 3 : index
    %c0_197 = arith.constant 0 : index
    %c0_198 = arith.constant 0 : index
    %229 = vector.load %arg11[%c3_196, %c0_197, %c0_198] : memref<4x1x128xf32, #tpu.memory_space<vmem>>, vector<1x1x128xf32>
    %230 = vector.shape_cast %229 : vector<1x1x128xf32> to vector<1x128xf32>
    %c3_199 = arith.constant 3 : index
    %c0_200 = arith.constant 0 : index
    %c0_201 = arith.constant 0 : index
    %c0_202 = arith.constant 0 : index
    %231 = vector.load %arg10[%c3_199, %c0_200, %c0_201, %c0_202] : memref<4x4x128x128xbf16, #tpu.memory_space<vmem>>, vector<1x1x128x128xbf16>
    %232 = vector.shape_cast %231 : vector<1x1x128x128xbf16> to vector<128x128xbf16>
    %cst_203 = arith.constant dense<0.000000e+00> : vector<64x128xf32>
    %233 = tpu.matmul %228, %232, %cst_203 {dimension_numbers = #tpu.dot_dimension_numbers<[1], [0], [0], [1], [0, 0, 1, 1], [], []>} : vector<64x128xbf16>, vector<128x128xbf16>, vector<64x128xf32> -> vector<64x128xf32>
    %234 = vector.broadcast %230 : vector<1x128xf32> to vector<64x128xf32>
    %235 = arith.addf %233, %234 : vector<64x128xf32>
    %cst_204 = arith.constant 0.000000e+00 : f32
    %236 = vector.broadcast %cst_204 : f32 to vector<64x128xf32>
    %237 = arith.maximumf %235, %236 : vector<64x128xf32>
    %238 = arith.truncf %237 : vector<64x128xf32> to vector<64x128xbf16>
    %c3_205 = arith.constant 3 : index
    %c1_206 = arith.constant 1 : index
    %c0_207 = arith.constant 0 : index
    %c0_208 = arith.constant 0 : index
    %239 = vector.load %arg10[%c3_205, %c1_206, %c0_207, %c0_208] : memref<4x4x128x128xbf16, #tpu.memory_space<vmem>>, vector<1x1x128x128xbf16>
    %240 = vector.shape_cast %239 : vector<1x1x128x128xbf16> to vector<128x128xbf16>
    %cst_209 = arith.constant dense<0.000000e+00> : vector<64x128xf32>
    %241 = tpu.matmul %228, %240, %cst_209 {dimension_numbers = #tpu.dot_dimension_numbers<[1], [0], [0], [1], [0, 0, 1, 1], [], []>} : vector<64x128xbf16>, vector<128x128xbf16>, vector<64x128xf32> -> vector<64x128xf32>
    %242 = vector.broadcast %230 : vector<1x128xf32> to vector<64x128xf32>
    %243 = arith.addf %241, %242 : vector<64x128xf32>
    %cst_210 = arith.constant 0.000000e+00 : f32
    %244 = vector.broadcast %cst_210 : f32 to vector<64x128xf32>
    %245 = arith.maximumf %243, %244 : vector<64x128xf32>
    %246 = arith.truncf %245 : vector<64x128xf32> to vector<64x128xbf16>
    %c3_211 = arith.constant 3 : index
    %c2_212 = arith.constant 2 : index
    %c0_213 = arith.constant 0 : index
    %c0_214 = arith.constant 0 : index
    %247 = vector.load %arg10[%c3_211, %c2_212, %c0_213, %c0_214] : memref<4x4x128x128xbf16, #tpu.memory_space<vmem>>, vector<1x1x128x128xbf16>
    %248 = vector.shape_cast %247 : vector<1x1x128x128xbf16> to vector<128x128xbf16>
    %cst_215 = arith.constant dense<0.000000e+00> : vector<64x128xf32>
    %249 = tpu.matmul %228, %248, %cst_215 {dimension_numbers = #tpu.dot_dimension_numbers<[1], [0], [0], [1], [0, 0, 1, 1], [], []>} : vector<64x128xbf16>, vector<128x128xbf16>, vector<64x128xf32> -> vector<64x128xf32>
    %250 = vector.broadcast %230 : vector<1x128xf32> to vector<64x128xf32>
    %251 = arith.addf %249, %250 : vector<64x128xf32>
    %cst_216 = arith.constant 0.000000e+00 : f32
    %252 = vector.broadcast %cst_216 : f32 to vector<64x128xf32>
    %253 = arith.maximumf %251, %252 : vector<64x128xf32>
    %254 = arith.truncf %253 : vector<64x128xf32> to vector<64x128xbf16>
    %c3_217 = arith.constant 3 : index
    %c3_218 = arith.constant 3 : index
    %c0_219 = arith.constant 0 : index
    %c0_220 = arith.constant 0 : index
    %255 = vector.load %arg10[%c3_217, %c3_218, %c0_219, %c0_220] : memref<4x4x128x128xbf16, #tpu.memory_space<vmem>>, vector<1x1x128x128xbf16>
    %256 = vector.shape_cast %255 : vector<1x1x128x128xbf16> to vector<128x128xbf16>
    %cst_221 = arith.constant dense<0.000000e+00> : vector<64x128xf32>
    %257 = tpu.matmul %228, %256, %cst_221 {dimension_numbers = #tpu.dot_dimension_numbers<[1], [0], [0], [1], [0, 0, 1, 1], [], []>} : vector<64x128xbf16>, vector<128x128xbf16>, vector<64x128xf32> -> vector<64x128xf32>
    %258 = vector.broadcast %230 : vector<1x128xf32> to vector<64x128xf32>
    %259 = arith.addf %257, %258 : vector<64x128xf32>
    %cst_222 = arith.constant 0.000000e+00 : f32
    %260 = vector.broadcast %cst_222 : f32 to vector<64x128xf32>
    %261 = arith.maximumf %259, %260 : vector<64x128xf32>
    %262 = arith.truncf %261 : vector<64x128xf32> to vector<64x128xbf16>
    %263 = tpu.concatenate %238, %246, %254, %262 in 0 : vector<64x128xbf16>, vector<64x128xbf16>, vector<64x128xbf16>, vector<64x128xbf16> -> vector<256x128xbf16>
    %c0_223 = arith.constant 0 : index
    %c0_224 = arith.constant 0 : index
    %264 = vector.load %arg12[%c0_223, %c0_224] : memref<128x128xbf16, #tpu.memory_space<vmem>>, vector<128x128xbf16>
    %cst_225 = arith.constant dense<0.000000e+00> : vector<256x128xf32>
    %265 = tpu.matmul %263, %264, %cst_225 {dimension_numbers = #tpu.dot_dimension_numbers<[1], [0], [0], [1], [0, 0, 1, 1], [], []>} : vector<256x128xbf16>, vector<128x128xbf16>, vector<256x128xf32> -> vector<256x128xf32>
    %c0_226 = arith.constant 0 : index
    %c0_227 = arith.constant 0 : index
    %266 = vector.load %arg13[%c0_226, %c0_227] : memref<1x128xf32, #tpu.memory_space<vmem>>, vector<1x128xf32>
    %267 = vector.broadcast %266 : vector<1x128xf32> to vector<256x128xf32>
    %268 = arith.addf %265, %267 : vector<256x128xf32>
    %cst_228 = arith.constant 0.000000e+00 : f32
    %269 = vector.broadcast %cst_228 : f32 to vector<256x128xf32>
    %270 = arith.maximumf %268, %269 : vector<256x128xf32>
    %271 = arith.truncf %270 : vector<256x128xf32> to vector<256x128xbf16>
    %c0_229 = arith.constant 0 : index
    %c0_230 = arith.constant 0 : index
    %c0_231 = arith.constant 0 : index
    %272 = vector.load %arg15[%c0_229, %c0_230, %c0_231] : memref<1x256x128xbf16, #tpu.memory_space<vmem>>, vector<1x256x128xbf16>
    %273 = vector.shape_cast %272 : vector<1x256x128xbf16> to vector<256x128xbf16>
    %274 = vector.shape_cast %271 : vector<256x128xbf16> to vector<1x256x128xbf16>
    tpu.vector_store %arg15[%c0_229, %c0_230, %c0_231], %274 {strides = array<i32>} : memref<1x256x128xbf16, #tpu.memory_space<vmem>>, vector<1x256x128xbf16>,
    return
  }
  func.func @transform_0(%arg0: i32) -> (i32, i32, i32) {
    %c0_i32 = arith.constant 0 : i32
    %c0_i32_0 = arith.constant 0 : i32
    %c0_i32_1 = arith.constant 0 : i32
    return %arg0, %c0_i32, %c0_i32_0 : i32, i32, i32
  }
  func.func @transform_1(%arg0: i32) -> (i32, i32, i32) {
    %c0_i32 = arith.constant 0 : i32
    %c0_i32_0 = arith.constant 0 : i32
    %c0_i32_1 = arith.constant 0 : i32
    return %arg0, %c0_i32, %c0_i32_0 : i32, i32, i32
  }
  func.func @transform_2(%arg0: i32) -> (i32, i32, i32) {
    %c0_i32 = arith.constant 0 : i32
    %c0_i32_0 = arith.constant 0 : i32
    %c0_i32_1 = arith.constant 0 : i32
    return %arg0, %c0_i32, %c0_i32_0 : i32, i32, i32
  }
  func.func @transform_3(%arg0: i32) -> (i32, i32, i32) {
    %c0_i32 = arith.constant 0 : i32
    %c0_i32_0 = arith.constant 0 : i32
    %c0_i32_1 = arith.constant 0 : i32
    return %arg0, %c0_i32, %c0_i32_0 : i32, i32, i32
  }
  func.func @transform_4(%arg0: i32) -> (i32, i32, i32) {
    %c0_i32 = arith.constant 0 : i32
    %c0_i32_0 = arith.constant 0 : i32
    %c0_i32_1 = arith.constant 0 : i32
    return %arg0, %c0_i32, %c0_i32_0 : i32, i32, i32
  }
  func.func @transform_5(%arg0: i32) -> (i32, i32) {
    %c0_i32 = arith.constant 0 : i32
    %c0_i32_0 = arith.constant 0 : i32
    %c0_i32_1 = arith.constant 0 : i32
    return %c0_i32, %c0_i32_0 : i32, i32
  }
  func.func @transform_6(%arg0: i32) -> (i32, i32) {
    %c0_i32 = arith.constant 0 : i32
    %c0_i32_0 = arith.constant 0 : i32
    %c0_i32_1 = arith.constant 0 : i32
    return %c0_i32, %c0_i32_0 : i32, i32
  }
  func.func @transform_7(%arg0: i32) -> (i32, i32, i32, i32) {
    %c0_i32 = arith.constant 0 : i32
    %c0_i32_0 = arith.constant 0 : i32
    %c0_i32_1 = arith.constant 0 : i32
    %c0_i32_2 = arith.constant 0 : i32
    %c0_i32_3 = arith.constant 0 : i32
    return %c0_i32, %c0_i32_0, %c0_i32_1, %c0_i32_2 : i32, i32, i32, i32
  }
  func.func @transform_8(%arg0: i32) -> (i32, i32, i32) {
    %c0_i32 = arith.constant 0 : i32
    %c0_i32_0 = arith.constant 0 : i32
    %c0_i32_1 = arith.constant 0 : i32
    %c0_i32_2 = arith.constant 0 : i32
    return %c0_i32, %c0_i32_0, %c0_i32_1 : i32, i32, i32
  }
  func.func @transform_9(%arg0: i32) -> (i32, i32, i32, i32) {
    %c0_i32 = arith.constant 0 : i32
    %c0_i32_0 = arith.constant 0 : i32
    %c0_i32_1 = arith.constant 0 : i32
    %c0_i32_2 = arith.constant 0 : i32
    %c0_i32_3 = arith.constant 0 : i32
    return %c0_i32, %c0_i32_0, %c0_i32_1, %c0_i32_2 : i32, i32, i32, i32
  }
  func.func @transform_10(%arg0: i32) -> (i32, i32, i32) {
    %c0_i32 = arith.constant 0 : i32
    %c0_i32_0 = arith.constant 0 : i32
    %c0_i32_1 = arith.constant 0 : i32
    %c0_i32_2 = arith.constant 0 : i32
    return %c0_i32, %c0_i32_0, %c0_i32_1 : i32, i32, i32
  }
  func.func @transform_11(%arg0: i32) -> (i32, i32) {
    %c0_i32 = arith.constant 0 : i32
    %c0_i32_0 = arith.constant 0 : i32
    %c0_i32_1 = arith.constant 0 : i32
    return %c0_i32, %c0_i32_0 : i32, i32
  }
  func.func @transform_12(%arg0: i32) -> (i32, i32) {
    %c0_i32 = arith.constant 0 : i32
    %c0_i32_0 = arith.constant 0 : i32
    %c0_i32_1 = arith.constant 0 : i32
    return %c0_i32, %c0_i32_0 : i32, i32
  }
  func.func @transform_13(%arg0: i32) -> (i32, i32, i32) {
    %c0_i32 = arith.constant 0 : i32
    %c0_i32_0 = arith.constant 0 : i32
    %c0_i32_1 = arith.constant 0 : i32
    return %arg0, %c0_i32, %c0_i32_0 : i32, i32, i32
  }
  func.func @transform_14(%arg0: i32) -> (i32, i32, i32) {
    %c0_i32 = arith.constant 0 : i32
    %c0_i32_0 = arith.constant 0 : i32
    %c0_i32_1 = arith.constant 0 : i32
    return %arg0, %c0_i32, %c0_i32_0 : i32, i32, i32
  }
}

</mosaic_0001>

<bundles_post_ra>
// kernel: caes_forward_eval.1
= control target key start
LH: loop header
LB: loop body
LE: loop exit
PB: predicated region body
PF: predicated region fallthrough
CT: control target
= control target key end

     0   :  { %s8068_s29 = smov 0   ;;  %s9435_s0 = inlined_call_operand.vmem [shape: bf16[2,256,128], index: 0, kind: input, shape index: {}]   ;;  %s9436_s1 = inlined_call_operand.vmem [shape: bf16[2,256,128], index: 1, kind: input, shape index: {}]   ;;  %s9437_s2 = inlined_call_operand.vmem [shape: bf16[2,64,128], index: 2, kind: input, shape index: {}]   ;;  %s9438_s3 = inlined_call_operand.vmem [shape: bf16[2,16,128], index: 3, kind: input, shape index: {}]   ;;  %s9439_s4 = inlined_call_operand.vmem [shape: bf16[2,4,128], index: 4, kind: input, shape index: {}]   ;;  %s9440_s5 = inlined_call_operand.vmem [shape: bf16[128,128], index: 5, kind: input, shape index: {}]   ;;  %s9441_s6 = inlined_call_operand.vmem [shape: f32[1,128], index: 6, kind: input, shape index: {}]   ;;  %s9442_s7 = inlined_call_operand.vmem [shape: bf16[4,4,128,128], index: 7, kind: input, shape index: {}]   ;;  %s9443_s8 = inlined_call_operand.vmem [shape: f32[4,1,128], index: 8, kind: input, shape index: {}]   ;;  %s9444_s9 = inlined_call_operand.vmem [shape: bf16[4,4,128,128], index: 9, kind: input, shape index: {}]   ;;  %s9445_s10 = inlined_call_operand.vmem [shape: f32[4,1,128], index: 10, kind: input, shape index: {}]   ;;  %s9446_s11 = inlined_call_operand.vmem [shape: bf16[128,128], index: 11, kind: input, shape index: {}]   ;;  %s9447_s12 = inlined_call_operand.vmem [shape: f32[1,128], index: 12, kind: input, shape index: {}]   ;;  %s9448_s13 = inlined_call_operand.vmem [shape: f32[2,1,128], index: 13, kind: output, shape index: {0}]   ;;  %s9449_s14 = inlined_call_operand.vmem [shape: bf16[2,256,128], index: 14, kind: output, shape index: {1}]  }
   0x1 LB: > { %s5511_s30 = sadd.s32 4294967295, %s7989_s29   ;;  %p5515_p0 = scmp.ge.s32.totalorder %s7989_s29, 1  ;;  %s7989_s29 = sphi %s8068_s29, %s25_s29  }
   0x2   : > { %p454_p1 = scmp.lt.s32.totalorder %s7989_s29, 3 }
   0x4   : > { %p455_p2 = pnand %p5515_p0, %p454_p1 }
   0x5   : > { %v7674_v0 = vld [vmem:[%s9440_s5] sm:$0xff] (!%p455_p2)   ;;  %p522_p3 = scmp.lt.s32.totalorder (!%p455_p2), %s5511_s30, 1  ;;  %v7675_v1 = vld [vmem:[%s9440_s5 + $0x8] sm:$0xff] (!%p455_p2)   ;;  %v7676_v2 = vld [vmem:[%s9440_s5 + $0x10] sm:$0xff] (!%p455_p2)   ;;  %v7991_v59 = vmov (!%p455_p2), 0.0   ;;  %vm7992_vm0 = vmmov (!%p455_p2), 0  }
   0x6   : > { %458 = sbr.rel (%p455_p2) target bundleno = 2654 (0xa5e), region = 72  ;;  %6856 = vmatprep.subr.bf16.mxu0 (!%p455_p2), %v7674_v0  ;;  %7624 = vmatprep.subr.bf16.mxu1 (!%p455_p2), %v7674_v0  ;;  %v7677_v3 = vld [vmem:[%s9440_s5 + $0x18] sm:$0xff] (!%p455_p2)   ;;  %v7678_v5 = vld [vmem:[%s9440_s5 + $0x20] sm:$0xff] (!%p455_p2)   ;;  %v7679_v6 = vld [vmem:[%s9440_s5 + $0x28] sm:$0xff] (!%p455_p2)   ;;  %vm3473_vm1 = vcmask (!%p455_p2), 1040384   ;;  %vm3482_vm4 = vcmask (!%p455_p2), 1041408  }
   0x7   : > { %6857 = vmatpush3.bf16.msra.mxu0 (!%p455_p2), %v7674_v0  ;;  %7632 = vmatpush3.bf16.msra.mxu1 (!%p455_p2), %v7674_v0  ;;  %v7680_v8 = vld [vmem:[%s9440_s5 + $0x30] sm:$0xff] (!%p455_p2)   ;;  %v7681_v9 = vld [vmem:[%s9440_s5 + $0x38] sm:$0xff] (!%p455_p2)   ;;  %v7698_v10 = vld [vmem:[%s9442_s7 + $0x40] sm:$0xff] (!%p455_p2)   ;;  %vm3474_vm2 = vsmask.f32 (!%p455_p2), 256  ;;  %vm3932_vm7 = vcmask (!%p455_p2), 1043456  }
   0x8   : > { %6858 = vmatprep.subr.bf16.mxu0 (!%p455_p2), %v7675_v1  ;;  %7625 = vmatprep.subr.bf16.mxu1 (!%p455_p2), %v7675_v1  ;;  %v7699_v25 = vld [vmem:[%s9442_s7 + $0x48] sm:$0xff] (!%p455_p2)   ;;  %v7701_v26 = vld [vmem:[%s9442_s7 + $0x50] sm:$0xff] (!%p455_p2)   ;;  %v7702_v27 = vld [vmem:[%s9442_s7 + $0x58] sm:$0xff] (!%p455_p2)   ;;  %vm3483_vm5 = vsmask.f32 (!%p455_p2), 1280  ;;  %vm3935_vm8 = vcmask (!%p455_p2), 1045504  }
   0x9   : > { %v7703_v28 = vld [vmem:[%s9442_s7 + $0x60] sm:$0xff] (!%p455_p2)   ;;  %v7704_v29 = vld [vmem:[%s9442_s7 + $0x68] sm:$0xff] (!%p455_p2)   ;;  %v7706_v30 = vld [vmem:[%s9442_s7 + $0x70] sm:$0xff] (!%p455_p2)  }
   0xa   : > { %v7707_v31 = vld [vmem:[%s9442_s7 + $0x78] sm:$0xff] (!%p455_p2)   ;;  %v8160_v32 = vld [vmem:[%s9442_s7] sm:$0xff] (!%p455_p2)   ;;  %v7747_v62 = vld [vmem:[%s9442_s7 + $0x148] sm:$0xff] (!%p455_p2)  }
   0xb   : > { %6859 = vmatpush3.bf16.msra.mxu0 (!%p455_p2), %v7675_v1  ;;  %7633 = vmatpush3.bf16.msra.mxu1 (!%p455_p2), %v7675_v1  ;;  %v8166_v33 = vld [vmem:[%s9441_s6] ss:$0 sm:$0xff] (!%p455_p2)  ;;  %vm3475_vm3 = vmand (!%p455_p2), %vm3473_vm1, %vm3474_vm2 }
   0xc   : > { %6860 = vmatprep.subr.bf16.mxu0 (!%p455_p2), %v7676_v2  ;;  %7626 = vmatprep.subr.bf16.mxu1 (!%p455_p2), %v7676_v2  ;;  %v7746_v55 = vld [vmem:[%s9442_s7 + $0x140] sm:$0xff] (!%p455_p2)   ;;  %vm3484_vm6 = vmand (!%p455_p2), %vm3482_vm4, %vm3483_vm5 }
   0xd   : > { %s9451_s30 = smov (!%p522_p3, %s5511_s30), 1 }
   0xe   : > { %s8088_s21 = sshll.u32 %s9451_s30, 7  ;;  %s6366_s17 = sshll.u32 %s9451_s30, 5 }
   0xf   : > { %s8094_s24 = scalar_lea.vmem %s9435_s0, %s8088_s21  ;;  %6861 = vmatpush3.bf16.msra.mxu0 %v7676_v2  ;;  %7634 = vmatpush3.bf16.msra.mxu1 %v7676_v2  ;;  %s8117_s25 = scalar_lea.vmem %s9436_s1, %s8088_s21 }
  0x10   : > { %v7682_v4 = vld [vmem:[%s8094_s24] sm:$0xff]   ;;  %6862 = vmatprep.subr.bf16.mxu0 %v7677_v3  ;;  %7627 = vmatprep.subr.bf16.mxu1 %v7677_v3  ;;  %v7683_v11 = vld [vmem:[%s8094_s24 + $0x8] sm:$0xff]   ;;  %v7684_v13 = vld [vmem:[%s8094_s24 + $0x10] sm:$0xff]   ;;  %s6367_s15 = sshll.u32 %s9451_s30, 3  ;;  %s5524_s26 = sshll.u32 %s9451_s30, 1 }
  0x11   : > { %6872 = vmatprep.mubr.bf16.mxu0 %v7682_v4  ;;  %v7690_v7 = vld [vmem:[%s8094_s24 + $0x40] sm:$0xff]   ;;  %v7691_v12 = vld [vmem:[%s8094_s24 + $0x48] sm:$0xff]   ;;  %v7692_v14 = vld [vmem:[%s8094_s24 + $0x50] sm:$0xff]   ;;  %s8540_s18 = scalar_lea.vmem %s9438_s3, %s6367_s15  ;;  %s545_s28 = scalar_lea.vmem %s9439_s4, %s5524_s26 }
  0x12   : > { %6888 = vmatprep.mubr.bf16.mxu1 %v7690_v7  ;;  %v7685_v15 = vld [vmem:[%s8094_s24 + $0x18] sm:$0xff]   ;;  %v7686_v17 = vld [vmem:[%s8094_s24 + $0x20] sm:$0xff]   ;;  %v7687_v19 = vld [vmem:[%s8094_s24 + $0x28] sm:$0xff]   ;;  %s9386_s19 = scalar_lea.vmem %s9449_s14, %s8088_s21 }
  0x13   : > { %6863 = vmatpush3.bf16.msra.mxu0 %v7677_v3  ;;  %7635 = vmatpush3.bf16.msra.mxu1 %v7677_v3  ;;  %v7693_v16 = vld [vmem:[%s8094_s24 + $0x58] sm:$0xff]   ;;  %v7694_v18 = vld [vmem:[%s8094_s24 + $0x60] sm:$0xff]   ;;  %v7695_v20 = vld [vmem:[%s8094_s24 + $0x68] sm:$0xff]  }
  0x14   : > { %6864 = vmatprep.subr.bf16.mxu0 %v7678_v5  ;;  %7628 = vmatprep.subr.bf16.mxu1 %v7678_v5  ;;  %v7688_v21 = vld [vmem:[%s8094_s24 + $0x30] sm:$0xff]   ;;  %v7689_v23 = vld [vmem:[%s8094_s24 + $0x38] sm:$0xff]  }
  0x15   : > { %v7696_v22 = vld [vmem:[%s8094_s24 + $0x70] sm:$0xff]   ;;  %v7697_v24 = vld [vmem:[%s8094_s24 + $0x78] sm:$0xff]   ;;  %s8375_s24 = scalar_lea.vmem %s9437_s2, %s6366_s17 }
  0x17   : > { %6865 = vmatpush3.bf16.msra.mxu0 %v7678_v5  ;;  %7636 = vmatpush3.bf16.msra.mxu1 %v7678_v5 }
  0x18   : > { %6866 = vmatprep.subr.bf16.mxu0 %v7679_v6  ;;  %7629 = vmatprep.subr.bf16.mxu1 %v7679_v6 }
  0x1b   : > { %6867 = vmatpush3.bf16.msra.mxu0 %v7679_v6  ;;  %7637 = vmatpush3.bf16.msra.mxu1 %v7679_v6 }
  0x1c   : > { %6868 = vmatprep.subr.bf16.mxu0 %v7680_v8  ;;  %7630 = vmatprep.subr.bf16.mxu1 %v7680_v8 }
  0x1f   : > { %6869 = vmatpush3.bf16.msra.mxu0 %v7680_v8  ;;  %7638 = vmatpush3.bf16.msra.mxu1 %v7680_v8 }
  0x20   : > { %6870 = vmatprep.subr.bf16.mxu0 %v7681_v9  ;;  %7631 = vmatprep.subr.bf16.mxu1 %v7681_v9 }
  0x23   : > { %6871 = vmatpush3.bf16.msra.mxu0 %v7681_v9  ;;  %7639 = vmatpush3.bf16.msra.mxu1 %v7681_v9 }
  0x24   : > { %6904 = vmatprep.subr.bf16.mxu1 %v7698_v10  ;;  %7000 = vmatprep.subr.bf16.mxu0 %v7991_v59 }
  0x26   : > { %6873 = vmatmul.mubr.bf16.vlgmr.msra.gmra.mrb[0].mxu0 %v7683_v11  ;;  %6889 = vmatmul.mubr.bf16.vlgmr.msra.gmra.mrb[0].mxu1 %v7691_v12 }
  0x27   : > { %6876 = vmatprep.mubr.bf16.mxu0 %v7684_v13  ;;  %6892 = vmatprep.mubr.bf16.mxu1 %v7692_v14 }
  0x28   : > { %6905 = vmatpush3.bf16.msra.mxu1 %v7698_v10  ;;  %7001 = vmatpush3.bf16.msra.mxu0 %v7746_v55 }
  0x29   : > { %6906 = vmatprep.subr.bf16.mxu1 %v7699_v25  ;;  %7002 = vmatprep.subr.bf16.mxu0 %v7991_v59 }
  0x2c   : > { %6907 = vmatpush3.bf16.msra.mxu1 %v7699_v25  ;;  %7003 = vmatpush3.bf16.msra.mxu0 %v7747_v62 }
  0x2d   : > { %6908 = vmatprep.subr.bf16.mxu1 %v7701_v26  ;;  %7004 = vmatprep.subr.bf16.mxu0 %v7991_v59 }
  0x2e   : > { %6877 = vmatmul.mubr.bf16.gmra.mrb[4].mxu0 %v7685_v15  ;;  %6893 = vmatmul.mubr.bf16.gmra.mrb[4].mxu1 %v7693_v16  ;;  %v7748_v16 = vld [vmem:[%s9442_s7 + $0x150] sm:$0xff]  }
  0x2f   : > { %6880 = vmatprep.mubr.bf16.mxu0 %v7686_v17  ;;  %6896 = vmatprep.mubr.bf16.mxu1 %v7694_v18 }
  0x30   : > { %6909 = vmatpush3.bf16.msra.mxu1 %v7701_v26  ;;  %7005 = vmatpush3.bf16.msra.mxu0 %v7748_v16 }
  0x31   : > { %6910 = vmatprep.subr.bf16.mxu1 %v7702_v27  ;;  %7006 = vmatprep.subr.bf16.mxu0 %v7991_v59 }
  0x34   : > { %6911 = vmatpush3.bf16.msra.mxu1 %v7702_v27 }
  0x35   : > { %6912 = vmatprep.subr.bf16.mxu1 %v7703_v28 }
  0x36   : > { %6881 = vmatmul.mubr.bf16.gmra.mrb[8].mxu0 %v7687_v19  ;;  %6897 = vmatmul.mubr.bf16.gmra.mrb[8].mxu1 %v7695_v20 }
  0x37   : > { %6884 = vmatprep.mubr.bf16.mxu0 %v7688_v21  ;;  %6900 = vmatprep.mubr.bf16.mxu1 %v7696_v22 }
  0x38   : > { %6913 = vmatpush3.bf16.msra.mxu1 %v7703_v28  ;;  %v7750_v28 = vld [vmem:[%s9442_s7 + $0x158] sm:$0xff]  }
  0x39   : > { %6914 = vmatprep.subr.bf16.mxu1 %v7704_v29  ;;  %7007 = vmatpush3.bf16.msra.mxu0 %v7750_v28 }
  0x3a   : > { %7008 = vmatprep.subr.bf16.mxu0 %v7991_v59 }
  0x3c   : > { %6915 = vmatpush3.bf16.msra.mxu1 %v7704_v29 }
  0x3d   : > { %6916 = vmatprep.subr.bf16.mxu1 %v7706_v30 }
  0x3e   : > { %6885 = vmatmul.mubr.bf16.gmra.mrb[12].mxu0 %v7689_v23  ;;  %6901 = vmatmul.mubr.bf16.gmra.mrb[12].mxu1 %v7697_v24 }
  0x3f   : > { %7016 = vmatprep.mubr.msk.bf16.mxu0 %vm7992_vm0, %v7991_v59 }
  0x40   : > { %6917 = vmatpush3.bf16.msra.mxu1 %v7706_v30 }
  0x41   : > { %6918 = vmatprep.subr.bf16.mxu1 %v7707_v31 }
  0x44   : > { %6919 = vmatpush3.bf16.msra.mxu1 %v7707_v31 }
  0x45   : > { %6928 = vmatprep.subr.bf16.mxu1 %v8160_v32 }
  0xf9   : > { %v6874_v34 = vpop.f32.mrb[0].mxu0  ;;  %v6890_v35 = vpop.f32.mrb[0].mxu1 }
  0xfa   : > { %v797_v36 = vadd.f32 %v6874_v34, %v8166_v33  ;;  %v788_v37 = vpop.f32.mrb[1].mxu0  ;;  %v861_v38 = vadd.f32 %v6890_v35, %v8166_v33  ;;  %v852_v39 = vpop.f32.mrb[1].mxu1 }
  0xfb   : > { %v789_v40 = vadd.f32 %v8166_v33, %v788_v37  ;;  %v6875_v41 = vpop.f32.mrb[2].mxu0  ;;  %v853_v42 = vadd.f32 %v8166_v33, %v852_v39  ;;  %v6891_v43 = vpop.f32.mrb[2].mxu1 }
  0xfc   : > { %v800_v44 = vadd.f32 %v6875_v41, %v8166_v33  ;;  %v791_v45 = vpop.f32.mrb[3].mxu0  ;;  %v933_v46 = vmax.f32 %v861_v38, 0.0  ;;  %v864_v47 = vadd.f32 %v6891_v43, %v8166_v33  ;;  %v855_v48 = vpop.f32.mrb[3].mxu1  ;;  %v917_v52 = vmax.f32 %v797_v36, 0.0 }
  0xfd   : > { %v792_v49 = vadd.f32 %v8166_v33, %v791_v45  ;;  %v931_v50 = vmax.f32 %v853_v42, 0.0  ;;  %v856_v51 = vadd.f32 %v8166_v33, %v855_v48  ;;  %v915_v56 = vmax.f32 %v789_v40, 0.0  ;;  %v7752_v48 = vld [vmem:[%s9442_s7 + $0x160] sm:$0xff]  }
  0xfe   : > { %v918_v53 = vmax.f32 %v800_v44, 0.0  ;;  %v934_v54 = vmax.f32 %v864_v47, 0.0  ;;  %7009 = vmatpush3.bf16.msra.mxu0 %v7752_v48 }
  0xff   : > { %v916_v57 = vmax.f32 %v792_v49, 0.0  ;;  %v932_v58 = vmax.f32 %v856_v51, 0.0  ;;  %7010 = vmatprep.subr.bf16.mxu0 %v7991_v59 }
 0x100   : > { %v8180_v60 = vpack.c.bf16 %v918_v53, %v917_v52  ;;  %v8182_v61 = vpack.c.bf16 %v934_v54, %v933_v46 }
 0x101   : > { %v8187_v63 = vpack.c.bf16 %v916_v57, %v915_v56  ;;  %v6878_v0 = vpop.f32.mrb[4].mxu0  ;;  %v8189_v1 = vpack.c.bf16 %v932_v58, %v931_v50  ;;  %v6894_v2 = vpop.f32.mrb[4].mxu1  ;;  %v7705_v56 = vld [vmem:[%s8117_s25 + $0x28] sm:$0xff]   ;;  %v7708_v58 = vld [vmem:[%s8117_s25 + $0x20] sm:$0xff]  }
 0x102   : > { %v813_v3 = vadd.f32 %v6878_v0, %v8166_v33  ;;  %v804_v4 = vpop.f32.mrb[5].mxu0  ;;  %v877_v5 = vadd.f32 %v6894_v2, %v8166_v33  ;;  %v868_v6 = vpop.f32.mrb[5].mxu1 }
 0x103   : > { %v805_v7 = vadd.f32 %v8166_v33, %v804_v4  ;;  %v6879_v8 = vpop.f32.mrb[6].mxu0  ;;  %v869_v9 = vadd.f32 %v8166_v33, %v868_v6  ;;  %v6895_v10 = vpop.f32.mrb[6].mxu1 }
 0x104   : > { %v816_v11 = vadd.f32 %v6879_v8, %v8166_v33  ;;  %v807_v12 = vpop.f32.mrb[7].mxu0  ;;  %v937_v13 = vmax.f32 %v877_v5, 0.0  ;;  %v880_v14 = vadd.f32 %v6895_v10, %v8166_v33  ;;  %v871_v15 = vpop.f32.mrb[7].mxu1  ;;  %v921_v20 = vmax.f32 %v813_v3, 0.0  ;;  %v7754_v3 = vld [vmem:[%s9442_s7 + $0x168] sm:$0xff]  }
 0x105   : > { %v808_v17 = vadd.f32 %v8166_v33, %v807_v12  ;;  %v935_v18 = vmax.f32 %v869_v9, 0.0  ;;  %v872_v19 = vadd.f32 %v8166_v33, %v871_v15  ;;  %v919_v23 = vmax.f32 %v805_v7, 0.0  ;;  %7011 = vmatpush3.bf16.msra.mxu0 %v7754_v3 }
 0x106   : > { %v922_v21 = vmax.f32 %v816_v11, 0.0  ;;  %v938_v22 = vmax.f32 %v880_v14, 0.0  ;;  %7012 = vmatprep.subr.bf16.mxu0 %v7991_v59 }
 0x107   : > { %v920_v24 = vmax.f32 %v808_v17, 0.0  ;;  %v936_v25 = vmax.f32 %v872_v19, 0.0 }
 0x108   : > { %v8204_v26 = vpack.c.bf16 %v922_v21, %v921_v20  ;;  %v8206_v27 = vpack.c.bf16 %v938_v22, %v937_v13  ;;  %v7710_v21 = vld [vmem:[%s9442_s7 + $0x8] sm:$0xff]  }
 0x109   : > { %v8211_v29 = vpack.c.bf16 %v920_v24, %v919_v23  ;;  %v6882_v30 = vpop.f32.mrb[8].mxu0  ;;  %v8213_v31 = vpack.c.bf16 %v936_v25, %v935_v18  ;;  %v6898_v34 = vpop.f32.mrb[8].mxu1 }
 0x10a   : > { %v829_v35 = vadd.f32 %v6882_v30, %v8166_v33  ;;  %v820_v36 = vpop.f32.mrb[9].mxu0  ;;  %v893_v37 = vadd.f32 %v6898_v34, %v8166_v33  ;;  %v884_v38 = vpop.f32.mrb[9].mxu1 }
 0x10b   : > { %v821_v39 = vadd.f32 %v8166_v33, %v820_v36  ;;  %v6883_v40 = vpop.f32.mrb[10].mxu0  ;;  %v885_v41 = vadd.f32 %v8166_v33, %v884_v38  ;;  %v6899_v42 = vpop.f32.mrb[10].mxu1  ;;  %v7713_v36 = vld [vmem:[%s8117_s25 + $0x38] sm:$0xff]  }
 0x10c   : > { %v832_v43 = vadd.f32 %v6883_v40, %v8166_v33  ;;  %v823_v44 = vpop.f32.mrb[11].mxu0  ;;  %v941_v45 = vmax.f32 %v893_v37, 0.0  ;;  %v896_v46 = vadd.f32 %v6899_v42, %v8166_v33  ;;  %v887_v47 = vpop.f32.mrb[11].mxu1  ;;  %v925_v52 = vmax.f32 %v829_v35, 0.0  ;;  %v7712_v42 = vld [vmem:[%s9442_s7 + $0x10] sm:$0xff]  }
 0x10d   : > { %v824_v49 = vadd.f32 %v8166_v33, %v823_v44  ;;  %v939_v50 = vmax.f32 %v885_v41, 0.0  ;;  %v888_v51 = vadd.f32 %v8166_v33, %v887_v47  ;;  %v923_v55 = vmax.f32 %v821_v39, 0.0  ;;  %v7711_v39 = vld [vmem:[%s8117_s25 + $0x30] sm:$0xff]   ;;  %v7714_v44 = vld [vmem:[%s8117_s25] sm:$0xff]  }
 0x10e   : > { %v926_v53 = vmax.f32 %v832_v43, 0.0  ;;  %v942_v54 = vmax.f32 %v896_v46, 0.0  ;;  %v1091_v48 = vmul.bf16 %v7714_v44, %v8187_v63  ;;  %v7718_v63 = vld [vmem:[%s9442_s7 + $0x30] sm:$0xff]  }
 0x10f   : > { %v924_v57 = vmax.f32 %v824_v49, 0.0  ;;  %v940_v62 = vmax.f32 %v888_v51, 0.0  ;;  %v7716_v49 = vld [vmem:[%s9442_s7 + $0x20] sm:$0xff]   ;;  %v7719_v51 = vld [vmem:[%s9442_s7 + $0x38] sm:$0xff]  }
 0x110   : > { %v952_v0 = vpack.c.bf16 %v926_v53, %v925_v52  ;;  %v8230_v2 = vpack.c.bf16 %v942_v54, %v941_v45  ;;  %v7700_v52 = vld [vmem:[%s8117_s25 + $0x8] sm:$0xff]   ;;  %v7720_v53 = vld [vmem:[%s9442_s7 + $0x80] sm:$0xff]   ;;  %v7721_v54 = vld [vmem:[%s8117_s25 + $0x10] sm:$0xff]  }
 0x111   : > { %v951_v4 = vpack.c.bf16 %v924_v57, %v923_v55  ;;  %v6886_v5 = vpop.f32.mrb[12].mxu0  ;;  %v8235_v6 = vpack.c.bf16 %v940_v62, %v939_v50  ;;  %v6902_v7 = vpop.f32.mrb[12].mxu1  ;;  %v7717_v50 = vld [vmem:[%s9442_s7 + $0x28] sm:$0xff]   ;;  %v1092_v55 = vmul.bf16 %v7700_v52, %v8180_v60  ;;  %v1093_v57 = vmul.bf16 %v7721_v54, %v8211_v29  ;;  %v7723_v62 = vld [vmem:[%s8117_s25 + $0x18] sm:$0xff]  }
 0x112   : > { %v845_v8 = vadd.f32 %v6886_v5, %v8166_v33  ;;  %v836_v9 = vpop.f32.mrb[13].mxu0  ;;  %v909_v10 = vadd.f32 %v6902_v7, %v8166_v33  ;;  %v900_v11 = vpop.f32.mrb[13].mxu1  ;;  %v1096_v12 = vmul.bf16 %v7705_v56, %v952_v0  ;;  %v7722_v56 = vld [vmem:[%s9442_s7 + $0x88] sm:$0xff]   ;;  %v7724_v0 = vld [vmem:[%s9442_s7 + $0x90] sm:$0xff]   ;;  %v1094_v3 = vmul.bf16 %v7723_v62, %v8204_v26  ;;  %v7725_v29 = vld [vmem:[%s9442_s7 + $0x98] sm:$0xff]  }
 0x113   : > { %v837_v13 = vadd.f32 %v8166_v33, %v836_v9  ;;  %v6887_v14 = vpop.f32.mrb[14].mxu0  ;;  %v1095_v15 = vmul.bf16 %v7708_v58, %v951_v4  ;;  %v901_v16 = vadd.f32 %v8166_v33, %v900_v11  ;;  %v6903_v17 = vpop.f32.mrb[14].mxu1  ;;  %v7731_v58 = vld [vmem:[%s8117_s25 + $0x40] sm:$0xff]   ;;  %v7729_v26 = vld [vmem:[%s9442_s7 + $0xb0] sm:$0xff]   ;;  %v7730_v5 = vld [vmem:[%s9442_s7 + $0xb8] sm:$0xff]  }
 0x114   : > { %v929_v18 = vmax.f32 %v845_v8, 0.0  ;;  %v848_v19 = vadd.f32 %v6887_v14, %v8166_v33  ;;  %v839_v20 = vpop.f32.mrb[15].mxu0  ;;  %v945_v22 = vmax.f32 %v909_v10, 0.0  ;;  %v912_v23 = vadd.f32 %v6903_v17, %v8166_v33  ;;  %v903_v24 = vpop.f32.mrb[15].mxu1  ;;  %v7726_v4 = vld [vmem:[%s9442_s7 + $0xa0] sm:$0xff]   ;;  %v7738_v7 = vld [vmem:[%s8117_s25 + $0x50] sm:$0xff]  }
 0x115   : > { %v927_v25 = vmax.f32 %v837_v13, 0.0  ;;  %v840_v28 = vadd.f32 %v8166_v33, %v839_v20  ;;  %6920 = vmatprep.mubr.bf16.mxu1 %v1095_v15  ;;  %v943_v30 = vmax.f32 %v901_v16, 0.0  ;;  %v904_v34 = vadd.f32 %v8166_v33, %v903_v24  ;;  %v7727_v8 = vld [vmem:[%s8117_s25 + $0x48] sm:$0xff]   ;;  %v7732_v9 = vld [vmem:[%s9442_s7 + $0xc0] sm:$0xff]   ;;  %v7739_v13 = vld [vmem:[%s8117_s25 + $0x58] sm:$0xff]  }
 0x116   : > { %v930_v35 = vmax.f32 %v848_v19, 0.0  ;;  %6921 = vmatmul.mubr.bf16.vlgmr.msra.gmra.mrb[16].mxu1 %v1096_v12  ;;  %v946_v37 = vmax.f32 %v912_v23, 0.0  ;;  %v1099_v60 = vmul.bf16 %v7731_v58, %v8189_v1  ;;  %v7728_v1 = vld [vmem:[%s9442_s7 + $0xa8] sm:$0xff]   ;;  %v1101_v10 = vmul.bf16 %v7738_v7, %v8213_v31  ;;  %v7743_v14 = vld [vmem:[%s8117_s25 + $0x60] sm:$0xff]   ;;  %v7734_v15 = vld [vmem:[%s9442_s7 + $0xd0] sm:$0xff]  }
 0x117   : > { %v928_v38 = vmax.f32 %v840_v28, 0.0  ;;  %6929 = vmatpush3.bf16.msra.mxu1 %v8160_v32  ;;  %v944_v40 = vmax.f32 %v904_v34, 0.0  ;;  %v7715_v32 = vld [vmem:[%s9442_s7 + $0x18] sm:$0xff]   ;;  %v1100_v11 = vmul.bf16 %v7727_v8, %v8182_v61  ;;  %v7733_v12 = vld [vmem:[%s9442_s7 + $0xc8] sm:$0xff]   ;;  %v1102_v16 = vmul.bf16 %v7739_v13, %v8206_v27  ;;  %v7736_v17 = vld [vmem:[%s9442_s7 + $0xe0] sm:$0xff]  }
 0x118   : > { %v954_v41 = vpack.c.bf16 %v930_v35, %v929_v18  ;;  %6930 = vmatprep.subr.bf16.mxu1 %v7710_v21  ;;  %v8256_v43 = vpack.c.bf16 %v946_v37, %v945_v22  ;;  %v1103_v61 = vmul.bf16 %v7743_v14, %v8235_v6  ;;  %v7735_v31 = vld [vmem:[%s9442_s7 + $0xd8] sm:$0xff]   ;;  %v7740_v27 = vld [vmem:[%s9442_s7 + $0xe8] sm:$0xff]   ;;  %v7741_v6 = vld [vmem:[%s9442_s7 + $0xf0] sm:$0xff]  }
 0x119   : > { %v953_v33 = vpack.c.bf16 %v928_v38, %v927_v25  ;;  %v8259_v45 = vpack.c.bf16 %v944_v40, %v943_v30  ;;  %v7742_v18 = vld [vmem:[%s9442_s7 + $0xf8] sm:$0xff]   ;;  %v7744_v19 = vld [vmem:[%s8117_s25 + $0x70] sm:$0xff]   ;;  %v7737_v20 = vld [vmem:[%s8117_s25 + $0x68] sm:$0xff]  }
 0x11a   : > { %v1098_v46 = vmul.bf16 %v7713_v36, %v954_v41  ;;  %v7749_v22 = vld [vmem:[%s9442_s7 + $0x1c0] sm:$0xff]   ;;  %v1104_v23 = vmul.bf16 %v7737_v20, %v8230_v2  ;;  %v7745_v24 = vld [vmem:[%s8117_s25 + $0x78] sm:$0xff]   ;;  %v7751_v25 = vld [vmem:[%s9442_s7 + $0x1c8] sm:$0xff]  }
 0x11b   : > { %6931 = vmatpush3.bf16.msra.mxu1 %v7710_v21  ;;  %v1097_v47 = vmul.bf16 %v7711_v39, %v953_v33  ;;  %v1105_v21 = vmul.bf16 %v7744_v19, %v8259_v45  ;;  %v1106_v28 = vmul.bf16 %v7745_v24, %v8256_v43  ;;  %v7753_v2 = vld [vmem:[%s9442_s7 + $0x1d0] sm:$0xff]   ;;  %v7755_v30 = vld [vmem:[%s9442_s7 + $0x1d8] sm:$0xff]   ;;  %v7759_v35 = vld [vmem:[%s9442_s7 + $0x1e0] sm:$0xff]  }
 0x11c   : > { %6932 = vmatprep.subr.bf16.mxu1 %v7712_v42  ;;  %v7758_v34 = vld [vmem:[%s9442_s7 + $0x170] sm:$0xff]   ;;  %v7760_v36 = vld [vmem:[%s9442_s7 + $0x178] sm:$0xff]   ;;  %v7761_v37 = vld [vmem:[%s9442_s7 + $0x1e8] sm:$0xff]  }
 0x11d   : > { %6924 = vmatprep.mubr.bf16.mxu1 %v1097_v47  ;;  %7013 = vmatpush3.bf16.msra.mxu0 %v7758_v34  ;;  %v7765_v38 = vld [vmem:[%s9442_s7 + $0x1f0] sm:$0xff]   ;;  %v7767_v39 = vld [vmem:[%s9442_s7 + $0x1f8] sm:$0xff]   ;;  %v5648_v40 = vld [vmem:[%s9443_s8] ss:$0 sm:$0xff] }
 0x11e   : > { %6925 = vmatmul.mubr.bf16.gmra.mrb[20].mxu1 %v1098_v46  ;;  %7014 = vmatprep.subr.bf16.mxu0 %v7991_v59  ;;  %v7762_v7 = vld [vmem:[%s8375_s24 + $0x18] sm:$0xff]   ;;  %v7768_v13 = vld [vmem:[%s9442_s7 + $0x110] sm:$0xff]  }
 0x11f   : > { %6933 = vmatpush3.bf16.msra.mxu1 %v7712_v42  ;;  %6944 = vmatprep.mubr.bf16.mxu1 %v1091_v48  ;;  %v7776_v19 = vld [vmem:[%s9442_s7 + $0x190] sm:$0xff]   ;;  %v7777_v20 = vld [vmem:[%s9442_s7 + $0x198] sm:$0xff]  }
 0x120   : > { %6934 = vmatprep.subr.bf16.mxu1 %v7715_v32  ;;  %v7781_v24 = vld [vmem:[%s9442_s7 + $0x1b8] sm:$0xff]   ;;  %v7786_v34 = vld [vmem:[%s9442_s7 + $0x210] sm:$0xff]  }
 0x121   : > { %7015 = vmatpush3.bf16.msra.mxu0 %v7760_v36  ;;  %v7788_v36 = vld [vmem:[%s9442_s7 + $0x218] sm:$0xff]  }
 0x122   : > { %7020 = vmatprep.subr.bf16.mxu0 %v7991_v59 }
 0x123   : > { %6935 = vmatpush3.bf16.msra.mxu1 %v7715_v32 }
 0x124   : > { %6936 = vmatprep.subr.bf16.mxu1 %v7716_v49 }
 0x127   : > { %6937 = vmatpush3.bf16.msra.mxu1 %v7716_v49  ;;  %v7756_v49 = vld [vmem:[%s8375_s24 + $0x8] sm:$0xff]  }
 0x128   : > { %6938 = vmatprep.subr.bf16.mxu1 %v7717_v50 }
 0x12b   : > { %6939 = vmatpush3.bf16.msra.mxu1 %v7717_v50 }
 0x12c   : > { %6940 = vmatprep.subr.bf16.mxu1 %v7718_v63 }
 0x12f   : > { %6941 = vmatpush3.bf16.msra.mxu1 %v7718_v63 }
 0x130   : > { %6942 = vmatprep.subr.bf16.mxu1 %v7719_v51 }
 0x133   : > { %6943 = vmatpush3.bf16.msra.mxu1 %v7719_v51  ;;  %v7757_v51 = vld [vmem:[%s8375_s24] sm:$0xff]  }
 0x134   : > { %6952 = vmatprep.subr.bf16.mxu1 %v7720_v53 }
 0x136   : > { %6945 = vmatmul.mubr.bf16.vlgmr.msra.gmra.mrb[16].mxu1 %v1092_v55  ;;  %v7764_v55 = vld [vmem:[%s9442_s7 + $0x100] sm:$0xff]  }
 0x137   : > { %6948 = vmatprep.mubr.bf16.mxu1 %v1093_v57  ;;  %6953 = vmatpush3.bf16.msra.mxu1 %v7720_v53 }
 0x138   : > { %6954 = vmatprep.subr.bf16.mxu1 %v7722_v56 }
 0x13b   : > { %6955 = vmatpush3.bf16.msra.mxu1 %v7722_v56 }
 0x13c   : > { %6956 = vmatprep.subr.bf16.mxu1 %v7724_v0 }
 0x13e   : > { %6949 = vmatmul.mubr.bf16.gmra.mrb[20].mxu1 %v1094_v3 }
 0x13f   : > { %6957 = vmatpush3.bf16.msra.mxu1 %v7724_v0  ;;  %6968 = vmatprep.mubr.bf16.mxu1 %v1099_v60 }
 0x140   : > { %6958 = vmatprep.subr.bf16.mxu1 %v7725_v29 }
 0x143   : > { %6959 = vmatpush3.bf16.msra.mxu1 %v7725_v29 }
 0x144   : > { %6960 = vmatprep.subr.bf16.mxu1 %v7726_v4 }
 0x147   : > { %6961 = vmatpush3.bf16.msra.mxu1 %v7726_v4 }
 0x148   : > { %6962 = vmatprep.subr.bf16.mxu1 %v7728_v1 }
 0x14b   : > { %6963 = vmatpush3.bf16.msra.mxu1 %v7728_v1  ;;  %v7766_v1 = vld [vmem:[%s9442_s7 + $0x108] sm:$0xff]  }
 0x14c   : > { %6964 = vmatprep.subr.bf16.mxu1 %v7729_v26 }
 0x14f   : > { %6965 = vmatpush3.bf16.msra.mxu1 %v7729_v26 }
 0x150   : > { %6966 = vmatprep.subr.bf16.mxu1 %v7730_v5 }
 0x153   : > { %6967 = vmatpush3.bf16.msra.mxu1 %v7730_v5 }
 0x154   : > { %6976 = vmatprep.subr.bf16.mxu1 %v7732_v9 }
 0x156   : > { %6969 = vmatmul.mubr.bf16.vlgmr.msra.gmra.mrb[16].mxu1 %v1100_v11 }
 0x157   : > { %6977 = vmatpush3.bf16.msra.mxu1 %v7732_v9  ;;  %6972 = vmatprep.mubr.bf16.mxu1 %v1101_v10  ;;  %v7763_v10 = vld [vmem:[%s8375_s24 + $0x10] sm:$0xff]  }
 0x158   : > { %6978 = vmatprep.subr.bf16.mxu1 %v7733_v12 }
 0x15b   : > { %6979 = vmatpush3.bf16.msra.mxu1 %v7733_v12 }
 0x15c   : > { %6980 = vmatprep.subr.bf16.mxu1 %v7734_v15 }
 0x15e   : > { %6973 = vmatmul.mubr.bf16.gmra.mrb[20].mxu1 %v1102_v16  ;;  %v7769_v16 = vld [vmem:[%s9442_s7 + $0x118] sm:$0xff]  }
 0x15f   : > { %6981 = vmatpush3.bf16.msra.mxu1 %v7734_v15  ;;  %6992 = vmatprep.mubr.bf16.mxu1 %v1103_v61  ;;  %v7770_v61 = vld [vmem:[%s9442_s7 + $0x120] sm:$0xff]  }
 0x160   : > { %6982 = vmatprep.subr.bf16.mxu1 %v7735_v31 }
 0x163   : > { %6983 = vmatpush3.bf16.msra.mxu1 %v7735_v31  ;;  %v7771_v31 = vld [vmem:[%s9442_s7 + $0x128] sm:$0xff]  }
 0x164   : > { %6984 = vmatprep.subr.bf16.mxu1 %v7736_v17 }
 0x167   : > { %6985 = vmatpush3.bf16.msra.mxu1 %v7736_v17  ;;  %v7772_v17 = vld [vmem:[%s9442_s7 + $0x130] sm:$0xff]  }
 0x168   : > { %6986 = vmatprep.subr.bf16.mxu1 %v7740_v27 }
 0x16b   : > { %6987 = vmatpush3.bf16.msra.mxu1 %v7740_v27  ;;  %v7773_v27 = vld [vmem:[%s9442_s7 + $0x138] sm:$0xff]  }
 0x16c   : > { %6988 = vmatprep.subr.bf16.mxu1 %v7741_v6 }
 0x16f   : > { %6989 = vmatpush3.bf16.msra.mxu1 %v7741_v6  ;;  %v7774_v6 = vld [vmem:[%s9442_s7 + $0x180] sm:$0xff]  }
 0x170   : > { %6990 = vmatprep.subr.bf16.mxu1 %v7742_v18 }
 0x173   : > { %6991 = vmatpush3.bf16.msra.mxu1 %v7742_v18  ;;  %v7775_v18 = vld [vmem:[%s9442_s7 + $0x188] sm:$0xff]  }
 0x174   : > { %7060 = vmatprep.subr.bf16.mxu1 %v7991_v59 }
 0x176   : > { %6993 = vmatmul.mubr.bf16.vlgmr.msra.gmra.mrb[16].mxu1 %v1104_v23  ;;  %v7780_v23 = vld [vmem:[%s9442_s7 + $0x1b0] sm:$0xff]  }
 0x177   : > { %6996 = vmatprep.mubr.bf16.mxu1 %v1105_v21  ;;  %7061 = vmatpush3.bf16.msra.mxu1 %v7749_v22  ;;  %v7778_v21 = vld [vmem:[%s9442_s7 + $0x1a0] sm:$0xff]   ;;  %v7779_v22 = vld [vmem:[%s9442_s7 + $0x1a8] sm:$0xff]  }
 0x178   : > { %7062 = vmatprep.subr.bf16.mxu1 %v7991_v59 }
 0x17b   : > { %7063 = vmatpush3.bf16.msra.mxu1 %v7751_v25  ;;  %v7782_v25 = vld [vmem:[%s9442_s7 + $0x200] sm:$0xff]  }
 0x17c   : > { %7064 = vmatprep.subr.bf16.mxu1 %v7991_v59 }
 0x17e   : > { %6997 = vmatmul.mubr.bf16.gmra.mrb[20].mxu1 %v1106_v28  ;;  %v7783_v28 = vld [vmem:[%s9442_s7 + $0x240] sm:$0xff]  }
 0x17f   : > { %7065 = vmatpush3.bf16.msra.mxu1 %v7753_v2  ;;  %7076 = vmatprep.mubr.msk.bf16.mxu1 %vm7992_vm0, %v7991_v59  ;;  %v7784_v2 = vld [vmem:[%s9442_s7 + $0x208] sm:$0xff]  }
 0x180   : > { %7066 = vmatprep.subr.bf16.mxu1 %v7991_v59 }
 0x183   : > { %7067 = vmatpush3.bf16.msra.mxu1 %v7755_v30  ;;  %v7785_v30 = vld [vmem:[%s9442_s7 + $0x248] sm:$0xff]  }
 0x184   : > { %7068 = vmatprep.subr.bf16.mxu1 %v7991_v59 }
 0x187   : > { %7069 = vmatpush3.bf16.msra.mxu1 %v7759_v35  ;;  %v7787_v35 = vld [vmem:[%s9442_s7 + $0x250] sm:$0xff]  }
 0x188   : > { %7070 = vmatprep.subr.bf16.mxu1 %v7991_v59 }
 0x18b   : > { %7071 = vmatpush3.bf16.msra.mxu1 %v7761_v37  ;;  %v7789_v37 = vld [vmem:[%s9442_s7 + $0x258] sm:$0xff]  }
 0x18c   : > { %7072 = vmatprep.subr.bf16.mxu1 %v7991_v59 }
 0x18f   : > { %7073 = vmatpush3.bf16.msra.mxu1 %v7765_v38  ;;  %v7790_v38 = vld [vmem:[%s9442_s7 + $0x220] sm:$0xff]  }
 0x190   : > { %7074 = vmatprep.subr.bf16.mxu1 %v7991_v59 }
 0x193   : > { %7075 = vmatpush3.bf16.msra.mxu1 %v7767_v39  ;;  %v7791_v39 = vld [vmem:[%s9442_s7 + $0x260] sm:$0xff]  }
 0x194   : > { %7100 = vmatprep.subr.bf16.mxu1 %v7991_v59 }
 0x249   : > { %v6994_v41 = vpop.f32.mrb[16].mxu1 }
 0x24a   : > { %v1651_v42 = vadd.f32 %v6994_v41, %v5648_v40  ;;  %v1603_v43 = vpop.f32.mrb[17].mxu1  ;;  %v7793_v41 = vld [vmem:[%s9442_s7 + $0x268] sm:$0xff]  }
 0x24b   : > { %v1649_v33 = vadd.f32 %v5648_v40, %v1603_v43  ;;  %v6995_v44 = vpop.f32.mrb[18].mxu1  ;;  %v7795_v43 = vld [vmem:[%s9442_s7 + $0x270] sm:$0xff]  }
 0x24c   : > { %v1652_v45 = vadd.f32 %v6995_v44, %v5648_v40  ;;  %v1606_v46 = vpop.f32.mrb[19].mxu1  ;;  %v1659_v32 = vmax.f32 %v1651_v42, 0.0  ;;  %v7794_v42 = vld [vmem:[%s9442_s7 + $0x230] sm:$0xff]   ;;  %v7797_v44 = vld [vmem:[%s9442_s7 + $0x278] sm:$0xff]  }
 0x24d   : > { %v1650_v47 = vadd.f32 %v5648_v40, %v1606_v46  ;;  %v1657_v50 = vmax.f32 %v1649_v33, 0.0  ;;  %v7796_v33 = vld [vmem:[%s9442_s7 + $0x238] sm:$0xff]  }
 0x24e   : > { %v1660_v48 = vmax.f32 %v1652_v45, 0.0 }
 0x24f   : > { %v1658_v63 = vmax.f32 %v1650_v47, 0.0 }
 0x250   : > { %v1666_v52 = vpack.c.bf16 %v1660_v48, %v1659_v32 }
 0x251   : > { %v1665_v53 = vpack.c.bf16 %v1658_v63, %v1657_v50  ;;  %v6998_v54 = vpop.f32.mrb[20].mxu1 }
 0x252   : > { %v1702_v56 = vmul.bf16 %v7756_v49, %v1666_v52  ;;  %v1655_v57 = vadd.f32 %v6998_v54, %v5648_v40  ;;  %v1619_v58 = vpop.f32.mrb[21].mxu1 }
 0x253   : > { %v1701_v62 = vmul.bf16 %v7757_v51, %v1665_v53  ;;  %v1653_v0 = vadd.f32 %v5648_v40, %v1619_v58  ;;  %v6999_v60 = vpop.f32.mrb[22].mxu1 }
 0x254   : > { %v1656_v3 = vadd.f32 %v6999_v60, %v5648_v40  ;;  %v1622_v29 = vpop.f32.mrb[23].mxu1  ;;  %7017 = vmatmul.mubr.bf16.vlgmr.msra.gmra.mrb[16].mxu0 %v1702_v56  ;;  %v1663_v26 = vmax.f32 %v1655_v57, 0.0 }
 0x255   : > { %v1654_v4 = vadd.f32 %v5648_v40, %v1622_v29  ;;  %7021 = vmatpush3.bf16.msra.mxu0 %v7764_v55  ;;  %7036 = vmatprep.mubr.msk.bf16.mxu0 %vm7992_vm0, %v7991_v59  ;;  %v1661_v8 = vmax.f32 %v1653_v0, 0.0  ;;  %v7792_v40 = vld [vmem:[%s9442_s7 + $0x228] sm:$0xff]   ;;  %v5750_v0 = vld [vmem:[%s9443_s8 + $0x1] ss:$0 sm:$0xff] }
 0x256   : > { %v1664_v5 = vmax.f32 %v1656_v3, 0.0  ;;  %7022 = vmatprep.subr.bf16.mxu0 %v7991_v59 }
 0x257   : > { %v1662_v9 = vmax.f32 %v1654_v4, 0.0 }
 0x258   : > { %v1668_v11 = vpack.c.bf16 %v1664_v5, %v1663_v26 }
 0x259   : > { %v1667_v12 = vpack.c.bf16 %v1662_v9, %v1661_v8  ;;  %7023 = vmatpush3.bf16.msra.mxu0 %v7766_v1  ;;  %v7798_v9 = vld [vmem:[%s8540_s18] sm:$0xff]   ;;  %s548_s18 = scalar_lea.vmem %s9448_s13, %s9451_s30 }
 0x25a   : > { %v1704_v14 = vmul.bf16 %v7762_v7, %v1668_v11  ;;  %7024 = vmatprep.subr.bf16.mxu0 %v7991_v59  ;;  %v7799_v11 = vld [vmem:[%s9442_s7 + $0x2c0] sm:$0xff]  }
 0x25b   : > { %v1703_v15 = vmul.bf16 %v7763_v10, %v1667_v12 }
 0x25c   : > { %7077 = vmatmul.mubr.bf16.vlgmr.msra.gmra.mrb[24].mxu1 %v1704_v14 }
 0x25d   : > { %7025 = vmatpush3.bf16.msra.mxu0 %v7768_v13  ;;  %7116 = vmatprep.mubr.msk.bf16.mxu1 %vm7992_vm0, %v7991_v59  ;;  %v7800_v13 = vld [vmem:[%s9442_s7 + $0x280] sm:$0xff]  }
 0x25e   : > { %7026 = vmatprep.subr.bf16.mxu0 %v7991_v59  ;;  %7101 = vmatpush3.bf16.msra.mxu1 %v7782_v25 }
 0x25f   : > { %7102 = vmatprep.subr.bf16.mxu1 %v7991_v59 }
 0x261   : > { %7027 = vmatpush3.bf16.msra.mxu0 %v7769_v16  ;;  %v7802_v16 = vld [vmem:[%s9442_s7 + $0x288] sm:$0xff]  }
 0x262   : > { %7028 = vmatprep.subr.bf16.mxu0 %v7991_v59  ;;  %7103 = vmatpush3.bf16.msra.mxu1 %v7784_v2  ;;  %v7815_v2 = vld [vmem:[%s9442_s7 + $0x300] sm:$0xff]  }
 0x263   : > { %7104 = vmatprep.subr.bf16.mxu1 %v7991_v59 }
 0x265   : > { %7029 = vmatpush3.bf16.msra.mxu0 %v7770_v61  ;;  %v7803_v61 = vld [vmem:[%s9442_s7 + $0x2d0] sm:$0xff]  }
 0x266   : > { %7030 = vmatprep.subr.bf16.mxu0 %v7991_v59  ;;  %7105 = vmatpush3.bf16.msra.mxu1 %v7786_v34  ;;  %v7817_v34 = vld [vmem:[%s9442_s7 + $0x308] sm:$0xff]  }
 0x267   : > { %7106 = vmatprep.subr.bf16.mxu1 %v7991_v59 }
 0x269   : > { %7031 = vmatpush3.bf16.msra.mxu0 %v7771_v31  ;;  %v7804_v31 = vld [vmem:[%s9442_s7 + $0x290] sm:$0xff]  }
 0x26a   : > { %7032 = vmatprep.subr.bf16.mxu0 %v7991_v59  ;;  %7107 = vmatpush3.bf16.msra.mxu1 %v7788_v36  ;;  %v7819_v36 = vld [vmem:[%s9442_s7 + $0x310] sm:$0xff]  }
 0x26b   : > { %7108 = vmatprep.subr.bf16.mxu1 %v7991_v59 }
 0x26d   : > { %7033 = vmatpush3.bf16.msra.mxu0 %v7772_v17  ;;  %v7805_v17 = vld [vmem:[%s9442_s7 + $0x2d8] sm:$0xff]  }
 0x26e   : > { %7034 = vmatprep.subr.bf16.mxu0 %v7991_v59  ;;  %7109 = vmatpush3.bf16.msra.mxu1 %v7790_v38  ;;  %v7821_v38 = vld [vmem:[%s9442_s7 + $0x318] sm:$0xff]  }
 0x26f   : > { %7110 = vmatprep.subr.bf16.mxu1 %v7991_v59 }
 0x271   : > { %7035 = vmatpush3.bf16.msra.mxu0 %v7773_v27  ;;  %v7806_v27 = vld [vmem:[%s9442_s7 + $0x298] sm:$0xff]  }
 0x272   : > { %7040 = vmatprep.subr.bf16.mxu0 %v7991_v59  ;;  %7111 = vmatpush3.bf16.msra.mxu1 %v7792_v40  ;;  %v7823_v40 = vld [vmem:[%s9442_s7 + $0x320] sm:$0xff]  }
 0x273   : > { %7112 = vmatprep.subr.bf16.mxu1 %v7991_v59 }
 0x274   : > { %7037 = vmatmul.mubr.bf16.vlgmr.msra.gmra.mrb[20].mxu0 %v1701_v62 }
 0x275   : > { %7041 = vmatpush3.bf16.msra.mxu0 %v7774_v6  ;;  %7056 = vmatprep.mubr.msk.bf16.mxu0 %vm7992_vm0, %v7991_v59  ;;  %v7807_v6 = vld [vmem:[%s9442_s7 + $0x2e0] sm:$0xff]  }
 0x276   : > { %7042 = vmatprep.subr.bf16.mxu0 %v7991_v59  ;;  %7113 = vmatpush3.bf16.msra.mxu1 %v7794_v42  ;;  %v7825_v42 = vld [vmem:[%s9442_s7 + $0x328] sm:$0xff]  }
 0x277   : > { %7114 = vmatprep.subr.bf16.mxu1 %v7991_v59 }
 0x279   : > { %7043 = vmatpush3.bf16.msra.mxu0 %v7775_v18  ;;  %v7808_v18 = vld [vmem:[%s9442_s7 + $0x2a0] sm:$0xff]  }
 0x27a   : > { %7044 = vmatprep.subr.bf16.mxu0 %v7991_v59  ;;  %7115 = vmatpush3.bf16.msra.mxu1 %v7796_v33  ;;  %v7827_v33 = vld [vmem:[%s9442_s7 + $0x330] sm:$0xff]  }
 0x27b   : > { %7140 = vmatprep.subr.bf16.mxu1 %v7991_v59 }
 0x27d   : > { %7045 = vmatpush3.bf16.msra.mxu0 %v7776_v19  ;;  %v7809_v19 = vld [vmem:[%s9442_s7 + $0x2e8] sm:$0xff]  }
 0x27e   : > { %7046 = vmatprep.subr.bf16.mxu0 %v7991_v59 }
 0x281   : > { %7047 = vmatpush3.bf16.msra.mxu0 %v7777_v20  ;;  %v7810_v20 = vld [vmem:[%s9442_s7 + $0x2a8] sm:$0xff]  }
 0x282   : > { %7048 = vmatprep.subr.bf16.mxu0 %v7991_v59 }
 0x285   : > { %7049 = vmatpush3.bf16.msra.mxu0 %v7778_v21  ;;  %v7811_v21 = vld [vmem:[%s9442_s7 + $0x2f0] sm:$0xff]  }
 0x286   : > { %7050 = vmatprep.subr.bf16.mxu0 %v7991_v59 }
 0x289   : > { %7051 = vmatpush3.bf16.msra.mxu0 %v7779_v22  ;;  %v7812_v22 = vld [vmem:[%s9442_s7 + $0x2b0] sm:$0xff]  }
 0x28a   : > { %7052 = vmatprep.subr.bf16.mxu0 %v7991_v59 }
 0x28d   : > { %7053 = vmatpush3.bf16.msra.mxu0 %v7780_v23  ;;  %v7813_v23 = vld [vmem:[%s9442_s7 + $0x2f8] sm:$0xff]  }
 0x28e   : > { %7054 = vmatprep.subr.bf16.mxu0 %v7991_v59 }
 0x291   : > { %7055 = vmatpush3.bf16.msra.mxu0 %v7781_v24  ;;  %v7814_v24 = vld [vmem:[%s9442_s7 + $0x2b8] sm:$0xff]  }
 0x292   : > { %7080 = vmatprep.subr.bf16.mxu0 %v7991_v59 }
 0x294   : > { %7057 = vmatmul.mubr.bf16.vlgmr.msra.gmra.mrb[24].mxu0 %v1703_v15  ;;  %v7801_v15 = vld [vmem:[%s9442_s7 + $0x2c8] sm:$0xff]  }
 0x295   : > { %7096 = vmatprep.mubr.msk.bf16.mxu0 %vm7992_vm0, %v7991_v59  ;;  %7081 = vmatpush3.bf16.msra.mxu0 %v7783_v28 }
 0x296   : > { %7082 = vmatprep.subr.bf16.mxu0 %v7991_v59 }
 0x299   : > { %7083 = vmatpush3.bf16.msra.mxu0 %v7785_v30  ;;  %v7816_v30 = vld [vmem:[%s9442_s7 + $0x340] sm:$0xff]  }
 0x29a   : > { %7084 = vmatprep.subr.bf16.mxu0 %v7991_v59 }
 0x29d   : > { %7085 = vmatpush3.bf16.msra.mxu0 %v7787_v35  ;;  %v7818_v35 = vld [vmem:[%s9442_s7 + $0x348] sm:$0xff]  }
 0x29e   : > { %7086 = vmatprep.subr.bf16.mxu0 %v7991_v59 }
 0x2a1   : > { %7087 = vmatpush3.bf16.msra.mxu0 %v7789_v37  ;;  %v7820_v37 = vld [vmem:[%s9442_s7 + $0x350] sm:$0xff]  }
 0x2a2   : > { %7088 = vmatprep.subr.bf16.mxu0 %v7991_v59 }
 0x2a5   : > { %7089 = vmatpush3.bf16.msra.mxu0 %v7791_v39  ;;  %v7822_v39 = vld [vmem:[%s9442_s7 + $0x358] sm:$0xff]  }
 0x2a6   : > { %7090 = vmatprep.subr.bf16.mxu0 %v7991_v59 }
 0x2a9   : > { %7091 = vmatpush3.bf16.msra.mxu0 %v7793_v41  ;;  %v7824_v41 = vld [vmem:[%s9442_s7 + $0x360] sm:$0xff]  }
 0x2aa   : > { %7092 = vmatprep.subr.bf16.mxu0 %v7991_v59 }
 0x2ad   : > { %7093 = vmatpush3.bf16.msra.mxu0 %v7795_v43  ;;  %v7826_v43 = vld [vmem:[%s9442_s7 + $0x368] sm:$0xff]  }
 0x2ae   : > { %7094 = vmatprep.subr.bf16.mxu0 %v7991_v59 }
 0x2b1   : > { %7095 = vmatpush3.bf16.msra.mxu0 %v7797_v44  ;;  %v7828_v44 = vld [vmem:[%s9442_s7 + $0x370] sm:$0xff]  }
 0x2b2   : > { %7120 = vmatprep.subr.bf16.mxu0 %v7991_v59 }
 0x327   : > { %v1821_v45 = vpop.f32.mrb[16].mxu0 }
 0x328   : > { %v7018_v46 = vpop.f32.mrb[17].mxu0 }
 0x329   : > { %v1824_v47 = vpop.f32.mrb[18].mxu0  ;;  %v7830_v46 = vld [vmem:[%s9442_s7 + $0x378] sm:$0xff]  }
 0x32a   : > { %v7019_v32 = vpop.f32.mrb[19].mxu0 }
 0x32f   : > { %v2124_v48 = vpop.f32.mrb[24].mxu1 }
 0x330   : > { %v7078_v49 = vpop.f32.mrb[25].mxu1 }
 0x331   : > { %v2127_v50 = vpop.f32.mrb[26].mxu1 }
 0x332   : > { %v7079_v63 = vpop.f32.mrb[27].mxu1 }
 0x347   : > { %v1910_v51 = vpop.f32.mrb[20].mxu0 }
 0x348   : > { %v1911_v52 = vadd.f32 %v1910_v51, %v1821_v45  ;;  %v7038_v53 = vpop.f32.mrb[21].mxu0  ;;  %v7829_v45 = vld [vmem:[%s9442_s7 + $0x338] sm:$0xff]  }
 0x349   : > { %v1913_v54 = vpop.f32.mrb[22].mxu0 }
 0x34a   : > { %v1914_v55 = vadd.f32 %v1913_v54, %v1824_v47  ;;  %v7039_v56 = vpop.f32.mrb[23].mxu0 }
 0x367   : > { %v2016_v57 = vpop.f32.mrb[24].mxu0 }
 0x368   : > { %v2023_v58 = vadd.f32 %v2016_v57, %v1911_v52  ;;  %v7058_v62 = vpop.f32.mrb[25].mxu0 }
 0x369   : > { %v2019_v60 = vpop.f32.mrb[26].mxu0 }
 0x36a   : > { %v2131_v3 = vadd.f32 %v2124_v48, %v2023_v58  ;;  %v2024_v29 = vadd.f32 %v2019_v60, %v1914_v55  ;;  %v7059_v4 = vpop.f32.mrb[27].mxu0  ;;  %v5849_v60 = vld [vmem:[%s9443_s8 + $0x2] ss:$0 sm:$0xff] }
 0x36c   : > { %v2141_v1 = vadd.f32 %v5750_v0, %v2131_v3  ;;  %v2132_v26 = vadd.f32 %v2127_v50, %v2024_v29 }
 0x36e   : > { %v2142_v5 = vadd.f32 %v5750_v0, %v2132_v26  ;;  %v2143_v7 = vmax.f32 %v2141_v1, 0.0 }
 0x370   : > { %v2144_v8 = vmax.f32 %v2142_v5, 0.0  ;;  %v2595_v5 = vld [vmem:[%s545_s28] sm:$0x3] }
 0x372   : > { %v2145_v10 = vpack.c.bf16 %v2144_v8, %v2143_v7  ;;  %v7831_v8 = vld [vmem:[%s9442_s7 + $0x3c0] sm:$0xff]  }
 0x374   : > { %v2154_v12 = vmul.bf16 %v7798_v9, %v2145_v10  ;;  %v7832_v10 = vld [vmem:[%s9442_s7 + $0x380] sm:$0xff]  }
 0x376   : > { %7117 = vmatmul.mubr.bf16.vlgmr.msra.gmra.mrb[28].mxu1 %v2154_v12  ;;  %v2190_v14 = vrot.slane %v2154_v12, 2  ;;  %v2493_v25 = vrot.slane %v2154_v12, 6  ;;  %v2385_v28 = vrot.slane %v2154_v12, 4  ;;  %v7833_v12 = vld [vmem:[%s9442_s7 + $0x3c8] sm:$0xff]  }
 0x377   : > { %7141 = vmatpush3.bf16.msra.mxu1 %v7799_v11  ;;  %7156 = vmatprep.mubr.msk.bf16.mxu1 %vm7992_vm0, %v7991_v59 }
 0x378   : > { %7097 = vmatmul.mubr.bf16.vlgmr.msra.gmra.mrb[28].mxu0 %v2190_v14  ;;  %7142 = vmatprep.subr.bf16.mxu1 %v7991_v59  ;;  %v7835_v14 = vld [vmem:[%s9442_s7 + $0x3d0] sm:$0xff]  }
 0x379   : > { %7121 = vmatpush3.bf16.msra.mxu0 %v7800_v13  ;;  %7136 = vmatprep.mubr.msk.bf16.mxu0 %vm7992_vm0, %v7991_v59  ;;  %v7834_v13 = vld [vmem:[%s9442_s7 + $0x388] sm:$0xff]  }
 0x37a   : > { %7122 = vmatprep.subr.bf16.mxu0 %v7991_v59 }
 0x37b   : > { %7143 = vmatpush3.bf16.msra.mxu1 %v7801_v15  ;;  %v7836_v15 = vld [vmem:[%s9442_s7 + $0x390] sm:$0xff]  }
 0x37c   : > { %7144 = vmatprep.subr.bf16.mxu1 %v7991_v59 }
 0x37d   : > { %7123 = vmatpush3.bf16.msra.mxu0 %v7802_v16  ;;  %v7837_v16 = vld [vmem:[%s9442_s7 + $0x3d8] sm:$0xff]  }
 0x37e   : > { %7124 = vmatprep.subr.bf16.mxu0 %v7991_v59 }
 0x37f   : > { %7145 = vmatpush3.bf16.msra.mxu1 %v7803_v61  ;;  %v7838_v61 = vld [vmem:[%s9442_s7 + $0x398] sm:$0xff]  }
 0x380   : > { %7146 = vmatprep.subr.bf16.mxu1 %v7991_v59 }
 0x381   : > { %7125 = vmatpush3.bf16.msra.mxu0 %v7804_v31  ;;  %v7839_v31 = vld [vmem:[%s9442_s7 + $0x3e0] sm:$0xff]  }
 0x382   : > { %7126 = vmatprep.subr.bf16.mxu0 %v7991_v59 }
 0x383   : > { %7147 = vmatpush3.bf16.msra.mxu1 %v7805_v17  ;;  %v7840_v17 = vld [vmem:[%s9442_s7 + $0x3a0] sm:$0xff]  }
 0x384   : > { %7148 = vmatprep.subr.bf16.mxu1 %v7991_v59 }
 0x385   : > { %7127 = vmatpush3.bf16.msra.mxu0 %v7806_v27  ;;  %v7841_v27 = vld [vmem:[%s9442_s7 + $0x3e8] sm:$0xff]  }
 0x386   : > { %7128 = vmatprep.subr.bf16.mxu0 %v7991_v59 }
 0x387   : > { %7149 = vmatpush3.bf16.msra.mxu1 %v7807_v6  ;;  %v7842_v6 = vld [vmem:[%s9442_s7 + $0x3a8] sm:$0xff]  }
 0x388   : > { %7150 = vmatprep.subr.bf16.mxu1 %v7991_v59 }
 0x389   : > { %7129 = vmatpush3.bf16.msra.mxu0 %v7808_v18  ;;  %v7843_v18 = vld [vmem:[%s9442_s7 + $0x3f0] sm:$0xff]  }
 0x38a   : > { %7130 = vmatprep.subr.bf16.mxu0 %v7991_v59 }
 0x38b   : > { %7151 = vmatpush3.bf16.msra.mxu1 %v7809_v19  ;;  %v7844_v19 = vld [vmem:[%s9442_s7 + $0x3b0] sm:$0xff]  }
 0x38c   : > { %7152 = vmatprep.subr.bf16.mxu1 %v7991_v59 }
 0x38d   : > { %7131 = vmatpush3.bf16.msra.mxu0 %v7810_v20  ;;  %v7845_v20 = vld [vmem:[%s9442_s7 + $0x3f8] sm:$0xff]  }
 0x38e   : > { %7132 = vmatprep.subr.bf16.mxu0 %v7991_v59 }
 0x38f   : > { %7153 = vmatpush3.bf16.msra.mxu1 %v7811_v21  ;;  %v7846_v21 = vld [vmem:[%s9442_s7 + $0x3b8] sm:$0xff]  }
 0x390   : > { %7154 = vmatprep.subr.bf16.mxu1 %v7991_v59 }
 0x391   : > { %7133 = vmatpush3.bf16.msra.mxu0 %v7812_v22 }
 0x392   : > { %7134 = vmatprep.subr.bf16.mxu0 %v7991_v59 }
 0x393   : > { %7155 = vmatpush3.bf16.msra.mxu1 %v7813_v23 }
 0x394   : > { %7180 = vmatprep.subr.bf16.mxu1 %v7991_v59 }
 0x395   : > { %7135 = vmatpush3.bf16.msra.mxu0 %v7814_v24  ;;  %v7847_v24 = vld [vmem:[%s9444_s9] sm:$0xff]  }
 0x396   : > { %7157 = vmatmul.mubr.bf16.vlgmr.msra.gmra.mrb[32].mxu1 %v2493_v25  ;;  %7160 = vmatprep.subr.bf16.mxu0 %v7991_v59  ;;  %v7848_v25 = vld [vmem:[%s9444_s9 + $0x40] sm:$0xff]  }
 0x397   : > { %7196 = vmatprep.mubr.msk.bf16.mxu1 %vm7992_vm0, %v7991_v59  ;;  %7181 = vmatpush3.bf16.msra.mxu1 %v7815_v2  ;;  %v7850_v2 = vld [vmem:[%s9444_s9 + $0x48] sm:$0xff]  }
 0x398   : > { %7137 = vmatmul.mubr.bf16.vlgmr.msra.gmra.mrb[32].mxu0 %v2385_v28  ;;  %7182 = vmatprep.subr.bf16.mxu1 %v7991_v59  ;;  %v7849_v28 = vld [vmem:[%s9444_s9 + $0x8] sm:$0xff]  }
 0x399   : > { %7176 = vmatprep.mubr.msk.bf16.mxu0 %vm7992_vm0, %v7991_v59  ;;  %7161 = vmatpush3.bf16.msra.mxu0 %v7816_v30  ;;  %v7851_v30 = vld [vmem:[%s9444_s9 + $0x10] sm:$0xff]  }
 0x39a   : > { %7162 = vmatprep.subr.bf16.mxu0 %v7991_v59 }
 0x39b   : > { %7183 = vmatpush3.bf16.msra.mxu1 %v7817_v34  ;;  %v7852_v34 = vld [vmem:[%s9444_s9 + $0x50] sm:$0xff]  }
 0x39c   : > { %7184 = vmatprep.subr.bf16.mxu1 %v7991_v59 }
 0x39d   : > { %7163 = vmatpush3.bf16.msra.mxu0 %v7818_v35  ;;  %v7853_v35 = vld [vmem:[%s9444_s9 + $0x18] sm:$0xff]  }
 0x39e   : > { %7164 = vmatprep.subr.bf16.mxu0 %v7991_v59 }
 0x39f   : > { %7185 = vmatpush3.bf16.msra.mxu1 %v7819_v36  ;;  %v7854_v36 = vld [vmem:[%s9444_s9 + $0x58] sm:$0xff]  }
 0x3a0   : > { %7186 = vmatprep.subr.bf16.mxu1 %v7991_v59 }
 0x3a1   : > { %7165 = vmatpush3.bf16.msra.mxu0 %v7820_v37  ;;  %v7855_v37 = vld [vmem:[%s9444_s9 + $0x20] sm:$0xff]  }
 0x3a2   : > { %7166 = vmatprep.subr.bf16.mxu0 %v7991_v59 }
 0x3a3   : > { %7187 = vmatpush3.bf16.msra.mxu1 %v7821_v38  ;;  %v7856_v38 = vld [vmem:[%s9444_s9 + $0x60] sm:$0xff]  }
 0x3a4   : > { %7188 = vmatprep.subr.bf16.mxu1 %v7991_v59 }
 0x3a5   : > { %7167 = vmatpush3.bf16.msra.mxu0 %v7822_v39  ;;  %v7857_v39 = vld [vmem:[%s9444_s9 + $0x28] sm:$0xff]  }
 0x3a6   : > { %7168 = vmatprep.subr.bf16.mxu0 %v7991_v59 }
 0x3a7   : > { %7189 = vmatpush3.bf16.msra.mxu1 %v7823_v40  ;;  %v7858_v40 = vld [vmem:[%s9444_s9 + $0x68] sm:$0xff]  }
 0x3a8   : > { %7190 = vmatprep.subr.bf16.mxu1 %v7991_v59 }
 0x3a9   : > { %7169 = vmatpush3.bf16.msra.mxu0 %v7824_v41  ;;  %v7859_v41 = vld [vmem:[%s9444_s9 + $0x30] sm:$0xff]  }
 0x3aa   : > { %7170 = vmatprep.subr.bf16.mxu0 %v7991_v59 }
 0x3ab   : > { %7191 = vmatpush3.bf16.msra.mxu1 %v7825_v42  ;;  %v7860_v42 = vld [vmem:[%s9444_s9 + $0x70] sm:$0xff]  }
 0x3ac   : > { %7192 = vmatprep.subr.bf16.mxu1 %v7991_v59 }
 0x3ad   : > { %7171 = vmatpush3.bf16.msra.mxu0 %v7826_v43  ;;  %v7861_v43 = vld [vmem:[%s9444_s9 + $0x38] sm:$0xff]  }
 0x3ae   : > { %7172 = vmatprep.subr.bf16.mxu0 %v7991_v59 }
 0x3af   : > { %7193 = vmatpush3.bf16.msra.mxu1 %v7827_v33  ;;  %v7862_v33 = vld [vmem:[%s9444_s9 + $0x78] sm:$0xff]  }
 0x3b0   : > { %7194 = vmatprep.subr.bf16.mxu1 %v7991_v59 }
 0x3b1   : > { %7173 = vmatpush3.bf16.msra.mxu0 %v7828_v44 }
 0x3b2   : > { %7174 = vmatprep.subr.bf16.mxu0 %v7991_v59 }
 0x3b3   : > { %7195 = vmatpush3.bf16.msra.mxu1 %v7829_v45 }
 0x3b4   : > { %7220 = vmatprep.subr.bf16.mxu1 %v7991_v59 }
 0x3b5   : > { %7175 = vmatpush3.bf16.msra.mxu0 %v7830_v46 }
 0x3b6   : > { %7200 = vmatprep.subr.bf16.mxu0 %v7991_v59 }
 0x449   : > { %v2362_v47 = vpop.f32.mrb[28].mxu1 }
 0x44a   : > { %v7118_v32 = vpop.f32.mrb[29].mxu1 }
 0x44b   : > { %v2274_v48 = vpop.f32.mrb[28].mxu0  ;;  %v2365_v49 = vpop.f32.mrb[30].mxu1 }
 0x44c   : > { %v2363_v50 = vadd.f32 %v2362_v47, %v2274_v48  ;;  %v7098_v63 = vpop.f32.mrb[29].mxu0  ;;  %v7119_v51 = vpop.f32.mrb[31].mxu1 }
 0x44d   : > { %v2277_v52 = vpop.f32.mrb[30].mxu0 }
 0x44e   : > { %v7099_v53 = vpop.f32.mrb[31].mxu0 }
 0x469   : > { %v2577_v54 = vpop.f32.mrb[32].mxu1 }
 0x46a   : > { %v7158_v55 = vpop.f32.mrb[33].mxu1 }
 0x46b   : > { %v2469_v56 = vpop.f32.mrb[32].mxu0  ;;  %v2580_v57 = vpop.f32.mrb[34].mxu1 }
 0x46c   : > { %v2475_v58 = vadd.f32 %v2469_v56, %v2363_v50  ;;  %v7138_v62 = vpop.f32.mrb[33].mxu0  ;;  %v7159_v0 = vpop.f32.mrb[35].mxu1 }
 0x46d   : > { %v2472_v3 = vpop.f32.mrb[34].mxu0 }
 0x46e   : > { %v2583_v29 = vadd.f32 %v2577_v54, %v2475_v58  ;;  %v7139_v4 = vpop.f32.mrb[35].mxu0  ;;  %v5946_v58 = vld [vmem:[%s9443_s8 + $0x3] sm:$0x1] }
 0x46f   : > { %v7863_v4 = vld [vmem:[%s9444_s9 + $0x80] sm:$0xff]  }
 0x470   : > { %v2592_v1 = vadd.f32 %v5849_v60, %v2583_v29 }
 0x472   : > { %v2593_v26 = vmax.f32 %v2592_v1, 0.0  ;;  %v7864_v1 = vld [vmem:[%s9444_s9 + $0xc0] sm:$0xff]  }
 0x474   : > { %v2594_v7 = vpack.c.bf16 %v2593_v26, %v2593_v26 }
 0x476   : > { %v2596_v9 = vmul.bf16 %v2595_v5, %v2594_v7  ;;  %v7865_v5 = vld [vmem:[%s9444_s9 + $0x88] sm:$0xff]  }
 0x477   : > { %v7866_v7 = vld [vmem:[%s9444_s9 + $0xc8] sm:$0xff]  }
 0x478   : > { %7197 = vmatmul.mubr.bf16.vlgmr.msra.gmra.mrb[36].mxu1 %v2596_v9  ;;  %v2632_v11 = vshrl.u32 %v2596_v9, 16  ;;  %v2829_v23 = vrot.slane %v2596_v9, 1  ;;  %v7868_v9 = vld [vmem:[%s9444_s9 + $0xd0] sm:$0xff]  }
 0x479   : > { %7221 = vmatpush3.bf16.msra.mxu1 %v7831_v8  ;;  %7236 = vmatprep.mubr.msk.bf16.mxu1 %vm7992_vm0, %v7991_v59  ;;  %v7867_v8 = vld [vmem:[%s9444_s9 + $0x90] sm:$0xff]  }
 0x47a   : > { %7177 = vmatmul.mubr.bf16.vlgmr.msra.gmra.mrb[36].mxu0 %v2632_v11  ;;  %7222 = vmatprep.subr.bf16.mxu1 %v7991_v59  ;;  %v2937_v22 = vrot.slane %v2632_v11, 1  ;;  %v7870_v11 = vld [vmem:[%s9444_s9 + $0xd8] sm:$0xff]  }
 0x47b   : > { %7201 = vmatpush3.bf16.msra.mxu0 %v7832_v10  ;;  %7216 = vmatprep.mubr.msk.bf16.mxu0 %vm7992_vm0, %v7991_v59  ;;  %v7869_v10 = vld [vmem:[%s9444_s9 + $0x98] sm:$0xff]  }
 0x47c   : > { %7202 = vmatprep.subr.bf16.mxu0 %v7991_v59 }
 0x47d   : > { %7223 = vmatpush3.bf16.msra.mxu1 %v7833_v12  ;;  %v7871_v12 = vld [vmem:[%s9444_s9 + $0xa0] sm:$0xff]  }
 0x47e   : > { %7224 = vmatprep.subr.bf16.mxu1 %v7991_v59 }
 0x47f   : > { %7203 = vmatpush3.bf16.msra.mxu0 %v7834_v13  ;;  %v7872_v13 = vld [vmem:[%s9444_s9 + $0xe0] sm:$0xff]  }
 0x480   : > { %7204 = vmatprep.subr.bf16.mxu0 %v7991_v59 }
 0x481   : > { %7225 = vmatpush3.bf16.msra.mxu1 %v7835_v14  ;;  %v7873_v14 = vld [vmem:[%s9444_s9 + $0xa8] sm:$0xff]  }
 0x482   : > { %7226 = vmatprep.subr.bf16.mxu1 %v7991_v59 }
 0x483   : > { %7205 = vmatpush3.bf16.msra.mxu0 %v7836_v15  ;;  %v7874_v15 = vld [vmem:[%s9444_s9 + $0xe8] sm:$0xff]  }
 0x484   : > { %7206 = vmatprep.subr.bf16.mxu0 %v7991_v59 }
 0x485   : > { %7227 = vmatpush3.bf16.msra.mxu1 %v7837_v16  ;;  %v7875_v16 = vld [vmem:[%s9444_s9 + $0xb0] sm:$0xff]  }
 0x486   : > { %7228 = vmatprep.subr.bf16.mxu1 %v7991_v59 }
 0x487   : > { %7207 = vmatpush3.bf16.msra.mxu0 %v7838_v61  ;;  %v7876_v61 = vld [vmem:[%s9444_s9 + $0xf0] sm:$0xff]  }
 0x488   : > { %7208 = vmatprep.subr.bf16.mxu0 %v7991_v59 }
 0x489   : > { %7229 = vmatpush3.bf16.msra.mxu1 %v7839_v31  ;;  %v7877_v31 = vld [vmem:[%s9444_s9 + $0xb8] sm:$0xff]  }
 0x48a   : > { %7230 = vmatprep.subr.bf16.mxu1 %v7991_v59 }
 0x48b   : > { %7209 = vmatpush3.bf16.msra.mxu0 %v7840_v17  ;;  %v7878_v17 = vld [vmem:[%s9444_s9 + $0xf8] sm:$0xff]  }
 0x48c   : > { %7210 = vmatprep.subr.bf16.mxu0 %v7991_v59 }
 0x48d   : > { %7231 = vmatpush3.bf16.msra.mxu1 %v7841_v27  ;;  %v7879_v27 = vld [vmem:[%s9444_s9 + $0x100] sm:$0xff]  }
 0x48e   : > { %7232 = vmatprep.subr.bf16.mxu1 %v7991_v59 }
 0x48f   : > { %7211 = vmatpush3.bf16.msra.mxu0 %v7842_v6  ;;  %v7880_v6 = vld [vmem:[%s9444_s9 + $0x140] sm:$0xff]  }
 0x490   : > { %7212 = vmatprep.subr.bf16.mxu0 %v7991_v59 }
 0x491   : > { %7233 = vmatpush3.bf16.msra.mxu1 %v7843_v18  ;;  %v7881_v18 = vld [vmem:[%s9444_s9 + $0x108] sm:$0xff]  }
 0x492   : > { %7234 = vmatprep.subr.bf16.mxu1 %v7991_v59 }
 0x493   : > { %7213 = vmatpush3.bf16.msra.mxu0 %v7844_v19  ;;  %v7882_v19 = vld [vmem:[%s9444_s9 + $0x148] sm:$0xff]  }
 0x494   : > { %7214 = vmatprep.subr.bf16.mxu0 %v7991_v59 }
 0x495   : > { %7235 = vmatpush3.bf16.msra.mxu1 %v7845_v20  ;;  %v7883_v20 = vld [vmem:[%s9444_s9 + $0x110] sm:$0xff]  }
 0x496   : > { %7260 = vmatprep.subr.bf16.mxu1 %v7991_v59 }
 0x497   : > { %7215 = vmatpush3.bf16.msra.mxu0 %v7846_v21  ;;  %v7884_v21 = vld [vmem:[%s9444_s9 + $0x150] sm:$0xff]  }
 0x498   : > { %7237 = vmatmul.mubr.bf16.vlgmr.msra.gmra.mrb[40].mxu1 %v2937_v22  ;;  %7240 = vmatprep.subr.bf16.mxu0 %v7991_v59  ;;  %v7885_v22 = vld [vmem:[%s9444_s9 + $0x118] sm:$0xff]  }
 0x499   : > { %7276 = vmatprep.mubr.msk.bf16.mxu1 %vm7992_vm0, %v7991_v59  ;;  %7261 = vmatpush3.bf16.msra.mxu1 %v7848_v25  ;;  %v7888_v25 = vld [vmem:[%s9444_s9 + $0x160] sm:$0xff]  }
 0x49a   : > { %7217 = vmatmul.mubr.bf16.vlgmr.msra.gmra.mrb[40].mxu0 %v2829_v23  ;;  %7262 = vmatprep.subr.bf16.mxu1 %v7991_v59  ;;  %v7886_v23 = vld [vmem:[%s9444_s9 + $0x158] sm:$0xff]  }
 0x49b   : > { %7256 = vmatprep.mubr.msk.bf16.mxu0 %vm7992_vm0, %v7991_v59  ;;  %7241 = vmatpush3.bf16.msra.mxu0 %v7847_v24  ;;  %v7887_v24 = vld [vmem:[%s9444_s9 + $0x120] sm:$0xff]  }
 0x49c   : > { %7242 = vmatprep.subr.bf16.mxu0 %v7991_v59 }
 0x49d   : > { %7263 = vmatpush3.bf16.msra.mxu1 %v7850_v2  ;;  %v7890_v2 = vld [vmem:[%s9444_s9 + $0x168] sm:$0xff]  }
 0x49e   : > { %7264 = vmatprep.subr.bf16.mxu1 %v7991_v59 }
 0x49f   : > { %7243 = vmatpush3.bf16.msra.mxu0 %v7849_v28  ;;  %v7889_v28 = vld [vmem:[%s9444_s9 + $0x128] sm:$0xff]  }
 0x4a0   : > { %7244 = vmatprep.subr.bf16.mxu0 %v7991_v59 }
 0x4a1   : > { %7265 = vmatpush3.bf16.msra.mxu1 %v7852_v34  ;;  %v7892_v34 = vld [vmem:[%s9444_s9 + $0x170] sm:$0xff]  }
 0x4a2   : > { %7266 = vmatprep.subr.bf16.mxu1 %v7991_v59 }
 0x4a3   : > { %7245 = vmatpush3.bf16.msra.mxu0 %v7851_v30  ;;  %v7891_v30 = vld [vmem:[%s9444_s9 + $0x130] sm:$0xff]  }
 0x4a4   : > { %7246 = vmatprep.subr.bf16.mxu0 %v7991_v59 }
 0x4a5   : > { %7267 = vmatpush3.bf16.msra.mxu1 %v7854_v36  ;;  %v7894_v36 = vld [vmem:[%s9444_s9 + $0x178] sm:$0xff]  }
 0x4a6   : > { %7268 = vmatprep.subr.bf16.mxu1 %v7991_v59 }
 0x4a7   : > { %7247 = vmatpush3.bf16.msra.mxu0 %v7853_v35  ;;  %v7893_v35 = vld [vmem:[%s9444_s9 + $0x138] sm:$0xff]  }
 0x4a8   : > { %7248 = vmatprep.subr.bf16.mxu0 %v7991_v59 }
 0x4a9   : > { %7269 = vmatpush3.bf16.msra.mxu1 %v7856_v38 }
 0x4aa   : > { %7270 = vmatprep.subr.bf16.mxu1 %v7991_v59 }
 0x4ab   : > { %7249 = vmatpush3.bf16.msra.mxu0 %v7855_v37  ;;  %v3034_v37 = vld [vmem:[%s9445_s10] sm:$0x1] }
 0x4ac   : > { %7250 = vmatprep.subr.bf16.mxu0 %v7991_v59 }
 0x4ad   : > { %7271 = vmatpush3.bf16.msra.mxu1 %v7858_v40 }
 0x4ae   : > { %7272 = vmatprep.subr.bf16.mxu1 %v7991_v59 }
 0x4af   : > { %7251 = vmatpush3.bf16.msra.mxu0 %v7857_v39 }
 0x4b0   : > { %7252 = vmatprep.subr.bf16.mxu0 %v7991_v59 }
 0x4b1   : > { %7273 = vmatpush3.bf16.msra.mxu1 %v7860_v42 }
 0x4b2   : > { %7274 = vmatprep.subr.bf16.mxu1 %v7991_v59 }
 0x4b3   : > { %7253 = vmatpush3.bf16.msra.mxu0 %v7859_v41 }
 0x4b4   : > { %7254 = vmatprep.subr.bf16.mxu0 %v7991_v59 }
 0x4b5   : > { %7275 = vmatpush3.bf16.msra.mxu1 %v7862_v33 }
 0x4b6   : > { %7300 = vmatprep.subr.bf16.mxu1 %v7991_v59 }
 0x4b7   : > { %7255 = vmatpush3.bf16.msra.mxu0 %v7861_v43 }
 0x4b8   : > { %7280 = vmatprep.subr.bf16.mxu0 %v7991_v59 }
 0x54b   : > { %v2805_v44 = vpop.f32.mrb[36].mxu1 }
 0x54c   : > { %v7198_v45 = vpop.f32.mrb[37].mxu1 }
 0x54d   : > { %v2717_v46 = vpop.f32.mrb[36].mxu0  ;;  %v2808_v47 = vpop.f32.mrb[38].mxu1 }
 0x54e   : > { %v2806_v32 = vadd.f32 %v2805_v44, %v2717_v46  ;;  %v7178_v48 = vpop.f32.mrb[37].mxu0  ;;  %v7199_v49 = vpop.f32.mrb[39].mxu1 }
 0x54f   : > { %v2720_v50 = vpop.f32.mrb[38].mxu0 }
 0x550   : > { %v7179_v63 = vpop.f32.mrb[39].mxu0 }
 0x56b   : > { %v3021_v51 = vpop.f32.mrb[40].mxu1 }
 0x56c   : > { %v7238_v52 = vpop.f32.mrb[41].mxu1 }
 0x56d   : > { %v2913_v53 = vpop.f32.mrb[40].mxu0  ;;  %v3024_v54 = vpop.f32.mrb[42].mxu1 }
 0x56e   : > { %v2919_v55 = vadd.f32 %v2913_v53, %v2806_v32  ;;  %v7218_v56 = vpop.f32.mrb[41].mxu0  ;;  %v7239_v57 = vpop.f32.mrb[43].mxu1 }
 0x56f   : > { %v2916_v62 = vpop.f32.mrb[42].mxu0 }
 0x570   : > { %v3027_v0 = vadd.f32 %v3021_v51, %v2919_v55  ;;  %v7219_v60 = vpop.f32.mrb[43].mxu0 }
 0x572   : > { %v3030_v3 = vadd.f32 %v5946_v58, %v3027_v0 }
 0x574   : > { %v3031_v29 = vmax.f32 %v3030_v3, 0.0 }
 0x576   : > { %v3032_v26 = vpack.c.bf16 %v3031_v29, %v3031_v29  ;;  %3033 = vst [vmem:[%s548_s18] sm:$0x1] %v3031_v29 }
 0x578   : > { %7257 = vmatmul.mubr.bf16.vlgmr.msra.gmra.mrb[44].mxu0 %v3032_v26  ;;  %7277 = vmatmul.mubr.bf16.vlgmr.msra.gmra.mrb[44].mxu1 %v3032_v26 }
 0x579   : > { %7281 = vmatpush3.bf16.msra.mxu0 %v7863_v4  ;;  %7301 = vmatpush3.bf16.msra.mxu1 %v7864_v1 }
 0x57a   : > { %7282 = vmatprep.subr.bf16.mxu0 %v7991_v59  ;;  %7302 = vmatprep.subr.bf16.mxu1 %v7991_v59 }
 0x57b   : > { %7296 = vmatprep.mubr.msk.bf16.mxu0 %vm7992_vm0, %v7991_v59  ;;  %7316 = vmatprep.mubr.msk.bf16.mxu1 %vm7992_vm0, %v7991_v59 }
 0x57d   : > { %7283 = vmatpush3.bf16.msra.mxu0 %v7865_v5  ;;  %7303 = vmatpush3.bf16.msra.mxu1 %v7866_v7 }
 0x57e   : > { %7284 = vmatprep.subr.bf16.mxu0 %v7991_v59  ;;  %7304 = vmatprep.subr.bf16.mxu1 %v7991_v59 }
 0x581   : > { %7285 = vmatpush3.bf16.msra.mxu0 %v7867_v8  ;;  %7305 = vmatpush3.bf16.msra.mxu1 %v7868_v9  ;;  %v7895_v8 = vld [vmem:[%s9444_s9 + $0x180] sm:$0xff]  }
 0x582   : > { %7286 = vmatprep.subr.bf16.mxu0 %v7991_v59  ;;  %7306 = vmatprep.subr.bf16.mxu1 %v7991_v59  ;;  %v7896_v9 = vld [vmem:[%s9444_s9 + $0x1c0] sm:$0xff]  }
 0x585   : > { %7287 = vmatpush3.bf16.msra.mxu0 %v7869_v10  ;;  %7307 = vmatpush3.bf16.msra.mxu1 %v7870_v11  ;;  %v7897_v11 = vld [vmem:[%s9444_s9 + $0x188] sm:$0xff]  }
 0x586   : > { %7288 = vmatprep.subr.bf16.mxu0 %v7991_v59  ;;  %7308 = vmatprep.subr.bf16.mxu1 %v7991_v59 }
 0x589   : > { %7289 = vmatpush3.bf16.msra.mxu0 %v7871_v12  ;;  %7309 = vmatpush3.bf16.msra.mxu1 %v7872_v13  ;;  %v7898_v12 = vld [vmem:[%s9444_s9 + $0x1c8] sm:$0xff]   ;;  %v7899_v13 = vld [vmem:[%s9444_s9 + $0x190] sm:$0xff]  }
 0x58a   : > { %7290 = vmatprep.subr.bf16.mxu0 %v7991_v59  ;;  %7310 = vmatprep.subr.bf16.mxu1 %v7991_v59 }
 0x58d   : > { %7291 = vmatpush3.bf16.msra.mxu0 %v7873_v14  ;;  %7311 = vmatpush3.bf16.msra.mxu1 %v7874_v15  ;;  %v7900_v14 = vld [vmem:[%s9444_s9 + $0x1d0] sm:$0xff]   ;;  %v7901_v15 = vld [vmem:[%s9444_s9 + $0x198] sm:$0xff]  }
 0x58e   : > { %7292 = vmatprep.subr.bf16.mxu0 %v7991_v59  ;;  %7312 = vmatprep.subr.bf16.mxu1 %v7991_v59 }
 0x591   : > { %7293 = vmatpush3.bf16.msra.mxu0 %v7875_v16  ;;  %7313 = vmatpush3.bf16.msra.mxu1 %v7876_v61  ;;  %v7902_v16 = vld [vmem:[%s9444_s9 + $0x1d8] sm:$0xff]   ;;  %v7903_v61 = vld [vmem:[%s9444_s9 + $0x1a0] sm:$0xff]  }
 0x592   : > { %7294 = vmatprep.subr.bf16.mxu0 %v7991_v59  ;;  %7314 = vmatprep.subr.bf16.mxu1 %v7991_v59 }
 0x595   : > { %7295 = vmatpush3.bf16.msra.mxu0 %v7877_v31  ;;  %7315 = vmatpush3.bf16.msra.mxu1 %v7878_v17  ;;  %v7904_v31 = vld [vmem:[%s9444_s9 + $0x1e0] sm:$0xff]   ;;  %v7905_v17 = vld [vmem:[%s9444_s9 + $0x1a8] sm:$0xff]  }
 0x596   : > { %7320 = vmatprep.subr.bf16.mxu0 %v7991_v59  ;;  %7340 = vmatprep.subr.bf16.mxu1 %v7991_v59 }
 0x598   : > { %7297 = vmatmul.mubr.bf16.vlgmr.msra.gmra.mrb[48].mxu0 %v3032_v26  ;;  %7317 = vmatmul.mubr.bf16.vlgmr.msra.gmra.mrb[48].mxu1 %v3032_v26 }
 0x599   : > { %7336 = vmatprep.mubr.msk.bf16.mxu0 %vm7992_vm0, %v7991_v59  ;;  %7356 = vmatprep.mubr.msk.bf16.mxu1 %vm7992_vm0, %v7991_v59 }
 0x59a   : > { %7321 = vmatpush3.bf16.msra.mxu0 %v7879_v27  ;;  %7341 = vmatpush3.bf16.msra.mxu1 %v7880_v6  ;;  %v7906_v27 = vld [vmem:[%s9444_s9 + $0x1e8] sm:$0xff]   ;;  %v7907_v6 = vld [vmem:[%s9444_s9 + $0x1b0] sm:$0xff]  }
 0x59b   : > { %7322 = vmatprep.subr.bf16.mxu0 %v7991_v59  ;;  %7342 = vmatprep.subr.bf16.mxu1 %v7991_v59 }
 0x59e   : > { %7323 = vmatpush3.bf16.msra.mxu0 %v7881_v18  ;;  %7343 = vmatpush3.bf16.msra.mxu1 %v7882_v19  ;;  %v7908_v18 = vld [vmem:[%s9444_s9 + $0x1f0] sm:$0xff]   ;;  %v7909_v19 = vld [vmem:[%s9444_s9 + $0x1b8] sm:$0xff]  }
 0x59f   : > { %7324 = vmatprep.subr.bf16.mxu0 %v7991_v59  ;;  %7344 = vmatprep.subr.bf16.mxu1 %v7991_v59 }
 0x5a2   : > { %7325 = vmatpush3.bf16.msra.mxu0 %v7883_v20  ;;  %7345 = vmatpush3.bf16.msra.mxu1 %v7884_v21  ;;  %v7910_v20 = vld [vmem:[%s9444_s9 + $0x1f8] sm:$0xff]   ;;  %v7911_v21 = vld [vmem:[%s9444_s9 + $0x200] sm:$0xff]  }
 0x5a3   : > { %7326 = vmatprep.subr.bf16.mxu0 %v7991_v59  ;;  %7346 = vmatprep.subr.bf16.mxu1 %v7991_v59 }
 0x5a6   : > { %7327 = vmatpush3.bf16.msra.mxu0 %v7885_v22  ;;  %7347 = vmatpush3.bf16.msra.mxu1 %v7886_v23  ;;  %v7912_v22 = vld [vmem:[%s9444_s9 + $0x240] sm:$0xff]   ;;  %v7913_v23 = vld [vmem:[%s9444_s9 + $0x208] sm:$0xff]  }
 0x5a7   : > { %7328 = vmatprep.subr.bf16.mxu0 %v7991_v59  ;;  %7348 = vmatprep.subr.bf16.mxu1 %v7991_v59 }
 0x5aa   : > { %7329 = vmatpush3.bf16.msra.mxu0 %v7887_v24  ;;  %7349 = vmatpush3.bf16.msra.mxu1 %v7888_v25  ;;  %v7914_v24 = vld [vmem:[%s9444_s9 + $0x248] sm:$0xff]   ;;  %v7915_v25 = vld [vmem:[%s9444_s9 + $0x210] sm:$0xff]  }
 0x5ab   : > { %7330 = vmatprep.subr.bf16.mxu0 %v7991_v59  ;;  %7350 = vmatprep.subr.bf16.mxu1 %v7991_v59 }
 0x5ae   : > { %7331 = vmatpush3.bf16.msra.mxu0 %v7889_v28  ;;  %7351 = vmatpush3.bf16.msra.mxu1 %v7890_v2  ;;  %v7916_v28 = vld [vmem:[%s9444_s9 + $0x250] sm:$0xff]   ;;  %v7917_v2 = vld [vmem:[%s9444_s9 + $0x218] sm:$0xff]  }
 0x5af   : > { %7332 = vmatprep.subr.bf16.mxu0 %v7991_v59  ;;  %7352 = vmatprep.subr.bf16.mxu1 %v7991_v59 }
 0x5b2   : > { %7333 = vmatpush3.bf16.msra.mxu0 %v7891_v30  ;;  %7353 = vmatpush3.bf16.msra.mxu1 %v7892_v34  ;;  %v7918_v30 = vld [vmem:[%s9444_s9 + $0x258] sm:$0xff]   ;;  %v7919_v34 = vld [vmem:[%s9444_s9 + $0x220] sm:$0xff]  }
 0x5b3   : > { %7334 = vmatprep.subr.bf16.mxu0 %v7991_v59  ;;  %7354 = vmatprep.subr.bf16.mxu1 %v7991_v59 }
 0x5b6   : > { %7335 = vmatpush3.bf16.msra.mxu0 %v7893_v35  ;;  %7355 = vmatpush3.bf16.msra.mxu1 %v7894_v36  ;;  %v7920_v35 = vld [vmem:[%s9444_s9 + $0x260] sm:$0xff]   ;;  %v7921_v36 = vld [vmem:[%s9444_s9 + $0x228] sm:$0xff]  }
 0x5b7   : > { %7360 = vmatprep.subr.bf16.mxu0 %v7991_v59  ;;  %7380 = vmatprep.subr.bf16.mxu1 %v7991_v59 }
 0x64b   : > { %v3133_v38 = vpop.f32.mrb[44].mxu0  ;;  %v3240_v39 = vpop.f32.mrb[44].mxu1 }
 0x64c   : > { %v3134_v40 = vadd.f32 %v3133_v38, %v3034_v37  ;;  %v3241_v41 = vadd.f32 %v3240_v39, %v3034_v37  ;;  %v7258_v42 = vpop.f32.mrb[45].mxu0  ;;  %v7278_v43 = vpop.f32.mrb[45].mxu1  ;;  %v7923_v38 = vld [vmem:[%s9444_s9 + $0x230] sm:$0xff]  }
 0x64d   : > { %v3136_v33 = vpop.f32.mrb[46].mxu0  ;;  %v3243_v44 = vpop.f32.mrb[46].mxu1  ;;  %v7924_v39 = vld [vmem:[%s9444_s9 + $0x270] sm:$0xff]   ;;  %v6044_v42 = vld [vmem:[%s9445_s10 + $0x1] ss:$0 sm:$0xff] }
 0x64e   : > { %v3139_v45 = vmax.f32 %v3134_v40, 0.0  ;;  %v3246_v46 = vmax.f32 %v3241_v41, 0.0  ;;  %v7259_v47 = vpop.f32.mrb[47].mxu0  ;;  %v7279_v32 = vpop.f32.mrb[47].mxu1  ;;  %v7925_v40 = vld [vmem:[%s9444_s9 + $0x238] sm:$0xff]  }
 0x64f   : > { %v7926_v41 = vld [vmem:[%s9444_s9 + $0x278] sm:$0xff]  }
 0x650   : > { %v3247_v48 = vpack.c.bf16 %v3246_v46, %v3246_v46  ;;  %v3140_v49 = vpack.c.bf16 %v3139_v45, %v3139_v45 }
 0x652   : > { %v3463_v50 = vshll.u32 %v3247_v48, 16 }
 0x654   : > { %v3476_v63 = vsel %vm3475_vm3, %v3140_v49, %v3463_v50 }
 0x66b   : > { %v3347_v51 = vpop.f32.mrb[48].mxu0  ;;  %v3454_v52 = vpop.f32.mrb[48].mxu1 }
 0x66c   : > { %v3348_v53 = vadd.f32 %v3347_v51, %v3034_v37  ;;  %v3455_v54 = vadd.f32 %v3454_v52, %v3034_v37  ;;  %v7298_v55 = vpop.f32.mrb[49].mxu0  ;;  %v7318_v56 = vpop.f32.mrb[49].mxu1  ;;  %v7922_v37 = vld [vmem:[%s9444_s9 + $0x268] sm:$0xff]  }
 0x66d   : > { %v3350_v57 = vpop.f32.mrb[50].mxu0  ;;  %v3457_v58 = vpop.f32.mrb[50].mxu1 }
 0x66e   : > { %v3353_v62 = vmax.f32 %v3348_v53, 0.0  ;;  %v3460_v0 = vmax.f32 %v3455_v54, 0.0  ;;  %v7299_v60 = vpop.f32.mrb[51].mxu0  ;;  %v7319_v3 = vpop.f32.mrb[51].mxu1 }
 0x670   : > { %v3354_v29 = vpack.c.bf16 %v3353_v62, %v3353_v62  ;;  %v3461_v4 = vpack.c.bf16 %v3460_v0, %v3460_v0 }
 0x672   : > { %v3467_v1 = vrot.slane %v3354_v29, 7  ;;  %v3469_v26 = vshll.u32 %v3461_v4, 16 }
 0x674   : > { %v3471_v5 = vrot.slane %v3469_v26, 7  ;;  %v3480_v7 = vsel %vm3473_vm1, %v3476_v63, %v3467_v1 }
 0x676   : > { %v3485_v10 = vsel %vm3484_vm6, %v3480_v7, %v3471_v5 }
 0x677   : > { %7337 = vmatmul.mubr.bf16.vlgmr.msra.gmra.mrb[52].mxu0 %v3485_v10  ;;  %7357 = vmatmul.mubr.bf16.vlgmr.msra.gmra.mrb[52].mxu1 %v3485_v10 }
 0x678   : > { %7361 = vmatpush3.bf16.msra.mxu0 %v7895_v8  ;;  %7381 = vmatpush3.bf16.msra.mxu1 %v7896_v9 }
 0x679   : > { %7362 = vmatprep.subr.bf16.mxu0 %v7991_v59  ;;  %7382 = vmatprep.subr.bf16.mxu1 %v7991_v59 }
 0x67a   : > { %7376 = vmatprep.mubr.msk.bf16.mxu0 %vm7992_vm0, %v7991_v59  ;;  %7396 = vmatprep.mubr.msk.bf16.mxu1 %vm7992_vm0, %v7991_v59 }
 0x67c   : > { %7363 = vmatpush3.bf16.msra.mxu0 %v7897_v11  ;;  %7383 = vmatpush3.bf16.msra.mxu1 %v7898_v12  ;;  %v7927_v11 = vld [vmem:[%s9444_s9 + $0x280] sm:$0xff]  }
 0x67d   : > { %7364 = vmatprep.subr.bf16.mxu0 %v7991_v59  ;;  %7384 = vmatprep.subr.bf16.mxu1 %v7991_v59  ;;  %v7928_v12 = vld [vmem:[%s9444_s9 + $0x2c0] sm:$0xff]  }
 0x680   : > { %7365 = vmatpush3.bf16.msra.mxu0 %v7899_v13  ;;  %7385 = vmatpush3.bf16.msra.mxu1 %v7900_v14 }
 0x681   : > { %7366 = vmatprep.subr.bf16.mxu0 %v7991_v59  ;;  %7386 = vmatprep.subr.bf16.mxu1 %v7991_v59 }
 0x684   : > { %7367 = vmatpush3.bf16.msra.mxu0 %v7901_v15  ;;  %7387 = vmatpush3.bf16.msra.mxu1 %v7902_v16  ;;  %v7929_v15 = vld [vmem:[%s9444_s9 + $0x288] sm:$0xff]  }
 0x685   : > { %7368 = vmatprep.subr.bf16.mxu0 %v7991_v59  ;;  %7388 = vmatprep.subr.bf16.mxu1 %v7991_v59  ;;  %v7930_v16 = vld [vmem:[%s9444_s9 + $0x2c8] sm:$0xff]  }
 0x688   : > { %7369 = vmatpush3.bf16.msra.mxu0 %v7903_v61  ;;  %7389 = vmatpush3.bf16.msra.mxu1 %v7904_v31  ;;  %v7931_v61 = vld [vmem:[%s9444_s9 + $0x290] sm:$0xff]  }
 0x689   : > { %7370 = vmatprep.subr.bf16.mxu0 %v7991_v59  ;;  %7390 = vmatprep.subr.bf16.mxu1 %v7991_v59  ;;  %v7932_v31 = vld [vmem:[%s9444_s9 + $0x2d0] sm:$0xff]  }
 0x68c   : > { %7371 = vmatpush3.bf16.msra.mxu0 %v7905_v17  ;;  %7391 = vmatpush3.bf16.msra.mxu1 %v7906_v27  ;;  %v7933_v17 = vld [vmem:[%s9444_s9 + $0x298] sm:$0xff]  }
 0x68d   : > { %7372 = vmatprep.subr.bf16.mxu0 %v7991_v59  ;;  %7392 = vmatprep.subr.bf16.mxu1 %v7991_v59  ;;  %v7934_v27 = vld [vmem:[%s9444_s9 + $0x2d8] sm:$0xff]  }
 0x690   : > { %7373 = vmatpush3.bf16.msra.mxu0 %v7907_v6  ;;  %7393 = vmatpush3.bf16.msra.mxu1 %v7908_v18  ;;  %v7935_v6 = vld [vmem:[%s9444_s9 + $0x2a0] sm:$0xff]  }
 0x691   : > { %7374 = vmatprep.subr.bf16.mxu0 %v7991_v59  ;;  %7394 = vmatprep.subr.bf16.mxu1 %v7991_v59  ;;  %v7936_v18 = vld [vmem:[%s9444_s9 + $0x2e0] sm:$0xff]  }
 0x694   : > { %7375 = vmatpush3.bf16.msra.mxu0 %v7909_v19  ;;  %7395 = vmatpush3.bf16.msra.mxu1 %v7910_v20  ;;  %v7937_v19 = vld [vmem:[%s9444_s9 + $0x2a8] sm:$0xff]  }
 0x695   : > { %7400 = vmatprep.subr.bf16.mxu0 %v7991_v59  ;;  %7420 = vmatprep.subr.bf16.mxu1 %v7991_v59  ;;  %v7938_v20 = vld [vmem:[%s9444_s9 + $0x2e8] sm:$0xff]  }
 0x697   : > { %7377 = vmatmul.mubr.bf16.vlgmr.msra.gmra.mrb[56].mxu0 %v3485_v10  ;;  %7397 = vmatmul.mubr.bf16.vlgmr.msra.gmra.mrb[56].mxu1 %v3485_v10 }
 0x698   : > { %7416 = vmatprep.mubr.msk.bf16.mxu0 %vm7992_vm0, %v7991_v59  ;;  %7436 = vmatprep.mubr.msk.bf16.mxu1 %vm7992_vm0, %v7991_v59 }
 0x699   : > { %7401 = vmatpush3.bf16.msra.mxu0 %v7911_v21  ;;  %7421 = vmatpush3.bf16.msra.mxu1 %v7912_v22  ;;  %v7939_v21 = vld [vmem:[%s9444_s9 + $0x2b0] sm:$0xff]  }
 0x69a   : > { %7402 = vmatprep.subr.bf16.mxu0 %v7991_v59  ;;  %7422 = vmatprep.subr.bf16.mxu1 %v7991_v59  ;;  %v7940_v22 = vld [vmem:[%s9444_s9 + $0x2f0] sm:$0xff]  }
 0x69d   : > { %7403 = vmatpush3.bf16.msra.mxu0 %v7913_v23  ;;  %7423 = vmatpush3.bf16.msra.mxu1 %v7914_v24  ;;  %v7941_v23 = vld [vmem:[%s9444_s9 + $0x2b8] sm:$0xff]  }
 0x69e   : > { %7404 = vmatprep.subr.bf16.mxu0 %v7991_v59  ;;  %7424 = vmatprep.subr.bf16.mxu1 %v7991_v59  ;;  %v7942_v24 = vld [vmem:[%s9444_s9 + $0x2f8] sm:$0xff]  }
 0x6a1   : > { %7405 = vmatpush3.bf16.msra.mxu0 %v7915_v25  ;;  %7425 = vmatpush3.bf16.msra.mxu1 %v7916_v28  ;;  %v7943_v25 = vld [vmem:[%s9444_s9 + $0x300] sm:$0xff]  }
 0x6a2   : > { %7406 = vmatprep.subr.bf16.mxu0 %v7991_v59  ;;  %7426 = vmatprep.subr.bf16.mxu1 %v7991_v59  ;;  %v7944_v28 = vld [vmem:[%s9444_s9 + $0x340] sm:$0xff]  }
 0x6a5   : > { %7407 = vmatpush3.bf16.msra.mxu0 %v7917_v2  ;;  %7427 = vmatpush3.bf16.msra.mxu1 %v7918_v30  ;;  %v7945_v2 = vld [vmem:[%s9444_s9 + $0x308] sm:$0xff]   ;;  %v7947_v30 = vld [vmem:[%s9444_s9 + $0x310] sm:$0xff]  }
 0x6a6   : > { %7408 = vmatprep.subr.bf16.mxu0 %v7991_v59  ;;  %7428 = vmatprep.subr.bf16.mxu1 %v7991_v59 }
 0x6a9   : > { %7409 = vmatpush3.bf16.msra.mxu0 %v7919_v34  ;;  %7429 = vmatpush3.bf16.msra.mxu1 %v7920_v35  ;;  %v7948_v34 = vld [vmem:[%s9444_s9 + $0x350] sm:$0xff]   ;;  %v7949_v35 = vld [vmem:[%s9444_s9 + $0x318] sm:$0xff]  }
 0x6aa   : > { %7410 = vmatprep.subr.bf16.mxu0 %v7991_v59  ;;  %7430 = vmatprep.subr.bf16.mxu1 %v7991_v59 }
 0x6ad   : > { %7411 = vmatpush3.bf16.msra.mxu0 %v7921_v36  ;;  %7431 = vmatpush3.bf16.msra.mxu1 %v7922_v37  ;;  %v7950_v36 = vld [vmem:[%s9444_s9 + $0x358] sm:$0xff]   ;;  %v7951_v37 = vld [vmem:[%s9444_s9 + $0x320] sm:$0xff]  }
 0x6ae   : > { %7412 = vmatprep.subr.bf16.mxu0 %v7991_v59  ;;  %7432 = vmatprep.subr.bf16.mxu1 %v7991_v59 }
 0x6b1   : > { %7413 = vmatpush3.bf16.msra.mxu0 %v7923_v38  ;;  %7433 = vmatpush3.bf16.msra.mxu1 %v7924_v39  ;;  %v7952_v38 = vld [vmem:[%s9444_s9 + $0x360] sm:$0xff]   ;;  %v7953_v39 = vld [vmem:[%s9444_s9 + $0x328] sm:$0xff]  }
 0x6b2   : > { %7414 = vmatprep.subr.bf16.mxu0 %v7991_v59  ;;  %7434 = vmatprep.subr.bf16.mxu1 %v7991_v59 }
 0x6b5   : > { %7415 = vmatpush3.bf16.msra.mxu0 %v7925_v40  ;;  %7435 = vmatpush3.bf16.msra.mxu1 %v7926_v41  ;;  %v7954_v40 = vld [vmem:[%s9444_s9 + $0x368] sm:$0xff]   ;;  %v7955_v41 = vld [vmem:[%s9444_s9 + $0x330] sm:$0xff]  }
 0x6b6   : > { %7440 = vmatprep.subr.bf16.mxu0 %v7991_v59  ;;  %7460 = vmatprep.subr.bf16.mxu1 %v7991_v59 }
 0x74a   : > { %v3593_v43 = vpop.f32.mrb[52].mxu0  ;;  %v3700_v33 = vpop.f32.mrb[52].mxu1 }
 0x74b   : > { %v3594_v44 = vadd.f32 %v6044_v42, %v3593_v43  ;;  %v3701_v45 = vadd.f32 %v6044_v42, %v3700_v33  ;;  %v7338_v46 = vpop.f32.mrb[53].mxu0  ;;  %v7358_v47 = vpop.f32.mrb[53].mxu1  ;;  %v7957_v43 = vld [vmem:[%s9444_s9 + $0x338] sm:$0xff]  }
 0x74c   : > { %v3596_v32 = vpop.f32.mrb[54].mxu0  ;;  %v3703_v48 = vpop.f32.mrb[54].mxu1  ;;  %v7958_v33 = vld [vmem:[%s9444_s9 + $0x378] sm:$0xff]   ;;  %v9242_v46 = vld [vmem:[%s9445_s10 + $0x2] ss:$0 sm:$0xff] }
 0x74d   : > { %v3599_v49 = vmax.f32 %v3594_v44, 0.0  ;;  %v3706_v50 = vmax.f32 %v3701_v45, 0.0  ;;  %v7339_v63 = vpop.f32.mrb[55].mxu0  ;;  %v7359_v51 = vpop.f32.mrb[55].mxu1  ;;  %v7959_v44 = vld [vmem:[%s9444_s9 + $0x380] sm:$0xff]  }
 0x74e   : > { %v7960_v45 = vld [vmem:[%s9444_s9 + $0x3c0] sm:$0xff]  }
 0x74f   : > { %v3707_v52 = vpack.c.bf16 %v3706_v50, %v3706_v50  ;;  %v3600_v53 = vpack.c.bf16 %v3599_v49, %v3599_v49 }
 0x751   : > { %v3923_v54 = vrot.slane %v3707_v52, 6 }
 0x753   : > { %v3931_v55 = vsel %vm3482_vm4, %v3600_v53, %v3923_v54 }
 0x76a   : > { %v3807_v56 = vpop.f32.mrb[56].mxu0  ;;  %v3914_v57 = vpop.f32.mrb[56].mxu1 }
 0x76b   : > { %v3808_v58 = vadd.f32 %v6044_v42, %v3807_v56  ;;  %v3915_v62 = vadd.f32 %v6044_v42, %v3914_v57  ;;  %v7378_v0 = vpop.f32.mrb[57].mxu0  ;;  %v7398_v60 = vpop.f32.mrb[57].mxu1  ;;  %v7956_v42 = vld [vmem:[%s9444_s9 + $0x370] sm:$0xff]  }
 0x76c   : > { %v3810_v3 = vpop.f32.mrb[58].mxu0  ;;  %v3917_v29 = vpop.f32.mrb[58].mxu1 }
 0x76d   : > { %v3813_v4 = vmax.f32 %v3808_v58, 0.0  ;;  %v3920_v1 = vmax.f32 %v3915_v62, 0.0  ;;  %v7379_v26 = vpop.f32.mrb[59].mxu0  ;;  %v7399_v5 = vpop.f32.mrb[59].mxu1  ;;  %v7961_v29 = vld [vmem:[%s9444_s9 + $0x388] sm:$0xff]  }
 0x76e   : > { %v7964_v26 = vld [vmem:[%s9444_s9 + $0x3d0] sm:$0xff]   ;;  %v7965_v5 = vld [vmem:[%s9444_s9 + $0x398] sm:$0xff]  }
 0x76f   : > { %v3814_v7 = vpack.c.bf16 %v3813_v4, %v3813_v4  ;;  %v3921_v8 = vpack.c.bf16 %v3920_v1, %v3920_v1  ;;  %v7962_v4 = vld [vmem:[%s9444_s9 + $0x3c8] sm:$0xff]   ;;  %v7963_v1 = vld [vmem:[%s9444_s9 + $0x390] sm:$0xff]  }
 0x771   : > { %v3925_v9 = vrot.slane %v3814_v7, 4  ;;  %v3927_v10 = vrot.slane %v3921_v8, 2  ;;  %v7966_v7 = vld [vmem:[%s9444_s9 + $0x3d8] sm:$0xff]   ;;  %v7967_v8 = vld [vmem:[%s9444_s9 + $0x3a0] sm:$0xff]  }
 0x773   : > { %v3934_v13 = vsel %vm3932_vm7, %v3931_v55, %v3925_v9  ;;  %v7968_v9 = vld [vmem:[%s9444_s9 + $0x3e0] sm:$0xff]  }
 0x774   : > { %v3937_v14 = vsel %vm3935_vm8, %v3934_v13, %v3927_v10  ;;  %v7969_v10 = vld [vmem:[%s9444_s9 + $0x3a8] sm:$0xff]   ;;  %v7972_v13 = vld [vmem:[%s9444_s9 + $0x3f0] sm:$0xff]  }
 0x775   : > { %7417 = vmatmul.mubr.bf16.vlgmr.msra.gmra.mrb[60].mxu0 %v3937_v14  ;;  %7437 = vmatmul.mubr.bf16.vlgmr.msra.gmra.mrb[60].mxu1 %v3937_v14 }
 0x776   : > { %7441 = vmatpush3.bf16.msra.mxu0 %v7927_v11  ;;  %7461 = vmatpush3.bf16.msra.mxu1 %v7928_v12  ;;  %v7970_v11 = vld [vmem:[%s9444_s9 + $0x3e8] sm:$0xff]   ;;  %v7971_v12 = vld [vmem:[%s9444_s9 + $0x3b0] sm:$0xff]  }
 0x777   : > { %7442 = vmatprep.subr.bf16.mxu0 %v7991_v59  ;;  %7462 = vmatprep.subr.bf16.mxu1 %v7991_v59 }
 0x778   : > { %7456 = vmatprep.mubr.msk.bf16.mxu0 %vm7992_vm0, %v7991_v59  ;;  %7476 = vmatprep.mubr.msk.bf16.mxu1 %vm7992_vm0, %v7991_v59 }
 0x77a   : > { %7443 = vmatpush3.bf16.msra.mxu0 %v7929_v15  ;;  %7463 = vmatpush3.bf16.msra.mxu1 %v7930_v16  ;;  %v7973_v16 = vld [vmem:[%s9444_s9 + $0x3b8] sm:$0xff]  }
 0x77b   : > { %7444 = vmatprep.subr.bf16.mxu0 %v7991_v59  ;;  %7464 = vmatprep.subr.bf16.mxu1 %v7991_v59 }
 0x77e   : > { %7445 = vmatpush3.bf16.msra.mxu0 %v7931_v61  ;;  %7465 = vmatpush3.bf16.msra.mxu1 %v7932_v31  ;;  %v7974_v61 = vld [vmem:[%s9444_s9 + $0x3f8] sm:$0xff]  }
 0x77f   : > { %7446 = vmatprep.subr.bf16.mxu0 %v7991_v59  ;;  %7466 = vmatprep.subr.bf16.mxu1 %v7991_v59 }
 0x782   : > { %7447 = vmatpush3.bf16.msra.mxu0 %v7933_v17  ;;  %7467 = vmatpush3.bf16.msra.mxu1 %v7934_v27 }
 0x783   : > { %7448 = vmatprep.subr.bf16.mxu0 %v7991_v59  ;;  %7468 = vmatprep.subr.bf16.mxu1 %v7991_v59 }
 0x786   : > { %7449 = vmatpush3.bf16.msra.mxu0 %v7935_v6  ;;  %7469 = vmatpush3.bf16.msra.mxu1 %v7936_v18 }
 0x787   : > { %7450 = vmatprep.subr.bf16.mxu0 %v7991_v59  ;;  %7470 = vmatprep.subr.bf16.mxu1 %v7991_v59 }
 0x78a   : > { %7451 = vmatpush3.bf16.msra.mxu0 %v7937_v19  ;;  %7471 = vmatpush3.bf16.msra.mxu1 %v7938_v20 }
 0x78b   : > { %7452 = vmatprep.subr.bf16.mxu0 %v7991_v59  ;;  %7472 = vmatprep.subr.bf16.mxu1 %v7991_v59 }
 0x78e   : > { %7453 = vmatpush3.bf16.msra.mxu0 %v7939_v21  ;;  %7473 = vmatpush3.bf16.msra.mxu1 %v7940_v22 }
 0x78f   : > { %7454 = vmatprep.subr.bf16.mxu0 %v7991_v59  ;;  %7474 = vmatprep.subr.bf16.mxu1 %v7991_v59  ;;  %v7946_v59 = vld [vmem:[%s9444_s9 + $0x348] sm:$0xff]  }
 0x792   : > { %7455 = vmatpush3.bf16.msra.mxu0 %v7941_v23  ;;  %7475 = vmatpush3.bf16.msra.mxu1 %v7942_v24  ;;  %v7975_v24 = vld [vmem:[%s9446_s11] sm:$0xff]  }
 0x793   : > { %7480 = vmatprep.subr.bf16.mxu0 %v7943_v25  ;;  %7504 = vmatprep.subr.bf16.mxu1 %v7944_v28 }
 0x795   : > { %7457 = vmatmul.mubr.bf16.vlgmr.msra.gmra.mrb[64].mxu0 %v3937_v14  ;;  %7477 = vmatmul.mubr.bf16.vlgmr.msra.gmra.mrb[64].mxu1 %v3937_v14 }
 0x796   : > { %7481 = vmatpush3.bf16.msra.mxu0 %v7943_v25  ;;  %7505 = vmatpush3.bf16.msra.mxu1 %v7944_v28 }
 0x797   : > { %7482 = vmatprep.subr.bf16.mxu0 %v7945_v2  ;;  %7506 = vmatprep.subr.bf16.mxu1 %v7946_v59 }
 0x79a   : > { %7483 = vmatpush3.bf16.msra.mxu0 %v7945_v2  ;;  %7507 = vmatpush3.bf16.msra.mxu1 %v7946_v59 }
 0x79b   : > { %7484 = vmatprep.subr.bf16.mxu0 %v7947_v30  ;;  %7508 = vmatprep.subr.bf16.mxu1 %v7948_v34 }
 0x79e   : > { %7485 = vmatpush3.bf16.msra.mxu0 %v7947_v30  ;;  %7509 = vmatpush3.bf16.msra.mxu1 %v7948_v34 }
 0x79f   : > { %7486 = vmatprep.subr.bf16.mxu0 %v7949_v35  ;;  %7510 = vmatprep.subr.bf16.mxu1 %v7950_v36 }
 0x7a2   : > { %7487 = vmatpush3.bf16.msra.mxu0 %v7949_v35  ;;  %7511 = vmatpush3.bf16.msra.mxu1 %v7950_v36  ;;  %v7976_v35 = vld [vmem:[%s9446_s11 + $0x8] sm:$0xff]   ;;  %v7977_v36 = vld [vmem:[%s9446_s11 + $0x10] sm:$0xff]  }
 0x7a3   : > { %7488 = vmatprep.subr.bf16.mxu0 %v7951_v37  ;;  %7512 = vmatprep.subr.bf16.mxu1 %v7952_v38 }
 0x7a6   : > { %7489 = vmatpush3.bf16.msra.mxu0 %v7951_v37  ;;  %7513 = vmatpush3.bf16.msra.mxu1 %v7952_v38  ;;  %v7978_v37 = vld [vmem:[%s9446_s11 + $0x18] sm:$0xff]   ;;  %v7979_v38 = vld [vmem:[%s9446_s11 + $0x20] sm:$0xff]  }
 0x7a7   : > { %7490 = vmatprep.subr.bf16.mxu0 %v7953_v39  ;;  %7514 = vmatprep.subr.bf16.mxu1 %v7954_v40 }
 0x7aa   : > { %7491 = vmatpush3.bf16.msra.mxu0 %v7953_v39  ;;  %7515 = vmatpush3.bf16.msra.mxu1 %v7954_v40  ;;  %v7980_v39 = vld [vmem:[%s9446_s11 + $0x28] sm:$0xff]   ;;  %v7981_v40 = vld [vmem:[%s9446_s11 + $0x30] sm:$0xff]  }
 0x7ab   : > { %7492 = vmatprep.subr.bf16.mxu0 %v7955_v41  ;;  %7516 = vmatprep.subr.bf16.mxu1 %v7956_v42 }
 0x7ae   : > { %7493 = vmatpush3.bf16.msra.mxu0 %v7955_v41  ;;  %7517 = vmatpush3.bf16.msra.mxu1 %v7956_v42  ;;  %v7982_v41 = vld [vmem:[%s9446_s11 + $0x38] sm:$0xff]   ;;  %v9333_v42 = vld [vmem:[%s9445_s10 + $0x3] ss:$0 sm:$0xff] }
 0x7af   : > { %7494 = vmatprep.subr.bf16.mxu0 %v7957_v43  ;;  %7518 = vmatprep.subr.bf16.mxu1 %v7958_v33 }
 0x7b2   : > { %7495 = vmatpush3.bf16.msra.mxu0 %v7957_v43  ;;  %7519 = vmatpush3.bf16.msra.mxu1 %v7958_v33 }
 0x7b3   : > { %7528 = vmatprep.subr.bf16.mxu0 %v7959_v44  ;;  %7552 = vmatprep.subr.bf16.mxu1 %v7960_v45 }
 0x848   : > { %v4046_v47 = vpop.f32.mrb[60].mxu0  ;;  %v4155_v32 = vpop.f32.mrb[60].mxu1 }
 0x849   : > { %v4047_v48 = vadd.f32 %v9242_v46, %v4046_v47  ;;  %v4156_v49 = vadd.f32 %v9242_v46, %v4155_v32  ;;  %v7418_v50 = vpop.f32.mrb[61].mxu0  ;;  %v7438_v63 = vpop.f32.mrb[61].mxu1 }
 0x84a   : > { %v4049_v51 = vpop.f32.mrb[62].mxu0  ;;  %v4158_v52 = vpop.f32.mrb[62].mxu1 }
 0x84b   : > { %v4050_v53 = vadd.f32 %v9242_v46, %v4049_v51  ;;  %v4159_v54 = vadd.f32 %v9242_v46, %v4158_v52  ;;  %v7419_v55 = vpop.f32.mrb[63].mxu0  ;;  %v7439_v56 = vpop.f32.mrb[63].mxu1  ;;  %v4053_v57 = vmax.f32 %v4047_v48, 0.0  ;;  %v4162_v58 = vmax.f32 %v4156_v49, 0.0 }
 0x84d   : > { %v4054_v62 = vmax.f32 %v4050_v53, 0.0  ;;  %v4163_v0 = vmax.f32 %v4159_v54, 0.0 }
 0x84f   : > { %v9248_v60 = vpack.c.bf16 %v4054_v62, %v4053_v57  ;;  %v9250_v3 = vpack.c.bf16 %v4163_v0, %v4162_v58 }
 0x851   : > { %7496 = vmatprep.mubr.bf16.mxu0 %v9248_v60  ;;  %7520 = vmatprep.mubr.bf16.mxu1 %v9248_v60 }
 0x852   : > { %7497 = vmatmul.mubr.bf16.vlgmr.msra.gmra.mrb[68].mxu0 %v9250_v3  ;;  %7521 = vmatmul.mubr.bf16.vlgmr.msra.gmra.mrb[68].mxu1 %v9250_v3 }
 0x853   : > { %7529 = vmatpush3.bf16.msra.mxu0 %v7959_v44  ;;  %7553 = vmatpush3.bf16.msra.mxu1 %v7960_v45 }
 0x854   : > { %7530 = vmatprep.subr.bf16.mxu0 %v7961_v29  ;;  %7554 = vmatprep.subr.bf16.mxu1 %v7962_v4 }
 0x857   : > { %7531 = vmatpush3.bf16.msra.mxu0 %v7961_v29  ;;  %7555 = vmatpush3.bf16.msra.mxu1 %v7962_v4 }
 0x858   : > { %7532 = vmatprep.subr.bf16.mxu0 %v7963_v1  ;;  %7556 = vmatprep.subr.bf16.mxu1 %v7964_v26 }
 0x85b   : > { %7533 = vmatpush3.bf16.msra.mxu0 %v7963_v1  ;;  %7557 = vmatpush3.bf16.msra.mxu1 %v7964_v26 }
 0x85c   : > { %7534 = vmatprep.subr.bf16.mxu0 %v7965_v5  ;;  %7558 = vmatprep.subr.bf16.mxu1 %v7966_v7 }
 0x85f   : > { %7535 = vmatpush3.bf16.msra.mxu0 %v7965_v5  ;;  %7559 = vmatpush3.bf16.msra.mxu1 %v7966_v7 }
 0x860   : > { %7536 = vmatprep.subr.bf16.mxu0 %v7967_v8  ;;  %7560 = vmatprep.subr.bf16.mxu1 %v7968_v9 }
 0x863   : > { %7537 = vmatpush3.bf16.msra.mxu0 %v7967_v8  ;;  %7561 = vmatpush3.bf16.msra.mxu1 %v7968_v9 }
 0x864   : > { %7538 = vmatprep.subr.bf16.mxu0 %v7969_v10  ;;  %7562 = vmatprep.subr.bf16.mxu1 %v7970_v11 }
 0x867   : > { %7539 = vmatpush3.bf16.msra.mxu0 %v7969_v10  ;;  %7563 = vmatpush3.bf16.msra.mxu1 %v7970_v11 }
 0x868   : > { %v4264_v14 = vpop.f32.mrb[64].mxu0  ;;  %v4373_v15 = vpop.f32.mrb[64].mxu1  ;;  %7540 = vmatprep.subr.bf16.mxu0 %v7971_v12  ;;  %7564 = vmatprep.subr.bf16.mxu1 %v7972_v13 }
 0x869   : > { %v4265_v31 = vadd.f32 %v9242_v46, %v4264_v14  ;;  %v4374_v17 = vadd.f32 %v9242_v46, %v4373_v15  ;;  %v7458_v27 = vpop.f32.mrb[65].mxu0  ;;  %v7478_v6 = vpop.f32.mrb[65].mxu1 }
 0x86a   : > { %v4267_v18 = vpop.f32.mrb[66].mxu0  ;;  %v4376_v19 = vpop.f32.mrb[66].mxu1 }
 0x86b   : > { %v4268_v20 = vadd.f32 %v9242_v46, %v4267_v18  ;;  %v4377_v21 = vadd.f32 %v9242_v46, %v4376_v19  ;;  %v7459_v22 = vpop.f32.mrb[67].mxu0  ;;  %v7479_v23 = vpop.f32.mrb[67].mxu1  ;;  %7541 = vmatpush3.bf16.msra.mxu0 %v7971_v12  ;;  %7565 = vmatpush3.bf16.msra.mxu1 %v7972_v13  ;;  %v4271_v25 = vmax.f32 %v4265_v31, 0.0  ;;  %v4380_v28 = vmax.f32 %v4374_v17, 0.0 }
 0x86c   : > { %7542 = vmatprep.subr.bf16.mxu0 %v7973_v16  ;;  %7566 = vmatprep.subr.bf16.mxu1 %v7974_v61 }
 0x86d   : > { %v4272_v2 = vmax.f32 %v4268_v20, 0.0  ;;  %v4381_v59 = vmax.f32 %v4377_v21, 0.0 }
 0x86f   : > { %v4273_v30 = vpack.c.bf16 %v4272_v2, %v4271_v25  ;;  %v4382_v34 = vpack.c.bf16 %v4381_v59, %v4380_v28  ;;  %7543 = vmatpush3.bf16.msra.mxu0 %v7973_v16  ;;  %7567 = vmatpush3.bf16.msra.mxu1 %v7974_v61 }
 0x870   : > { %7576 = vmatprep.subr.bf16.mxu0 %v7975_v24 }
 0x871   : > { %7500 = vmatprep.mubr.bf16.mxu0 %v4273_v30  ;;  %7524 = vmatprep.mubr.bf16.mxu1 %v4273_v30 }
 0x872   : > { %7501 = vmatmul.mubr.bf16.gmra.mrb[72].mxu0 %v4382_v34  ;;  %7525 = vmatmul.mubr.bf16.gmra.mrb[72].mxu1 %v4382_v34 }
 0x873   : > { %7544 = vmatprep.mubr.bf16.mxu0 %v9248_v60  ;;  %7568 = vmatprep.mubr.bf16.mxu1 %v9248_v60 }
 0x87a   : > { %7545 = vmatmul.mubr.bf16.vlgmr.msra.gmra.mrb[76].mxu0 %v9250_v3  ;;  %7569 = vmatmul.mubr.bf16.vlgmr.msra.gmra.mrb[76].mxu1 %v9250_v3 }
 0x87b   : > { %7548 = vmatprep.mubr.bf16.mxu0 %v4273_v30  ;;  %7572 = vmatprep.mubr.bf16.mxu1 %v4273_v30 }
 0x87c   : > { %7577 = vmatpush3.bf16.msra.mxu0 %v7975_v24 }
 0x87d   : > { %7578 = vmatprep.subr.bf16.mxu0 %v7976_v35 }
 0x880   : > { %7579 = vmatpush3.bf16.msra.mxu0 %v7976_v35 }
 0x881   : > { %7580 = vmatprep.subr.bf16.mxu0 %v7977_v36 }
 0x882   : > { %7549 = vmatmul.mubr.bf16.gmra.mrb[80].mxu0 %v4382_v34  ;;  %7573 = vmatmul.mubr.bf16.gmra.mrb[80].mxu1 %v4382_v34 }
 0x884   : > { %7581 = vmatpush3.bf16.msra.mxu0 %v7977_v36 }
 0x885   : > { %7582 = vmatprep.subr.bf16.mxu0 %v7978_v37 }
 0x888   : > { %7583 = vmatpush3.bf16.msra.mxu0 %v7978_v37 }
 0x889   : > { %7584 = vmatprep.subr.bf16.mxu0 %v7979_v38 }
 0x88c   : > { %7585 = vmatpush3.bf16.msra.mxu0 %v7979_v38 }
 0x88d   : > { %7586 = vmatprep.subr.bf16.mxu0 %v7980_v39 }
 0x890   : > { %7587 = vmatpush3.bf16.msra.mxu0 %v7980_v39 }
 0x891   : > { %7588 = vmatprep.subr.bf16.mxu0 %v7981_v40 }
 0x894   : > { %7589 = vmatpush3.bf16.msra.mxu0 %v7981_v40 }
 0x895   : > { %7590 = vmatprep.subr.bf16.mxu0 %v7982_v41 }
 0x898   : > { %7591 = vmatpush3.bf16.msra.mxu0 %v7982_v41 }
 0x925   : > { %v7498_v43 = vpop.f32.mrb[68].mxu0  ;;  %v7522_v33 = vpop.f32.mrb[68].mxu1 }
 0x926   : > { %v4499_v44 = vadd.f32 %v7498_v43, %v9333_v42  ;;  %v4641_v45 = vadd.f32 %v7522_v33, %v9333_v42  ;;  %v4490_v46 = vpop.f32.mrb[69].mxu0  ;;  %v4632_v47 = vpop.f32.mrb[69].mxu1 }
 0x927   : > { %v4491_v32 = vadd.f32 %v9333_v42, %v4490_v46  ;;  %v4633_v48 = vadd.f32 %v9333_v42, %v4632_v47  ;;  %v7499_v49 = vpop.f32.mrb[70].mxu0  ;;  %v7523_v50 = vpop.f32.mrb[70].mxu1 }
 0x928   : > { %v4502_v63 = vadd.f32 %v7499_v49, %v9333_v42  ;;  %v4644_v51 = vadd.f32 %v7523_v50, %v9333_v42  ;;  %v4493_v52 = vpop.f32.mrb[71].mxu0  ;;  %v4635_v53 = vpop.f32.mrb[71].mxu1  ;;  %v4523_v56 = vmax.f32 %v4499_v44, 0.0  ;;  %v4665_v57 = vmax.f32 %v4641_v45, 0.0 }
 0x929   : > { %v4494_v54 = vadd.f32 %v9333_v42, %v4493_v52  ;;  %v4636_v55 = vadd.f32 %v9333_v42, %v4635_v53  ;;  %v4521_v0 = vmax.f32 %v4491_v32, 0.0  ;;  %v4663_v60 = vmax.f32 %v4633_v48, 0.0 }
 0x92a   : > { %v4524_v58 = vmax.f32 %v4502_v63, 0.0  ;;  %v4666_v62 = vmax.f32 %v4644_v51, 0.0 }
 0x92b   : > { %v4522_v3 = vmax.f32 %v4494_v54, 0.0  ;;  %v4664_v29 = vmax.f32 %v4636_v55, 0.0 }
 0x92c   : > { %v4530_v4 = vpack.c.bf16 %v4524_v58, %v4523_v56  ;;  %v9343_v1 = vpack.c.bf16 %v4666_v62, %v4665_v57 }
 0x92d   : > { %v4529_v26 = vpack.c.bf16 %v4522_v3, %v4521_v0  ;;  %v4671_v5 = vpack.c.bf16 %v4664_v29, %v4663_v60 }
 0x92f   : > { %7592 = vmatprep.mubr.bf16.mxu0 %v4529_v26 }
 0x930   : > { %7593 = vmatmul.mubr.bf16.vlgmr.msra.gmra.mrb[84].mxu0 %v4530_v4 }
 0x945   : > { %v7502_v7 = vpop.f32.mrb[72].mxu0  ;;  %v7526_v8 = vpop.f32.mrb[72].mxu1 }
 0x946   : > { %v4515_v9 = vadd.f32 %v7502_v7, %v9333_v42  ;;  %v4657_v10 = vadd.f32 %v7526_v8, %v9333_v42  ;;  %v4506_v11 = vpop.f32.mrb[73].mxu0  ;;  %v4648_v12 = vpop.f32.mrb[73].mxu1 }
 0x947   : > { %v4507_v13 = vadd.f32 %v9333_v42, %v4506_v11  ;;  %v4649_v14 = vadd.f32 %v9333_v42, %v4648_v12  ;;  %v7503_v15 = vpop.f32.mrb[74].mxu0  ;;  %v7527_v16 = vpop.f32.mrb[74].mxu1 }
 0x948   : > { %v4518_v61 = vadd.f32 %v7503_v15, %v9333_v42  ;;  %v4660_v31 = vadd.f32 %v7527_v16, %v9333_v42  ;;  %v4509_v17 = vpop.f32.mrb[75].mxu0  ;;  %v4651_v27 = vpop.f32.mrb[75].mxu1  ;;  %v4527_v19 = vmax.f32 %v4515_v9, 0.0  ;;  %v4669_v20 = vmax.f32 %v4657_v10, 0.0 }
 0x949   : > { %v4510_v6 = vadd.f32 %v9333_v42, %v4509_v17  ;;  %v4652_v18 = vadd.f32 %v9333_v42, %v4651_v27  ;;  %v4525_v23 = vmax.f32 %v4507_v13, 0.0  ;;  %v4667_v24 = vmax.f32 %v4649_v14, 0.0 }
 0x94a   : > { %v4528_v21 = vmax.f32 %v4518_v61, 0.0  ;;  %v4670_v22 = vmax.f32 %v4660_v31, 0.0 }
 0x94b   : > { %v4526_v25 = vmax.f32 %v4510_v6, 0.0  ;;  %v4668_v28 = vmax.f32 %v4652_v18, 0.0 }
 0x94c   : > { %v4532_v2 = vpack.c.bf16 %v4528_v21, %v4527_v19  ;;  %v9353_v59 = vpack.c.bf16 %v4670_v22, %v4669_v20 }
 0x94d   : > { %v4531_v30 = vpack.c.bf16 %v4526_v25, %v4525_v23  ;;  %v4673_v34 = vpack.c.bf16 %v4668_v28, %v4667_v24  ;;  %v7546_v35 = vpop.f32.mrb[76].mxu0  ;;  %v7570_v36 = vpop.f32.mrb[76].mxu1 }
 0x94e   : > { %v4783_v37 = vadd.f32 %v7546_v35, %v9333_v42  ;;  %v4925_v38 = vadd.f32 %v7570_v36, %v9333_v42  ;;  %v4774_v39 = vpop.f32.mrb[77].mxu0  ;;  %v4916_v40 = vpop.f32.mrb[77].mxu1 }
 0x94f   : > { %v4775_v41 = vadd.f32 %v9333_v42, %v4774_v39  ;;  %v4917_v43 = vadd.f32 %v9333_v42, %v4916_v40  ;;  %v7547_v33 = vpop.f32.mrb[78].mxu0  ;;  %v7571_v44 = vpop.f32.mrb[78].mxu1  ;;  %7596 = vmatprep.mubr.bf16.mxu0 %v4531_v30 }
 0x950   : > { %v4786_v45 = vadd.f32 %v7547_v33, %v9333_v42  ;;  %v4928_v46 = vadd.f32 %v7571_v44, %v9333_v42  ;;  %v4777_v47 = vpop.f32.mrb[79].mxu0  ;;  %v4919_v32 = vpop.f32.mrb[79].mxu1  ;;  %7597 = vmatmul.mubr.bf16.gmra.mrb[88].mxu0 %v4532_v2  ;;  %v4807_v50 = vmax.f32 %v4783_v37, 0.0  ;;  %v4949_v63 = vmax.f32 %v4925_v38, 0.0 }
 0x951   : > { %v4778_v48 = vadd.f32 %v9333_v42, %v4777_v47  ;;  %v4920_v49 = vadd.f32 %v9333_v42, %v4919_v32  ;;  %7600 = vmatprep.mubr.bf16.mxu0 %v4671_v5  ;;  %v4805_v53 = vmax.f32 %v4775_v41, 0.0  ;;  %v4947_v54 = vmax.f32 %v4917_v43, 0.0 }
 0x952   : > { %v4808_v51 = vmax.f32 %v4786_v45, 0.0  ;;  %v4950_v52 = vmax.f32 %v4928_v46, 0.0 }
 0x953   : > { %v4806_v55 = vmax.f32 %v4778_v48, 0.0  ;;  %v4948_v56 = vmax.f32 %v4920_v49, 0.0 }
 0x954   : > { %v4814_v57 = vpack.c.bf16 %v4808_v51, %v4807_v50  ;;  %v4956_v58 = vpack.c.bf16 %v4950_v52, %v4949_v63 }
 0x955   : > { %v4813_v62 = vpack.c.bf16 %v4806_v55, %v4805_v53  ;;  %v4955_v0 = vpack.c.bf16 %v4948_v56, %v4947_v54  ;;  %v7550_v60 = vpop.f32.mrb[80].mxu0  ;;  %v7574_v3 = vpop.f32.mrb[80].mxu1 }
 0x956   : > { %v4799_v29 = vadd.f32 %v7550_v60, %v9333_v42  ;;  %v4941_v4 = vadd.f32 %v7574_v3, %v9333_v42  ;;  %v4790_v26 = vpop.f32.mrb[81].mxu0  ;;  %v4932_v5 = vpop.f32.mrb[81].mxu1 }
 0x957   : > { %v4791_v7 = vadd.f32 %v9333_v42, %v4790_v26  ;;  %v4933_v8 = vadd.f32 %v9333_v42, %v4932_v5  ;;  %v7551_v9 = vpop.f32.mrb[82].mxu0  ;;  %v7575_v10 = vpop.f32.mrb[82].mxu1 }
 0x958   : > { %v4802_v11 = vadd.f32 %v7551_v9, %v9333_v42  ;;  %v4944_v12 = vadd.f32 %v7575_v10, %v9333_v42  ;;  %v4793_v13 = vpop.f32.mrb[83].mxu0  ;;  %v4935_v14 = vpop.f32.mrb[83].mxu1  ;;  %7601 = vmatmul.mubr.bf16.gmra.mrb[92].mxu0 %v9343_v1  ;;  %v4811_v61 = vmax.f32 %v4799_v29, 0.0  ;;  %v4953_v31 = vmax.f32 %v4941_v4, 0.0 }
 0x959   : > { %v4794_v15 = vadd.f32 %v9333_v42, %v4793_v13  ;;  %v4936_v16 = vadd.f32 %v9333_v42, %v4935_v14  ;;  %7604 = vmatprep.mubr.bf16.mxu0 %v4673_v34  ;;  %v4809_v6 = vmax.f32 %v4791_v7, 0.0  ;;  %v4951_v18 = vmax.f32 %v4933_v8, 0.0  ;;  %v9376_v42 = vld [vmem:[%s9447_s12] ss:$0 sm:$0xff] }
 0x95a   : > { %v4812_v17 = vmax.f32 %v4802_v11, 0.0  ;;  %v4954_v27 = vmax.f32 %v4944_v12, 0.0 }
 0x95b   : > { %v4810_v19 = vmax.f32 %v4794_v15, 0.0  ;;  %v4952_v20 = vmax.f32 %v4936_v16, 0.0 }
 0x95c   : > { %v4816_v21 = vpack.c.bf16 %v4812_v17, %v4811_v61  ;;  %v4958_v22 = vpack.c.bf16 %v4954_v27, %v4953_v31 }
 0x95d   : > { %v4815_v23 = vpack.c.bf16 %v4810_v19, %v4809_v6  ;;  %v4957_v24 = vpack.c.bf16 %v4952_v20, %v4951_v18 }
 0x960   : > { %7605 = vmatmul.mubr.bf16.gmra.mrb[96].mxu0 %v9353_v59 }
 0x961   : > { %7608 = vmatprep.mubr.bf16.mxu0 %v4813_v62 }
 0x968   : > { %7609 = vmatmul.mubr.bf16.gmra.mrb[100].mxu0 %v4814_v57 }
 0x969   : > { %7612 = vmatprep.mubr.bf16.mxu0 %v4815_v23 }
 0x970   : > { %7613 = vmatmul.mubr.bf16.gmra.mrb[104].mxu0 %v4816_v21 }
 0x971   : > { %7616 = vmatprep.mubr.bf16.mxu0 %v4955_v0 }
 0x978   : > { %7617 = vmatmul.mubr.bf16.gmra.mrb[108].mxu0 %v4956_v58 }
 0x979   : > { %7620 = vmatprep.mubr.bf16.mxu0 %v4957_v24 }
 0x980   : > { %7621 = vmatmul.mubr.bf16.gmra.mrb[112].mxu0 %v4958_v22 }
 0xa03   : > { %v7594_v1 = vpop.f32.mrb[84].mxu0 }
 0xa04   : > { %v5073_v25 = vadd.f32 %v7594_v1, %v9376_v42  ;;  %v5064_v28 = vpop.f32.mrb[85].mxu0 }
 0xa05   : > { %v5065_v2 = vadd.f32 %v9376_v42, %v5064_v28  ;;  %v7595_v59 = vpop.f32.mrb[86].mxu0 }
 0xa06   : > { %v5076_v30 = vadd.f32 %v7595_v59, %v9376_v42  ;;  %v5067_v34 = vpop.f32.mrb[87].mxu0  ;;  %v5193_v36 = vmax.f32 %v5073_v25, 0.0 }
 0xa07   : > { %v5068_v35 = vadd.f32 %v9376_v42, %v5067_v34  ;;  %v5191_v38 = vmax.f32 %v5065_v2, 0.0 }
 0xa08   : > { %v5194_v37 = vmax.f32 %v5076_v30, 0.0 }
 0xa09   : > { %v5192_v39 = vmax.f32 %v5068_v35, 0.0 }
 0xa0a   : > { %v6409_v40 = vpack.c.bf16 %v5194_v37, %v5193_v36 }
 0xa0b   : > { %v6404_v41 = vpack.c.bf16 %v5192_v39, %v5191_v38 }
 0xa0c   : > { %6481 = vst [vmem:[%s9386_s19 + $0x8] sm:$0xff] %v6409_v40  }
 0xa0d   : > { %6405 = vst [vmem:[%s9386_s19] sm:$0xff] %v6404_v41  }
 0xa23   : > { %v7598_v43 = vpop.f32.mrb[88].mxu0 }
 0xa24   : > { %v5089_v33 = vadd.f32 %v7598_v43, %v9376_v42  ;;  %v5080_v44 = vpop.f32.mrb[89].mxu0 }
 0xa25   : > { %v5081_v45 = vadd.f32 %v9376_v42, %v5080_v44  ;;  %v7599_v46 = vpop.f32.mrb[90].mxu0 }
 0xa26   : > { %v5092_v47 = vadd.f32 %v7599_v46, %v9376_v42  ;;  %v5083_v32 = vpop.f32.mrb[91].mxu0  ;;  %v5197_v49 = vmax.f32 %v5089_v33, 0.0 }
 0xa27   : > { %v5084_v48 = vadd.f32 %v9376_v42, %v5083_v32  ;;  %v5195_v63 = vmax.f32 %v5081_v45, 0.0 }
 0xa28   : > { %v5198_v50 = vmax.f32 %v5092_v47, 0.0 }
 0xa29   : > { %v5196_v51 = vmax.f32 %v5084_v48, 0.0 }
 0xa2a   : > { %v6419_v52 = vpack.c.bf16 %v5198_v50, %v5197_v49 }
 0xa2b   : > { %v6414_v53 = vpack.c.bf16 %v5196_v51, %v5195_v63  ;;  %v7602_v54 = vpop.f32.mrb[92].mxu0 }
 0xa2c   : > { %6483 = vst [vmem:[%s9386_s19 + $0x18] sm:$0xff] %v6419_v52   ;;  %v5105_v55 = vadd.f32 %v7602_v54, %v9376_v42  ;;  %v5096_v56 = vpop.f32.mrb[93].mxu0 }
 0xa2d   : > { %6482 = vst [vmem:[%s9386_s19 + $0x10] sm:$0xff] %v6414_v53   ;;  %v5097_v57 = vadd.f32 %v9376_v42, %v5096_v56  ;;  %v7603_v58 = vpop.f32.mrb[94].mxu0 }
 0xa2e   : > { %v5108_v62 = vadd.f32 %v7603_v58, %v9376_v42  ;;  %v5099_v0 = vpop.f32.mrb[95].mxu0  ;;  %v5201_v3 = vmax.f32 %v5105_v55, 0.0 }
 0xa2f   : > { %v5100_v60 = vadd.f32 %v9376_v42, %v5099_v0  ;;  %v5199_v4 = vmax.f32 %v5097_v57, 0.0 }
 0xa30   : > { %v5202_v29 = vmax.f32 %v5108_v62, 0.0 }
 0xa31   : > { %v5200_v26 = vmax.f32 %v5100_v60, 0.0 }
 0xa32   : > { %v6429_v5 = vpack.c.bf16 %v5202_v29, %v5201_v3 }
 0xa33   : > { %v6424_v7 = vpack.c.bf16 %v5200_v26, %v5199_v4  ;;  %v7606_v8 = vpop.f32.mrb[96].mxu0 }
 0xa34   : > { %6485 = vst [vmem:[%s9386_s19 + $0x28] sm:$0xff] %v6429_v5   ;;  %v5121_v9 = vadd.f32 %v7606_v8, %v9376_v42  ;;  %v5112_v10 = vpop.f32.mrb[97].mxu0 }
 0xa35   : > { %6484 = vst [vmem:[%s9386_s19 + $0x20] sm:$0xff] %v6424_v7   ;;  %v5113_v11 = vadd.f32 %v9376_v42, %v5112_v10  ;;  %v7607_v12 = vpop.f32.mrb[98].mxu0 }
 0xa36   : > { %v5124_v13 = vadd.f32 %v7607_v12, %v9376_v42  ;;  %v5115_v14 = vpop.f32.mrb[99].mxu0  ;;  %v5205_v16 = vmax.f32 %v5121_v9, 0.0 }
 0xa37   : > { %v5116_v15 = vadd.f32 %v9376_v42, %v5115_v14  ;;  %v5203_v31 = vmax.f32 %v5113_v11, 0.0 }
 0xa38   : > { %v5206_v61 = vmax.f32 %v5124_v13, 0.0 }
 0xa39   : > { %v5204_v17 = vmax.f32 %v5116_v15, 0.0 }
 0xa3a   : > { %v6439_v27 = vpack.c.bf16 %v5206_v61, %v5205_v16 }
 0xa3b   : > { %v6434_v6 = vpack.c.bf16 %v5204_v17, %v5203_v31  ;;  %v7610_v18 = vpop.f32.mrb[100].mxu0 }
 0xa3c   : > { %6487 = vst [vmem:[%s9386_s19 + $0x38] sm:$0xff] %v6439_v27   ;;  %v5137_v19 = vadd.f32 %v7610_v18, %v9376_v42  ;;  %v5128_v20 = vpop.f32.mrb[101].mxu0 }
 0xa3d   : > { %6486 = vst [vmem:[%s9386_s19 + $0x30] sm:$0xff] %v6434_v6   ;;  %v5129_v21 = vadd.f32 %v9376_v42, %v5128_v20  ;;  %v7611_v22 = vpop.f32.mrb[102].mxu0 }
 0xa3e   : > { %v5140_v23 = vadd.f32 %v7611_v22, %v9376_v42  ;;  %v5131_v24 = vpop.f32.mrb[103].mxu0  ;;  %v5209_v25 = vmax.f32 %v5137_v19, 0.0 }
 0xa3f   : > { %v5132_v1 = vadd.f32 %v9376_v42, %v5131_v24  ;;  %v5207_v2 = vmax.f32 %v5129_v21, 0.0 }
 0xa40   : > { %v5210_v28 = vmax.f32 %v5140_v23, 0.0 }
 0xa41   : > { %v5208_v59 = vmax.f32 %v5132_v1, 0.0 }
 0xa42   : > { %v6449_v30 = vpack.c.bf16 %v5210_v28, %v5209_v25 }
 0xa43   : > { %v6444_v34 = vpack.c.bf16 %v5208_v59, %v5207_v2  ;;  %v7614_v35 = vpop.f32.mrb[104].mxu0 }
 0xa44   : > { %6489 = vst [vmem:[%s9386_s19 + $0x48] sm:$0xff] %v6449_v30   ;;  %v5153_v36 = vadd.f32 %v7614_v35, %v9376_v42  ;;  %v5144_v37 = vpop.f32.mrb[105].mxu0 }
 0xa45   : > { %6488 = vst [vmem:[%s9386_s19 + $0x40] sm:$0xff] %v6444_v34   ;;  %v5145_v38 = vadd.f32 %v9376_v42, %v5144_v37  ;;  %v7615_v39 = vpop.f32.mrb[106].mxu0 }
 0xa46   : > { %v5156_v40 = vadd.f32 %v7615_v39, %v9376_v42  ;;  %v5147_v41 = vpop.f32.mrb[107].mxu0  ;;  %v5213_v33 = vmax.f32 %v5153_v36, 0.0 }
 0xa47   : > { %v5148_v43 = vadd.f32 %v9376_v42, %v5147_v41  ;;  %v5211_v45 = vmax.f32 %v5145_v38, 0.0 }
 0xa48   : > { %v5214_v44 = vmax.f32 %v5156_v40, 0.0 }
 0xa49   : > { %v5212_v46 = vmax.f32 %v5148_v43, 0.0 }
 0xa4a   : > { %v6459_v47 = vpack.c.bf16 %v5214_v44, %v5213_v33 }
 0xa4b   : > { %v6454_v32 = vpack.c.bf16 %v5212_v46, %v5211_v45  ;;  %v7618_v48 = vpop.f32.mrb[108].mxu0 }
 0xa4c   : > { %6491 = vst [vmem:[%s9386_s19 + $0x58] sm:$0xff] %v6459_v47   ;;  %v5169_v49 = vadd.f32 %v7618_v48, %v9376_v42  ;;  %v5160_v50 = vpop.f32.mrb[109].mxu0 }
 0xa4d   : > { %6490 = vst [vmem:[%s9386_s19 + $0x50] sm:$0xff] %v6454_v32   ;;  %v5161_v63 = vadd.f32 %v9376_v42, %v5160_v50  ;;  %v7619_v51 = vpop.f32.mrb[110].mxu0 }
 0xa4e   : > { %v5172_v52 = vadd.f32 %v7619_v51, %v9376_v42  ;;  %v5163_v53 = vpop.f32.mrb[111].mxu0  ;;  %v5217_v55 = vmax.f32 %v5169_v49, 0.0 }
 0xa4f   : > { %v5164_v54 = vadd.f32 %v9376_v42, %v5163_v53  ;;  %v5215_v57 = vmax.f32 %v5161_v63, 0.0 }
 0xa50   : > { %v5218_v56 = vmax.f32 %v5172_v52, 0.0 }
 0xa51   : > { %v5216_v58 = vmax.f32 %v5164_v54, 0.0 }
 0xa52   : > { %v6469_v62 = vpack.c.bf16 %v5218_v56, %v5217_v55 }
 0xa53   : > { %v6464_v0 = vpack.c.bf16 %v5216_v58, %v5215_v57  ;;  %v7622_v60 = vpop.f32.mrb[112].mxu0 }
 0xa54   : > { %6493 = vst [vmem:[%s9386_s19 + $0x68] sm:$0xff] %v6469_v62   ;;  %v5185_v3 = vadd.f32 %v7622_v60, %v9376_v42  ;;  %v5176_v29 = vpop.f32.mrb[113].mxu0 }
 0xa55   : > { %6492 = vst [vmem:[%s9386_s19 + $0x60] sm:$0xff] %v6464_v0   ;;  %v5177_v4 = vadd.f32 %v9376_v42, %v5176_v29  ;;  %v7623_v26 = vpop.f32.mrb[114].mxu0 }
 0xa56   : > { %v5188_v5 = vadd.f32 %v7623_v26, %v9376_v42  ;;  %v5179_v7 = vpop.f32.mrb[115].mxu0  ;;  %v5221_v9 = vmax.f32 %v5185_v3, 0.0 }
 0xa57   : > { %v5180_v8 = vadd.f32 %v9376_v42, %v5179_v7  ;;  %v5219_v11 = vmax.f32 %v5177_v4, 0.0 }
 0xa58   : > { %v5222_v10 = vmax.f32 %v5188_v5, 0.0 }
 0xa59   : > { %v5220_v12 = vmax.f32 %v5180_v8, 0.0 }
 0xa5a   : > { %v6479_v13 = vpack.c.bf16 %v5222_v10, %v5221_v9 }
 0xa5b   : > { %v6474_v14 = vpack.c.bf16 %v5220_v12, %v5219_v11 }
 0xa5c   : > { %6495 = vst [vmem:[%s9386_s19 + $0x78] sm:$0xff] %v6479_v13  }
 0xa5d   : > { %6494 = vst [vmem:[%s9386_s19 + $0x70] sm:$0xff] %v6474_v14  }
 0xa5e PF: > { %s25_s29 = sadd.s32 1, %s7989_s29  }
 0xa5f   : > { %p22_p4 = scmp.ge.s32.totalorder %s25_s29, 4  }
 0xa61   :  { %24 = sbr.rel (!%p22_p4) target bundleno = 1 (0x1), region = 162 }

</bundles_post_ra>
